<compile_context>
chip_gen: v7x
topology: tpu7x:2x2x1
jax: 0.10.0
libtpu: 0.0.40
codegen_flags: <defaults>
</compile_context>

<pallas_src>
import functools

import numpy as np
import jax
import jax.numpy as jnp
from jax.experimental import pallas as pl
from jax.experimental.pallas import tpu as pltpu


TM = 256          # rows per grid step (>=128 keeps the MXU well fed, incl. v5e)
E_PAD = 128       # padded expert/logit width so the output store is lane-dense
H1, H2, H3 = 1024, 512, 128   # gate MLP hidden sizes (as in the PyTorch module)


# ----------------------------- Pallas kernel -------------------------------

def gate_kernel(x_ref,
                w1_ref, b1_ref,
                w2_ref, b2_ref,
                w3_ref, b3_ref,
                w4_ref, b4_ref,
                probs_ref, *, num_real):
    x = x_ref[...]                                                   # (TM, D) bf16

    h = jnp.dot(x, w1_ref[...], preferred_element_type=jnp.float32) + b1_ref[...]
    h = jnp.maximum(h, 0.0).astype(jnp.bfloat16)                     # ReLU (+Dropout==id)

    h = jnp.dot(h, w2_ref[...], preferred_element_type=jnp.float32) + b2_ref[...]
    h = jnp.maximum(h, 0.0).astype(jnp.bfloat16)

    h = jnp.dot(h, w3_ref[...], preferred_element_type=jnp.float32) + b3_ref[...]
    h = jnp.maximum(h, 0.0).astype(jnp.bfloat16)

    logits = jnp.dot(h, w4_ref[...], preferred_element_type=jnp.float32) + b4_ref[...]

    # Mask padded expert lanes so the softmax over the real experts is exact.
    lane = jax.lax.broadcasted_iota(jnp.int32, logits.shape, 1)
    logits = jnp.where(lane < num_real, logits, -1e30)

    # softmax over experts (last dim)
    m = jnp.max(logits, axis=-1, keepdims=True)
    e = jnp.exp(logits - m)
    denom = jnp.sum(e, axis=-1, keepdims=True)
    probs_ref[...] = e * pl.reciprocal(denom, approx=True)


def gate_probs(x, params, num_experts):
    """Gate MLP + softmax. x: (N, D) f32 on device -> (N, num_experts) f32 probs."""
    n, d = x.shape

    n_pad = ((n + TM - 1) // TM) * TM
    x_bf = x.astype(jnp.bfloat16)
    if n_pad != n:
        x_bf = jnp.pad(x_bf, ((0, n_pad - n), (0, 0)))

    # pad the expert dim of the last layer to a full lane group
    w4 = jnp.pad(params["w4"], ((0, 0), (0, E_PAD - num_experts)))
    b4 = jnp.pad(params["b4"], ((0, 0), (0, E_PAD - num_experts)))

    grid = (n_pad // TM,)
    probs_pad = pl.pallas_call(
        functools.partial(gate_kernel, num_real=num_experts),
        out_shape=jax.ShapeDtypeStruct((n_pad, E_PAD), jnp.float32),
        grid=grid,
        in_specs=[
            pl.BlockSpec((TM, d), lambda i: (i, 0)),    # x tile (double-buffered)
            pl.BlockSpec((d, H1), lambda i: (0, 0)),    # weights: VMEM-resident
            pl.BlockSpec((1, H1), lambda i: (0, 0)),
            pl.BlockSpec((H1, H2), lambda i: (0, 0)),
            pl.BlockSpec((1, H2), lambda i: (0, 0)),
            pl.BlockSpec((H2, H3), lambda i: (0, 0)),
            pl.BlockSpec((1, H3), lambda i: (0, 0)),
            pl.BlockSpec((H3, E_PAD), lambda i: (0, 0)),
            pl.BlockSpec((1, E_PAD), lambda i: (0, 0)),
        ],
        out_specs=pl.BlockSpec((TM, E_PAD), lambda i: (i, 0)),
        compiler_params=pltpu.CompilerParams(
            dimension_semantics=("parallel",),          # shard batch tiles over TCs
            vmem_limit_bytes=32 * 1024 * 1024,          # fits v5e/v6e/v7x; need < 8 MiB
        ),
    )(x_bf,
      params["w1"], params["b1"],
      params["w2"], params["b2"],
      params["w3"], params["b3"],
      w4, b4)

    return probs_pad[:n, :num_experts]


# --------------------------- parameter creation -----------------------------

def init_params(key, input_dim, num_experts):
    dims = [(input_dim, H1), (H1, H2), (H2, H3), (H3, num_experts)]
    params = {}
    for i, (din, dout) in enumerate(dims, start=1):
        key, kw, kb = jax.random.split(key, 3)
        scale = 1.0 / np.sqrt(din)
        w = jax.random.uniform(kw, (din, dout), jnp.float32, minval=-scale, maxval=scale)
        b = jax.random.uniform(kb, (1, dout), jnp.float32, minval=-scale, maxval=scale)
        params[f"w{i}"] = w.astype(jnp.bfloat16)   # bf16 weights for the MXU
        params[f"b{i}"] = b                        # biases stay f32
    return params


# ----------------------- host-side balanced allocation ----------------------

def balanced_allocation(probs_np, num_experts):
    n = probs_np.shape[0]
    base = n // num_experts
    rem = n % num_experts
    target_counts = np.array([base + 1 if i < rem else base
                              for i in range(num_experts)], dtype=np.int64)

    expert_choice = np.argmax(probs_np, axis=1)
    pools = [[] for _ in range(num_experts)]
    for idx, expert in enumerate(expert_choice):
        pools[int(expert)].append(idx)

    for expert in range(num_experts):
        current = len(pools[expert])
        if current <= target_counts[expert]:
            continue
        overflow = current - target_counts[expert]
        expert_probs = probs_np[pools[expert], expert]
        sorted_idx = np.argsort(expert_probs)[:overflow]   # lowest-confidence first
        to_redistribute = [pools[expert][i] for i in sorted_idx]
        pools[expert] = [i for i in pools[expert] if i not in to_redistribute]
        for idx in to_redistribute:
            candidates = np.argsort(-probs_np[idx])[1:]    # descending, skip top-1
            for cand in candidates:
                if len(pools[int(cand)]) < target_counts[int(cand)]:
                    pools[int(cand)].append(idx)
                    break
    return pools, target_counts


# ------------------------------- full forward --------------------------------

def uniform_moe_router_forward(x, params, key, num_experts=3, balance_weight=0.1):
    n = x.shape[0]

    # shuffle (torch.randperm equivalent) -- stays on device
    shuffle_idx = jax.random.permutation(key, n)
    shuffled_x = x[shuffle_idx]

    # --- Pallas kernel: gate MLP + softmax ---
    probs = gate_probs(shuffled_x, params, num_experts)

    # Only the small (N, num_experts) prob matrix crosses to host for the
    # sequential, data-dependent balanced allocation.
    probs_np = np.asarray(jax.block_until_ready(probs))
    pools, _ = balanced_allocation(probs_np, num_experts)

    # per-expert gathers on device (no x-sized host round-trip)
    expert_original_indices = [
        jnp.take(shuffle_idx, jnp.asarray(p, dtype=jnp.int32), axis=0) for p in pools
    ]
    expert_data = [
        jnp.take(shuffled_x, jnp.asarray(p, dtype=jnp.int32), axis=0) for p in pools
    ]

    # sanity checks (mirror the module asserts); index arrays are tiny
    total_allocated = sum(int(e.shape[0]) for e in expert_original_indices)
    assert total_allocated == n, f"allocation error: {total_allocated}/{n}"
    all_idx = np.concatenate([np.asarray(e) for e in expert_original_indices])
    assert np.all(np.bincount(all_idx, minlength=n) == 1), "duplicate allocation"

    # distribution loss on device
    counts = jnp.asarray([len(p) for p in pools], dtype=jnp.float32)
    fractions = counts / n
    mean_probs = jnp.mean(probs, axis=0)
    distribution_loss = jnp.sum(mean_probs * fractions) * num_experts * balance_weight

    return expert_data, distribution_loss, expert_original_indices, probs


# ---------------------------------- main -------------------------------------

if __name__ == "__main__":
    INPUT_DIM = 256          # small test size; gate hidden dims 1024/512/128/3 as in module
    NUM_EXPERTS = 3
    BALANCE_WEIGHT = 0.1
    N = 11                   # exercises the remainder path (11 % 3 == 2)

    root = jax.random.PRNGKey(0)
    k_param, k_x, k_shuffle = jax.random.split(root, 3)

    params = init_params(k_param, INPUT_DIM, NUM_EXPERTS)
    x = jax.random.normal(k_x, (N, INPUT_DIM), jnp.float32)

    expert_data, loss, expert_idx, probs = uniform_moe_router_forward(
        x, params, k_shuffle, num_experts=NUM_EXPERTS, balance_weight=BALANCE_WEIGHT)

    jax.block_until_ready(probs)
    jax.block_until_ready(loss)
    for ed in expert_data:
        jax.block_until_ready(ed)

    # sanity: every sample allocated exactly once, probs sum ~1
    # (loose tolerance: bf16 matmuls + approx reciprocal in the softmax)
    assert sum(e.shape[0] for e in expert_data) == N
    assert np.allclose(np.asarray(probs).sum(axis=1), 1.0, atol=2e-2)
    assert np.isfinite(float(loss))

    print("KERNEL_OK")
</pallas_src>

<mosaic_0001>
module attributes {stable_mosaic.version = 11 : i64} {
  func.func @gate_kernel(%arg0: i32, %arg1: memref<256x256xbf16, #tpu.memory_space<vmem>>, %arg2: memref<256x1024xbf16, #tpu.memory_space<vmem>>, %arg3: memref<1x1024xf32, #tpu.memory_space<vmem>>, %arg4: memref<1024x512xbf16, #tpu.memory_space<vmem>>, %arg5: memref<1x512xf32, #tpu.memory_space<vmem>>, %arg6: memref<512x128xbf16, #tpu.memory_space<vmem>>, %arg7: memref<1x128xf32, #tpu.memory_space<vmem>>, %arg8: memref<128x128xbf16, #tpu.memory_space<vmem>>, %arg9: memref<1x128xf32, #tpu.memory_space<vmem>>, %arg10: memref<256x128xf32, #tpu.memory_space<vmem>>) attributes {dimension_semantics = [#tpu.dimension_semantics<parallel>], iteration_bounds = array<i64: 1>, scalar_prefetch = 0 : i64, scratch_operands = 0 : i64, tpu.core_type = #tpu.core_type<tc>, window_params = [{transform_indices = @transform_0, window_bounds = array<i64: 256, 256>}, {pipeline_mode = #tpu.pipeline_mode<synchronous>, transform_indices = @transform_1, window_bounds = array<i64: 256, 1024>}, {pipeline_mode = #tpu.pipeline_mode<synchronous>, transform_indices = @transform_2, window_bounds = array<i64: 1, 1024>}, {pipeline_mode = #tpu.pipeline_mode<synchronous>, transform_indices = @transform_3, window_bounds = array<i64: 1024, 512>}, {pipeline_mode = #tpu.pipeline_mode<synchronous>, transform_indices = @transform_4, window_bounds = array<i64: 1, 512>}, {pipeline_mode = #tpu.pipeline_mode<synchronous>, transform_indices = @transform_5, window_bounds = array<i64: 512, 128>}, {pipeline_mode = #tpu.pipeline_mode<synchronous>, transform_indices = @transform_6, window_bounds = array<i64: 1, 128>}, {pipeline_mode = #tpu.pipeline_mode<synchronous>, transform_indices = @transform_7, window_bounds = array<i64: 128, 128>}, {pipeline_mode = #tpu.pipeline_mode<synchronous>, transform_indices = @transform_8, window_bounds = array<i64: 1, 128>}, {transform_indices = @transform_9, window_bounds = array<i64: 256, 128>}]} {
    %c0 = arith.constant 0 : index
    %c0_0 = arith.constant 0 : index
    %0 = vector.load %arg1[%c0, %c0_0] : memref<256x256xbf16, #tpu.memory_space<vmem>>, vector<256x256xbf16>
    %c0_1 = arith.constant 0 : index
    %c0_2 = arith.constant 0 : index
    %1 = vector.load %arg2[%c0_1, %c0_2] : memref<256x1024xbf16, #tpu.memory_space<vmem>>, vector<256x1024xbf16>
    %cst = arith.constant dense<0.000000e+00> : vector<256x1024xf32>
    %2 = tpu.matmul %0, %1, %cst {dimension_numbers = #tpu.dot_dimension_numbers<[1], [0], [0], [1], [0, 0, 1, 1], [], []>} : vector<256x256xbf16>, vector<256x1024xbf16>, vector<256x1024xf32> -> vector<256x1024xf32>
    %c0_3 = arith.constant 0 : index
    %c0_4 = arith.constant 0 : index
    %3 = vector.load %arg3[%c0_3, %c0_4] : memref<1x1024xf32, #tpu.memory_space<vmem>>, vector<1x1024xf32>
    %4 = vector.broadcast %3 : vector<1x1024xf32> to vector<256x1024xf32>
    %5 = arith.addf %2, %4 : vector<256x1024xf32>
    %cst_5 = arith.constant 0.000000e+00 : f32
    %6 = vector.broadcast %cst_5 : f32 to vector<256x1024xf32>
    %7 = arith.maximumf %5, %6 : vector<256x1024xf32>
    %8 = arith.truncf %7 : vector<256x1024xf32> to vector<256x1024xbf16>
    %c0_6 = arith.constant 0 : index
    %c0_7 = arith.constant 0 : index
    %9 = vector.load %arg4[%c0_6, %c0_7] : memref<1024x512xbf16, #tpu.memory_space<vmem>>, vector<1024x512xbf16>
    %cst_8 = arith.constant dense<0.000000e+00> : vector<256x512xf32>
    %10 = tpu.matmul %8, %9, %cst_8 {dimension_numbers = #tpu.dot_dimension_numbers<[1], [0], [0], [1], [0, 0, 1, 1], [], []>} : vector<256x1024xbf16>, vector<1024x512xbf16>, vector<256x512xf32> -> vector<256x512xf32>
    %c0_9 = arith.constant 0 : index
    %c0_10 = arith.constant 0 : index
    %11 = vector.load %arg5[%c0_9, %c0_10] : memref<1x512xf32, #tpu.memory_space<vmem>>, vector<1x512xf32>
    %12 = vector.broadcast %11 : vector<1x512xf32> to vector<256x512xf32>
    %13 = arith.addf %10, %12 : vector<256x512xf32>
    %cst_11 = arith.constant 0.000000e+00 : f32
    %14 = vector.broadcast %cst_11 : f32 to vector<256x512xf32>
    %15 = arith.maximumf %13, %14 : vector<256x512xf32>
    %16 = arith.truncf %15 : vector<256x512xf32> to vector<256x512xbf16>
    %c0_12 = arith.constant 0 : index
    %c0_13 = arith.constant 0 : index
    %17 = vector.load %arg6[%c0_12, %c0_13] : memref<512x128xbf16, #tpu.memory_space<vmem>>, vector<512x128xbf16>
    %cst_14 = arith.constant dense<0.000000e+00> : vector<256x128xf32>
    %18 = tpu.matmul %16, %17, %cst_14 {dimension_numbers = #tpu.dot_dimension_numbers<[1], [0], [0], [1], [0, 0, 1, 1], [], []>} : vector<256x512xbf16>, vector<512x128xbf16>, vector<256x128xf32> -> vector<256x128xf32>
    %c0_15 = arith.constant 0 : index
    %c0_16 = arith.constant 0 : index
    %19 = vector.load %arg7[%c0_15, %c0_16] : memref<1x128xf32, #tpu.memory_space<vmem>>, vector<1x128xf32>
    %20 = vector.broadcast %19 : vector<1x128xf32> to vector<256x128xf32>
    %21 = arith.addf %18, %20 : vector<256x128xf32>
    %cst_17 = arith.constant 0.000000e+00 : f32
    %22 = vector.broadcast %cst_17 : f32 to vector<256x128xf32>
    %23 = arith.maximumf %21, %22 : vector<256x128xf32>
    %24 = arith.truncf %23 : vector<256x128xf32> to vector<256x128xbf16>
    %c0_18 = arith.constant 0 : index
    %c0_19 = arith.constant 0 : index
    %25 = vector.load %arg8[%c0_18, %c0_19] : memref<128x128xbf16, #tpu.memory_space<vmem>>, vector<128x128xbf16>
    %cst_20 = arith.constant dense<0.000000e+00> : vector<256x128xf32>
    %26 = tpu.matmul %24, %25, %cst_20 {dimension_numbers = #tpu.dot_dimension_numbers<[1], [0], [0], [1], [0, 0, 1, 1], [], []>} : vector<256x128xbf16>, vector<128x128xbf16>, vector<256x128xf32> -> vector<256x128xf32>
    %c0_21 = arith.constant 0 : index
    %c0_22 = arith.constant 0 : index
    %27 = vector.load %arg9[%c0_21, %c0_22] : memref<1x128xf32, #tpu.memory_space<vmem>>, vector<1x128xf32>
    %28 = vector.broadcast %27 : vector<1x128xf32> to vector<256x128xf32>
    %29 = arith.addf %26, %28 : vector<256x128xf32>
    %30 = tpu.iota {dimensions = array<i32: 1>} : vector<256x128xi32>
    %c3_i32 = arith.constant 3 : i32
    %31 = vector.broadcast %c3_i32 : i32 to vector<256x128xi32>
    %32 = arith.cmpi slt, %30, %31 : vector<256x128xi32>
    %cst_23 = arith.constant -1.000000e+30 : f32
    %33 = vector.broadcast %cst_23 : f32 to vector<256x128xf32>
    %34 = arith.select %32, %29, %33 : vector<256x128xi1>, vector<256x128xf32>
    %cst_24 = arith.constant dense<0xFF800000> : vector<256xf32>
    %35 = vector.multi_reduction <maximumf>, %34, %cst_24 [1] : vector<256x128xf32> to vector<256xf32>
    %36 = vector.shape_cast %35 : vector<256xf32> to vector<256x1xf32>
    %37 = vector.broadcast %36 : vector<256x1xf32> to vector<256x128xf32>
    %38 = arith.subf %34, %37 : vector<256x128xf32>
    %39 = math.exp %38 : vector<256x128xf32>
    %cst_25 = arith.constant dense<0.000000e+00> : vector<256xf32>
    %40 = vector.multi_reduction <add>, %39, %cst_25 [1] : vector<256x128xf32> to vector<256xf32>
    %41 = vector.shape_cast %40 : vector<256xf32> to vector<256x1xf32>
    %42 = tpu.reciprocal %41 {approx = true} : vector<256x1xf32> -> vector<256x1xf32>
    %43 = vector.broadcast %42 : vector<256x1xf32> to vector<256x128xf32>
    %44 = arith.mulf %39, %43 : vector<256x128xf32>
    %c0_26 = arith.constant 0 : index
    %c0_27 = arith.constant 0 : index
    %45 = vector.load %arg10[%c0_26, %c0_27] : memref<256x128xf32, #tpu.memory_space<vmem>>, vector<256x128xf32>
    tpu.vector_store %arg10[%c0_26, %c0_27], %44 {strides = array<i32>} : memref<256x128xf32, #tpu.memory_space<vmem>>, vector<256x128xf32>,
    return
  }
  func.func @transform_0(%arg0: i32) -> (i32, i32) {
    %c0_i32 = arith.constant 0 : i32
    %c0_i32_0 = arith.constant 0 : i32
    return %arg0, %c0_i32 : i32, i32
  }
  func.func @transform_1(%arg0: i32) -> (i32, i32) {
    %c0_i32 = arith.constant 0 : i32
    %c0_i32_0 = arith.constant 0 : i32
    %c0_i32_1 = arith.constant 0 : i32
    return %c0_i32, %c0_i32_0 : i32, i32
  }
  func.func @transform_2(%arg0: i32) -> (i32, i32) {
    %c0_i32 = arith.constant 0 : i32
    %c0_i32_0 = arith.constant 0 : i32
    %c0_i32_1 = arith.constant 0 : i32
    return %c0_i32, %c0_i32_0 : i32, i32
  }
  func.func @transform_3(%arg0: i32) -> (i32, i32) {
    %c0_i32 = arith.constant 0 : i32
    %c0_i32_0 = arith.constant 0 : i32
    %c0_i32_1 = arith.constant 0 : i32
    return %c0_i32, %c0_i32_0 : i32, i32
  }
  func.func @transform_4(%arg0: i32) -> (i32, i32) {
    %c0_i32 = arith.constant 0 : i32
    %c0_i32_0 = arith.constant 0 : i32
    %c0_i32_1 = arith.constant 0 : i32
    return %c0_i32, %c0_i32_0 : i32, i32
  }
  func.func @transform_5(%arg0: i32) -> (i32, i32) {
    %c0_i32 = arith.constant 0 : i32
    %c0_i32_0 = arith.constant 0 : i32
    %c0_i32_1 = arith.constant 0 : i32
    return %c0_i32, %c0_i32_0 : i32, i32
  }
  func.func @transform_6(%arg0: i32) -> (i32, i32) {
    %c0_i32 = arith.constant 0 : i32
    %c0_i32_0 = arith.constant 0 : i32
    %c0_i32_1 = arith.constant 0 : i32
    return %c0_i32, %c0_i32_0 : i32, i32
  }
  func.func @transform_7(%arg0: i32) -> (i32, i32) {
    %c0_i32 = arith.constant 0 : i32
    %c0_i32_0 = arith.constant 0 : i32
    %c0_i32_1 = arith.constant 0 : i32
    return %c0_i32, %c0_i32_0 : i32, i32
  }
  func.func @transform_8(%arg0: i32) -> (i32, i32) {
    %c0_i32 = arith.constant 0 : i32
    %c0_i32_0 = arith.constant 0 : i32
    %c0_i32_1 = arith.constant 0 : i32
    return %c0_i32, %c0_i32_0 : i32, i32
  }
  func.func @transform_9(%arg0: i32) -> (i32, i32) {
    %c0_i32 = arith.constant 0 : i32
    %c0_i32_0 = arith.constant 0 : i32
    return %arg0, %c0_i32 : i32, i32
  }
}

</mosaic_0001>

<bundles_post_ra>
// kernel: tpu_custom_call.1
= control target key start
LH: loop header
LB: loop body
LE: loop exit
PB: predicated region body
PF: predicated region fallthrough
CT: control target
= control target key end

     0   :  { %14 = vsyncpa [#allocation3], 0  ;;  %s10705_s0 = inlined_call_operand.hbm [shape: bf16[256,256], index: 0, kind: input, shape index: {}]   ;;  %s10706_s1 = inlined_call_operand.hbm [shape: bf16[256,1024], index: 1, kind: input, shape index: {}]   ;;  %s10707_s2 = inlined_call_operand.hbm [shape: f32[1,1024], index: 2, kind: input, shape index: {}]   ;;  %s10708_s3 = inlined_call_operand.hbm [shape: bf16[1024,512], index: 3, kind: input, shape index: {}]   ;;  %s10709_s4 = inlined_call_operand.vmem [shape: f32[1,512], index: 4, kind: input, shape index: {}]   ;;  %s10710_s5 = inlined_call_operand.hbm [shape: bf16[512,128], index: 5, kind: input, shape index: {}]   ;;  %s10711_s6 = inlined_call_operand.vmem [shape: f32[1,128], index: 6, kind: input, shape index: {}]   ;;  %s10712_s7 = inlined_call_operand.hbm [shape: bf16[128,128], index: 7, kind: input, shape index: {}]   ;;  %s10713_s8 = inlined_call_operand.vmem [shape: f32[1,128], index: 8, kind: input, shape index: {}]   ;;  %s10714_s9 = inlined_call_operand.hbm [shape: f32[256,128], index: 9, kind: output, shape index: {}]  }
   0x1   :  { %15 = vsyncpa [#allocation6], 0 }
   0x2   :  { %16 = vsyncpa [#allocation9], 0 }
   0x3   :  { %17 = vsyncpa [#allocation12], 0 }
   0x4   :  { %18 = vsyncpa [#allocation4], 0  ;;  %s8878_s30 = smov [#allocation5]   ;;  %s8714_s13 = scalar_lea.hbm %s10706_s1, 16384 }
   0x5   :  { %s36_s10 = sshll.u32 %s8878_s30, 4  ;;  %p8715_p0 = scmp.ne.s32.totalorder %s10706_s1, %s8714_s13  ;;  %s37_s10 = int_to_ptr.vmem [resolvable:$true] %s36_s10 }
   0x6   :  { %p8718_p1 = scmp.lt.u32.totalorder %s8714_s13, %s10706_s1 }
   0x8   :  { %p8720_p2 = pnand %p8718_p1, %p8715_p0 }
   0xa   :  { %8723 = shalt.err (!%p8720_p2)
}
   0xb   :  { %s8724_s18 = scalar_lea.vmem %s37_s10, 16384  ;;  %p8729_p4 = scmp.lt.s32.totalorder %s37_s10, %s37_s10 }
   0xc   :  { %p8725_p3 = scmp.ne.s32.totalorder %s37_s10, %s8724_s18  ;;  %p8730_p5 = scmp.lt.s32.totalorder %s8724_s18, %s8724_s18 }
   0xe   :  { %p8731_p6 = por %p8730_p5, %p8729_p4 }
  0x10   :  { %p8732_p7 = pnand %p8731_p6, %p8725_p3 }
  0x12   :  { %8735 = shalt.err (!%p8732_p7)
}
  0x13   :  { %s8879_s19 = smov 512   ;;  %s8880_s20 = smov 32  }
  0x14   :  { %42 = dma.hbm_to_vmem [thread:$0]  %s10706_s1, 16384, %s37_s10, [#allocation6], %s8879_s19, %s8879_s19, %s8880_s20  }
  0x15   :  { %s8881_s23 = smov [#allocation8]   ;;  %s8736_s27 = scalar_lea.hbm %s10708_s3, 32768 }
  0x16   :  { %s58_s24 = sshll.u32 %s8881_s23, 4  ;;  %p8737_p8 = scmp.ne.s32.totalorder %s10708_s3, %s8736_s27  ;;  %s59_s24 = int_to_ptr.vmem [resolvable:$true] %s58_s24 }
  0x17   :  { %p8740_p9 = scmp.lt.u32.totalorder %s8736_s27, %s10708_s3 }
  0x19   :  { %p8742_p10 = pnand %p8740_p9, %p8737_p8 }
  0x1b   :  { %8745 = shalt.err (!%p8742_p10)
}
  0x1c   :  { %s8746_s12 = scalar_lea.vmem %s59_s24, 32768  ;;  %p8751_p12 = scmp.lt.s32.totalorder %s59_s24, %s59_s24 }
  0x1d   :  { %p8747_p11 = scmp.ne.s32.totalorder %s59_s24, %s8746_s12  ;;  %p8752_p13 = scmp.lt.s32.totalorder %s8746_s12, %s8746_s12 }
  0x1f   :  { %p8753_p0 = por %p8752_p13, %p8751_p12 }
  0x21   :  { %p8754_p1 = pnand %p8753_p0, %p8747_p11 }
  0x23   :  { %8757 = shalt.err (!%p8754_p1)
}
  0x24   :  { %s8882_s1 = smov 256   ;;  %s8883_s10 = smov 16  }
  0x25   :  { %64 = dma.hbm_to_vmem [thread:$0]  %s10708_s3, 32768, %s59_s24, [#allocation9], %s8882_s1, %s8882_s1, %s8883_s10  }
  0x26   :  { %s8884_s15 = smov [#allocation2]   ;;  %s8758_s19 = scalar_lea.hbm %s10705_s0, 4096 }
  0x27   :  { %s24_s16 = sshll.u32 %s8884_s15, 4  ;;  %p8759_p2 = scmp.ne.s32.totalorder %s10705_s0, %s8758_s19  ;;  %s25_s16 = int_to_ptr.vmem [resolvable:$true] %s24_s16 }
  0x28   :  { %p8762_p3 = scmp.lt.u32.totalorder %s8758_s19, %s10705_s0 }
  0x2a   :  { %p8764_p4 = pnand %p8762_p3, %p8759_p2 }
  0x2c   :  { %8767 = shalt.err (!%p8764_p4)
}
  0x2d   :  { %s8768_s25 = scalar_lea.vmem %s25_s16, 4096  ;;  %p8773_p6 = scmp.lt.s32.totalorder %s25_s16, %s25_s16 }
  0x2e   :  { %p8769_p5 = scmp.ne.s32.totalorder %s25_s16, %s8768_s25  ;;  %p8774_p7 = scmp.lt.s32.totalorder %s8768_s25, %s8768_s25 }
  0x30   :  { %p8775_p8 = por %p8774_p7, %p8773_p6 }
  0x32   :  { %p8776_p9 = pnand %p8775_p8, %p8769_p5 }
  0x34   :  { %8779 = shalt.err (!%p8776_p9)
}
  0x35   :  { %s8885_s3 = smov 128   ;;  %s8886_s24 = smov 8  }
  0x36   :  { %30 = dma.hbm_to_vmem [thread:$0]  %s10705_s0, 4096, %s25_s16, [#allocation3], %s8885_s3, %s8885_s3, %s8886_s24  }
  0x37   :  { %s8887_s28 = smov [#allocation7]   ;;  %s8888_s30 = smov [#allocation10]  }
  0x38   :  { %s49_s29 = sshll.u32 %s8887_s28, 4  ;;  %s72_s11 = sshll.u32 %s8888_s30, 4  ;;  %s50_s29 = int_to_ptr.vmem [resolvable:$true] %s49_s29  ;;  %s73_s11 = int_to_ptr.vmem [resolvable:$true] %s72_s11 }
  0x39   :  { %s8780_s10 = scalar_lea.hbm %s10707_s2, 128 }
  0x3a   :  { %p8781_p10 = scmp.ne.s32.totalorder %s10707_s2, %s8780_s10  ;;  %p8784_p11 = scmp.lt.u32.totalorder %s8780_s10, %s10707_s2 }
  0x3c   :  { %p8786_p12 = pnand %p8784_p11, %p8781_p10 }
  0x3e   :  { %8789 = shalt.err (!%p8786_p12)
}
  0x3f   :  { %s8790_s0 = scalar_lea.vmem %s50_s29, 128  ;;  %p8795_p0 = scmp.lt.s32.totalorder %s50_s29, %s50_s29 }
  0x40   :  { %p8791_p13 = scmp.ne.s32.totalorder %s50_s29, %s8790_s0  ;;  %p8796_p1 = scmp.lt.s32.totalorder %s8790_s0, %s8790_s0 }
  0x42   :  { %p8797_p2 = por %p8796_p1, %p8795_p0 }
  0x44   :  { %p8798_p3 = pnand %p8797_p2, %p8791_p13 }
  0x46   :  { %8801 = shalt.err (!%p8798_p3)
}
  0x47   :  { %52 = dma.hbm_to_vmem [thread:$0]  %s10707_s2, 128, %s50_s29, [#allocation6]  }
  0x48   :  { %s8802_s21 = scalar_lea.hbm %s10710_s5, 4096 }
  0x49   :  { %p8803_p4 = scmp.ne.s32.totalorder %s10710_s5, %s8802_s21  ;;  %p8806_p5 = scmp.lt.u32.totalorder %s8802_s21, %s10710_s5 }
  0x4b   :  { %p8808_p6 = pnand %p8806_p5, %p8803_p4 }
  0x4d   :  { %8811 = shalt.err (!%p8808_p6)
}
  0x4e   :  { %s8812_s27 = scalar_lea.vmem %s73_s11, 4096  ;;  %p8817_p8 = scmp.lt.s32.totalorder %s73_s11, %s73_s11 }
  0x4f   :  { %p8813_p7 = scmp.ne.s32.totalorder %s73_s11, %s8812_s27  ;;  %p8818_p9 = scmp.lt.s32.totalorder %s8812_s27, %s8812_s27 }
  0x51   :  { %p8819_p10 = por %p8818_p9, %p8817_p8 }
  0x53   :  { %p8820_p11 = pnand %p8819_p10, %p8813_p7 }
  0x55   :  { %8823 = shalt.err (!%p8820_p11)
}
  0x56   :  { %s8889_s2 = smov 64   ;;  %s8890_s28 = smov 4  }
  0x57   :  { %78 = dma.hbm_to_vmem [thread:$0]  %s10710_s5, 4096, %s73_s11, [#allocation9], %s8889_s2, %s8889_s2, %s8890_s28  }
  0x58   :  { %s8891_s12 = smov [#allocation11]   ;;  %s8824_s14 = scalar_lea.hbm %s10712_s7, 1024 }
  0x59   :  { %s86_s1 = sshll.u32 %s8891_s12, 4  ;;  %p8825_p12 = scmp.ne.s32.totalorder %s10712_s7, %s8824_s14  ;;  %s87_s1 = int_to_ptr.vmem [resolvable:$true] %s86_s1 }
  0x5a   :  { %p8828_p13 = scmp.lt.u32.totalorder %s8824_s14, %s10712_s7 }
  0x5c   :  { %p8830_p0 = pnand %p8828_p13, %p8825_p12 }
  0x5e   :  { %8833 = shalt.err (!%p8830_p0)
}
  0x5f   :  { %s8834_s18 = scalar_lea.vmem %s87_s1, 1024  ;;  %p8839_p2 = scmp.lt.s32.totalorder %s87_s1, %s87_s1 }
  0x60   :  { %p8835_p1 = scmp.ne.s32.totalorder %s87_s1, %s8834_s18  ;;  %p8840_p3 = scmp.lt.s32.totalorder %s8834_s18, %s8834_s18 }
  0x62   :  { %p8841_p4 = por %p8840_p3, %p8839_p2 }
  0x64   :  { %p8842_p5 = pnand %p8841_p4, %p8835_p1 }
  0x66   :  { %8845 = shalt.err (!%p8842_p5)
}
  0x67   :  { %92 = dma.hbm_to_vmem [thread:$0]  %s10712_s7, 1024, %s87_s1, [#allocation12], %s8889_s2, %s8889_s2, %s8890_s28  }
  0x68   :  { %8868 = dma.done.wait [#allocation3], 4096  }
  0x69   :  { %8869 = vsyncadd [#allocation3], 4294963200 }
  0x6a   :  { %8870 = dma.done.wait [#allocation6], 16512  }
  0x6b   :  { %8871 = vsyncadd [#allocation6], 4294950784 }
  0x6c   :  { %8872 = dma.done.wait [#allocation9], 36864  }
  0x6d   :  { %8873 = vsyncadd [#allocation9], 4294930432 }
  0x6e   :  { %8874 = dma.done.wait [#allocation12], 1024  }
  0x6f   :  { %8875 = vsyncadd [#allocation12], 4294966272  ;;  %v146_v0 = vld [vmem:[#allocation5] sm:$0xff]  ;;  %v147_v2 = vld [vmem:[#allocation5 + $0x8] sm:$0xff] }
  0x70   :  { %v150_v1 = vld [vmem:[#allocation5 + $0x20] sm:$0xff]  ;;  %v151_v4 = vld [vmem:[#allocation5 + $0x28] sm:$0xff] }
  0x71   :  { %v6839_v3 = vcombine.high %v146_v0, %v150_v1  ;;  %v6838_v5 = vcombine.low %v146_v0, %v150_v1  ;;  %v154_v6 = vld [vmem:[#allocation5 + $0x40] sm:$0xff]  ;;  %v6841_v8 = vcombine.high %v147_v2, %v151_v4  ;;  %v6840_v9 = vcombine.low %v147_v2, %v151_v4  ;;  %v155_v11 = vld [vmem:[#allocation5 + $0x48] sm:$0xff] }
  0x72   :  { %v158_v7 = vld [vmem:[#allocation5 + $0x60] sm:$0xff]  ;;  %v159_v12 = vld [vmem:[#allocation5 + $0x68] sm:$0xff] }
  0x73   :  { %v6847_v10 = vcombine.high %v154_v6, %v158_v7  ;;  %v162_v13 = vld [vmem:[#allocation5 + $0x80] sm:$0xff]  ;;  %1116 = vmatprep.subr.bf16.mxu0 %v6839_v3  ;;  %v6849_v14 = vcombine.high %v155_v11, %v159_v12  ;;  %v163_v16 = vld [vmem:[#allocation5 + $0x88] sm:$0xff]  ;;  %1309 = vmatprep.subr.bf16.mxu1 %v6841_v8  ;;  %v6846_v18 = vcombine.low %v154_v6, %v158_v7 }
  0x74   :  { %v166_v15 = vld [vmem:[#allocation5 + $0xa0] sm:$0xff]  ;;  %v167_v17 = vld [vmem:[#allocation5 + $0xa8] sm:$0xff]  ;;  %1117 = vmatpush1.bf16.msra.mxu0 %v6838_v5  ;;  %1310 = vmatpush1.bf16.msra.mxu1 %v6840_v9  ;;  %v6848_v19 = vcombine.low %v155_v11, %v159_v12 }
  0x75   :  { %1118 = vmatprep.subr.bf16.mxu0 %v6847_v10  ;;  %v6855_v20 = vcombine.high %v162_v13, %v166_v15  ;;  %1311 = vmatprep.subr.bf16.mxu1 %v6849_v14  ;;  %v6857_v21 = vcombine.high %v163_v16, %v167_v17  ;;  %v170_v22 = vld [vmem:[#allocation5 + $0xc0] sm:$0xff]  ;;  %v171_v24 = vld [vmem:[#allocation5 + $0xc8] sm:$0xff]  ;;  %v6854_v26 = vcombine.low %v162_v13, %v166_v15 }
  0x76   :  { %v174_v23 = vld [vmem:[#allocation5 + $0xe0] sm:$0xff]  ;;  %v175_v25 = vld [vmem:[#allocation5 + $0xe8] sm:$0xff]  ;;  %v6856_v27 = vcombine.low %v163_v16, %v167_v17 }
  0x77   :  { %v6863_v28 = vcombine.high %v170_v22, %v174_v23  ;;  %v6865_v29 = vcombine.high %v171_v24, %v175_v25  ;;  %v178_v30 = vld [vmem:[#allocation5 + $0x100] sm:$0xff]  ;;  %v179_v32 = vld [vmem:[#allocation5 + $0x108] sm:$0xff]  ;;  %v6862_v34 = vcombine.low %v170_v22, %v174_v23  ;;  %v6864_v35 = vcombine.low %v171_v24, %v175_v25 }
  0x78   :  { %1119 = vmatpush1.bf16.msra.mxu0 %v6846_v18  ;;  %1312 = vmatpush1.bf16.msra.mxu1 %v6848_v19  ;;  %v182_v31 = vld [vmem:[#allocation5 + $0x120] sm:$0xff]  ;;  %v183_v33 = vld [vmem:[#allocation5 + $0x128] sm:$0xff] }
  0x79   :  { %1120 = vmatprep.subr.bf16.mxu0 %v6855_v20  ;;  %1313 = vmatprep.subr.bf16.mxu1 %v6857_v21  ;;  %v6871_v36 = vcombine.high %v178_v30, %v182_v31  ;;  %v6873_v37 = vcombine.high %v179_v32, %v183_v33  ;;  %v186_v38 = vld [vmem:[#allocation5 + $0x140] sm:$0xff]  ;;  %v187_v40 = vld [vmem:[#allocation5 + $0x148] sm:$0xff]  ;;  %v6870_v42 = vcombine.low %v178_v30, %v182_v31 }
  0x7a   :  { %v190_v39 = vld [vmem:[#allocation5 + $0x160] sm:$0xff]  ;;  %v191_v41 = vld [vmem:[#allocation5 + $0x168] sm:$0xff]  ;;  %v6872_v43 = vcombine.low %v179_v32, %v183_v33 }
  0x7b   :  { %v6879_v44 = vcombine.high %v186_v38, %v190_v39  ;;  %v6881_v45 = vcombine.high %v187_v40, %v191_v41  ;;  %v194_v46 = vld [vmem:[#allocation5 + $0x180] sm:$0xff]  ;;  %v195_v48 = vld [vmem:[#allocation5 + $0x188] sm:$0xff]  ;;  %v6878_v50 = vcombine.low %v186_v38, %v190_v39  ;;  %v6880_v51 = vcombine.low %v187_v40, %v191_v41 }
  0x7c   :  { %1121 = vmatpush1.bf16.msra.mxu0 %v6854_v26  ;;  %1314 = vmatpush1.bf16.msra.mxu1 %v6856_v27  ;;  %v198_v47 = vld [vmem:[#allocation5 + $0x1a0] sm:$0xff]  ;;  %v199_v49 = vld [vmem:[#allocation5 + $0x1a8] sm:$0xff] }
  0x7d   :  { %1122 = vmatprep.subr.bf16.mxu0 %v6863_v28  ;;  %1315 = vmatprep.subr.bf16.mxu1 %v6865_v29  ;;  %v6887_v52 = vcombine.high %v194_v46, %v198_v47  ;;  %v202_v53 = vld [vmem:[#allocation5 + $0x1c0] sm:$0xff]  ;;  %v6889_v54 = vcombine.high %v195_v48, %v199_v49  ;;  %v203_v56 = vld [vmem:[#allocation5 + $0x1c8] sm:$0xff]  ;;  %v6886_v59 = vcombine.low %v194_v46, %v198_v47 }
  0x7e   :  { %v206_v55 = vld [vmem:[#allocation5 + $0x1e0] sm:$0xff]  ;;  %v207_v58 = vld [vmem:[#allocation5 + $0x1e8] sm:$0xff]  ;;  %v6888_v60 = vcombine.low %v195_v48, %v199_v49 }
  0x7f   :  { %v8103_v57 = vld [vmem:[#allocation2 + $0x4] ss:$8 sps:$4 sm:$0xff]   ;;  %v6895_v61 = vcombine.high %v202_v53, %v206_v55  ;;  %v6897_v62 = vcombine.high %v203_v56, %v207_v58  ;;  %v6894_v3 = vcombine.low %v202_v53, %v206_v55  ;;  %v6896_v4 = vcombine.low %v203_v56, %v207_v58 }
  0x80   :  { %1123 = vmatpush1.bf16.msra.mxu0 %v6862_v34  ;;  %1316 = vmatpush1.bf16.msra.mxu1 %v6864_v35  ;;  %v210_v63 = vld [vmem:[#allocation5 + $0x200] sm:$0xff]  ;;  %v211_v1 = vld [vmem:[#allocation5 + $0x208] sm:$0xff] }
  0x81   :  { %1124 = vmatprep.subr.bf16.mxu0 %v6871_v36  ;;  %1317 = vmatprep.subr.bf16.mxu1 %v6873_v37  ;;  %v214_v0 = vld [vmem:[#allocation5 + $0x220] sm:$0xff]  ;;  %v215_v2 = vld [vmem:[#allocation5 + $0x228] sm:$0xff] }
  0x82   :  { %1148 = vmatprep.mubr.bf16.mxu0 %v8103_v57  ;;  %1341 = vmatprep.mubr.bf16.mxu1 %v8103_v57  ;;  %v6903_v5 = vcombine.high %v210_v63, %v214_v0  ;;  %v6905_v6 = vcombine.high %v211_v1, %v215_v2  ;;  %v218_v7 = vld [vmem:[#allocation5 + $0x240] sm:$0xff]  ;;  %v219_v9 = vld [vmem:[#allocation5 + $0x248] sm:$0xff]  ;;  %v6902_v11 = vcombine.low %v210_v63, %v214_v0  ;;  %v148_v63 = vld [vmem:[#allocation5 + $0x10] sm:$0xff] }
  0x83   :  { %v222_v8 = vld [vmem:[#allocation5 + $0x260] sm:$0xff]  ;;  %v223_v10 = vld [vmem:[#allocation5 + $0x268] sm:$0xff]  ;;  %v6904_v12 = vcombine.low %v211_v1, %v215_v2  ;;  %v152_v0 = vld [vmem:[#allocation5 + $0x30] sm:$0xff] }
  0x84   :  { %1125 = vmatpush1.bf16.msra.mxu0 %v6870_v42  ;;  %1318 = vmatpush1.bf16.msra.mxu1 %v6872_v43  ;;  %v6911_v13 = vcombine.high %v218_v7, %v222_v8  ;;  %v6913_v14 = vcombine.high %v219_v9, %v223_v10  ;;  %v226_v15 = vld [vmem:[#allocation5 + $0x280] sm:$0xff]  ;;  %v227_v17 = vld [vmem:[#allocation5 + $0x288] sm:$0xff]  ;;  %v6910_v19 = vcombine.low %v218_v7, %v222_v8  ;;  %v149_v1 = vld [vmem:[#allocation5 + $0x18] sm:$0xff] }
  0x85   :  { %1126 = vmatprep.subr.bf16.mxu0 %v6879_v44  ;;  %1319 = vmatprep.subr.bf16.mxu1 %v6881_v45  ;;  %v230_v16 = vld [vmem:[#allocation5 + $0x2a0] sm:$0xff]  ;;  %v231_v18 = vld [vmem:[#allocation5 + $0x2a8] sm:$0xff]  ;;  %v6912_v20 = vcombine.low %v219_v9, %v223_v10  ;;  %v153_v2 = vld [vmem:[#allocation5 + $0x38] sm:$0xff] }
  0x86   :  { %v6919_v21 = vcombine.high %v226_v15, %v230_v16  ;;  %v6921_v22 = vcombine.high %v227_v17, %v231_v18  ;;  %v234_v23 = vld [vmem:[#allocation5 + $0x2c0] sm:$0xff]  ;;  %v235_v25 = vld [vmem:[#allocation5 + $0x2c8] sm:$0xff]  ;;  %v6918_v27 = vcombine.low %v226_v15, %v230_v16  ;;  %v6920_v28 = vcombine.low %v227_v17, %v231_v18  ;;  %v156_v7 = vld [vmem:[#allocation5 + $0x50] sm:$0xff] }
  0x87   :  { %v238_v24 = vld [vmem:[#allocation5 + $0x2e0] sm:$0xff]  ;;  %v239_v26 = vld [vmem:[#allocation5 + $0x2e8] sm:$0xff]  ;;  %v6845_v8 = vcombine.high %v149_v1, %v153_v2  ;;  %v8106_v9 = vld [vmem:[#allocation2 + $0x14] ss:$8 sps:$4 sm:$0xff]   ;;  %v6844_v17 = vcombine.low %v149_v1, %v153_v2 }
  0x88   :  { %1127 = vmatpush1.bf16.msra.mxu0 %v6878_v50  ;;  %1320 = vmatpush1.bf16.msra.mxu1 %v6880_v51  ;;  %v6927_v29 = vcombine.high %v234_v23, %v238_v24  ;;  %v6929_v30 = vcombine.high %v235_v25, %v239_v26  ;;  %v242_v31 = vld [vmem:[#allocation5 + $0x300] sm:$0xff]  ;;  %v243_v33 = vld [vmem:[#allocation5 + $0x308] sm:$0xff]  ;;  %v6926_v35 = vcombine.low %v234_v23, %v238_v24  ;;  %v160_v10 = vld [vmem:[#allocation5 + $0x70] sm:$0xff] }
  0x89   :  { %1128 = vmatprep.subr.bf16.mxu0 %v6887_v52  ;;  %1321 = vmatprep.subr.bf16.mxu1 %v6889_v54  ;;  %v246_v32 = vld [vmem:[#allocation5 + $0x320] sm:$0xff]  ;;  %v247_v34 = vld [vmem:[#allocation5 + $0x328] sm:$0xff]  ;;  %v6928_v36 = vcombine.low %v235_v25, %v239_v26  ;;  %v168_v15 = vld [vmem:[#allocation5 + $0xb0] sm:$0xff]  ;;  %v6851_v16 = vcombine.high %v156_v7, %v160_v10 }
  0x8a   :  { %v6935_v37 = vcombine.high %v242_v31, %v246_v32  ;;  %v6937_v38 = vcombine.high %v243_v33, %v247_v34  ;;  %v250_v39 = vld [vmem:[#allocation5 + $0x340] sm:$0xff]  ;;  %v251_v41 = vld [vmem:[#allocation5 + $0x348] sm:$0xff]  ;;  %v6934_v43 = vcombine.low %v242_v31, %v246_v32  ;;  %v6936_v44 = vcombine.low %v243_v33, %v247_v34  ;;  %v172_v24 = vld [vmem:[#allocation5 + $0xd0] sm:$0xff] }
  0x8b   :  { %v254_v40 = vld [vmem:[#allocation5 + $0x360] sm:$0xff]  ;;  %v255_v42 = vld [vmem:[#allocation5 + $0x368] sm:$0xff]  ;;  %v176_v25 = vld [vmem:[#allocation5 + $0xf0] sm:$0xff] }
  0x8c   :  { %1129 = vmatpush1.bf16.msra.mxu0 %v6886_v59  ;;  %1322 = vmatpush1.bf16.msra.mxu1 %v6888_v60  ;;  %v6943_v45 = vcombine.high %v250_v39, %v254_v40  ;;  %v6945_v46 = vcombine.high %v251_v41, %v255_v42  ;;  %v258_v47 = vld [vmem:[#allocation5 + $0x380] sm:$0xff]  ;;  %v259_v49 = vld [vmem:[#allocation5 + $0x388] sm:$0xff]  ;;  %v6942_v51 = vcombine.low %v250_v39, %v254_v40  ;;  %v180_v32 = vld [vmem:[#allocation5 + $0x110] sm:$0xff] }
  0x8d   :  { %1130 = vmatprep.subr.bf16.mxu0 %v6895_v61  ;;  %1323 = vmatprep.subr.bf16.mxu1 %v6897_v62  ;;  %v262_v48 = vld [vmem:[#allocation5 + $0x3a0] sm:$0xff]  ;;  %v263_v50 = vld [vmem:[#allocation5 + $0x3a8] sm:$0xff]  ;;  %v6944_v52 = vcombine.low %v251_v41, %v255_v42  ;;  %v184_v33 = vld [vmem:[#allocation5 + $0x130] sm:$0xff]  ;;  %v6867_v34 = vcombine.high %v172_v24, %v176_v25  ;;  %v6866_v40 = vcombine.low %v172_v24, %v176_v25 }
  0x8e   :  { %v6951_v53 = vcombine.high %v258_v47, %v262_v48  ;;  %v266_v54 = vld [vmem:[#allocation5 + $0x3c0] sm:$0xff]  ;;  %v6953_v55 = vcombine.high %v259_v49, %v263_v50  ;;  %v267_v57 = vld [vmem:[#allocation5 + $0x3c8] sm:$0xff]  ;;  %v6950_v59 = vcombine.low %v258_v47, %v262_v48  ;;  %v6952_v60 = vcombine.low %v259_v49, %v263_v50  ;;  %v188_v41 = vld [vmem:[#allocation5 + $0x150] sm:$0xff] }
  0x8f   :  { %v270_v56 = vld [vmem:[#allocation5 + $0x3e0] sm:$0xff]  ;;  %v271_v58 = vld [vmem:[#allocation5 + $0x3e8] sm:$0xff]  ;;  %v192_v42 = vld [vmem:[#allocation5 + $0x170] sm:$0xff]  ;;  %v6874_v49 = vcombine.low %v180_v32, %v184_v33 }
  0x90   :  { %1131 = vmatpush1.bf16.msra.mxu0 %v6894_v3  ;;  %1324 = vmatpush1.bf16.msra.mxu1 %v6896_v4  ;;  %v6959_v61 = vcombine.high %v266_v54, %v270_v56  ;;  %v6961_v62 = vcombine.high %v267_v57, %v271_v58  ;;  %v6958_v3 = vcombine.low %v266_v54, %v270_v56  ;;  %v8109_v26 = vld [vmem:[#allocation2 + $0x24] ss:$8 sps:$4 sm:$0xff]   ;;  %v8111_v39 = vld [vmem:[#allocation2 + $0x20] ss:$8 sps:$4 sm:$0xff]   ;;  %v193_v47 = vld [vmem:[#allocation5 + $0x178] sm:$0xff] }
  0x91   :  { %1132 = vmatprep.subr.bf16.mxu0 %v6903_v5  ;;  %1325 = vmatprep.subr.bf16.mxu1 %v6905_v6  ;;  %v6960_v4 = vcombine.low %v267_v57, %v271_v58  ;;  %v6843_v5 = vcombine.high %v148_v63, %v152_v0  ;;  %v8105_v6 = vld [vmem:[#allocation2] ss:$8 sps:$4 sm:$0xff]   ;;  %v196_v50 = vld [vmem:[#allocation5 + $0x190] sm:$0xff]  ;;  %v201_v56 = vld [vmem:[#allocation5 + $0x1b8] sm:$0xff]  ;;  %v6882_v58 = vcombine.low %v188_v41, %v192_v42 }
  0x92   :  { %v8114_v57 = vld [vmem:[#allocation2 + $0x30] ss:$8 sps:$4 sm:$0xff]  }
  0x93   :  { %v209_v1 = vld [vmem:[#allocation5 + $0x1f8] sm:$0xff] }
  0x94   :  { %1133 = vmatpush1.bf16.msra.mxu0 %v6902_v11  ;;  %1326 = vmatpush1.bf16.msra.mxu1 %v6904_v12  ;;  %v157_v11 = vld [vmem:[#allocation5 + $0x58] sm:$0xff] }
  0x95   :  { %1134 = vmatprep.subr.bf16.mxu0 %v6911_v13  ;;  %1327 = vmatprep.subr.bf16.mxu1 %v6913_v14  ;;  %v161_v12 = vld [vmem:[#allocation5 + $0x78] sm:$0xff]  ;;  %v6842_v13 = vcombine.low %v148_v63, %v152_v0  ;;  %v164_v14 = vld [vmem:[#allocation5 + $0x90] sm:$0xff] }
  0x96   :  { %v6853_v18 = vcombine.high %v157_v11, %v161_v12  ;;  %v6859_v23 = vcombine.high %v164_v14, %v168_v15  ;;  %v6858_v31 = vcombine.low %v164_v14, %v168_v15  ;;  %v205_v0 = vld [vmem:[#allocation5 + $0x1d8] sm:$0xff]  ;;  %v224_v14 = vld [vmem:[#allocation5 + $0x270] sm:$0xff] }
  0x97   :  { %v9018_v15 = vld [vmem:[#allocation2 + $0x54] ss:$8 sps:$4 sm:$0xff]  }
  0x98   :  { %1135 = vmatpush1.bf16.msra.mxu0 %v6910_v19  ;;  %1328 = vmatpush1.bf16.msra.mxu1 %v6912_v20  ;;  %v6850_v19 = vcombine.low %v156_v7, %v160_v10  ;;  %v165_v20 = vld [vmem:[#allocation5 + $0x98] sm:$0xff] }
  0x99   :  { %1136 = vmatprep.subr.bf16.mxu0 %v6919_v21  ;;  %1329 = vmatprep.subr.bf16.mxu1 %v6921_v22  ;;  %v169_v21 = vld [vmem:[#allocation5 + $0xb8] sm:$0xff] }
  0x9a   :  { %v8108_v22 = vld [vmem:[#allocation2 + $0x10] ss:$8 sps:$4 sm:$0xff]  }
  0x9b   :  { %v217_v10 = vld [vmem:[#allocation5 + $0x238] sm:$0xff] }
  0x9c   :  { %1137 = vmatpush1.bf16.msra.mxu0 %v6918_v27  ;;  %1330 = vmatpush1.bf16.msra.mxu1 %v6920_v28  ;;  %v6852_v27 = vcombine.low %v157_v11, %v161_v12  ;;  %v173_v28 = vld [vmem:[#allocation5 + $0xd8] sm:$0xff]  ;;  %v8117_v11 = vld [vmem:[#allocation2 + $0x40] ss:$8 sps:$4 sm:$0xff]  }
  0x9d   :  { %1138 = vmatprep.subr.bf16.mxu0 %v6927_v29  ;;  %1331 = vmatprep.subr.bf16.mxu1 %v6929_v30  ;;  %v177_v29 = vld [vmem:[#allocation5 + $0xf8] sm:$0xff]  ;;  %v6861_v30 = vcombine.high %v165_v20, %v169_v21 }
  0xa0   :  { %1139 = vmatpush1.bf16.msra.mxu0 %v6926_v35  ;;  %1332 = vmatpush1.bf16.msra.mxu1 %v6928_v36  ;;  %v6860_v35 = vcombine.low %v165_v20, %v169_v21  ;;  %v6869_v36 = vcombine.high %v173_v28, %v177_v29 }
  0xa1   :  { %1140 = vmatprep.subr.bf16.mxu0 %v6935_v37  ;;  %1333 = vmatprep.subr.bf16.mxu1 %v6937_v38  ;;  %v181_v37 = vld [vmem:[#allocation5 + $0x118] sm:$0xff] }
  0xa2   :  { %v185_v38 = vld [vmem:[#allocation5 + $0x138] sm:$0xff] }
  0xa3   :  { %v6877_v48 = vcombine.high %v181_v37, %v185_v38 }
  0xa4   :  { %1141 = vmatpush1.bf16.msra.mxu0 %v6934_v43  ;;  %1334 = vmatpush1.bf16.msra.mxu1 %v6936_v44  ;;  %v8112_v43 = vld [vmem:[#allocation2 + $0x34] ss:$8 sps:$4 sm:$0xff]   ;;  %v6875_v44 = vcombine.high %v180_v32, %v184_v33  ;;  %v9024_v33 = vld [vmem:[#allocation2 + $0x64] ss:$8 sps:$4 sm:$0xff]  }
  0xa5   :  { %1142 = vmatprep.subr.bf16.mxu0 %v6943_v45  ;;  %1335 = vmatprep.subr.bf16.mxu1 %v6945_v46  ;;  %v6868_v45 = vcombine.low %v173_v28, %v177_v29  ;;  %v189_v46 = vld [vmem:[#allocation5 + $0x158] sm:$0xff]  ;;  %v240_v32 = vld [vmem:[#allocation5 + $0x2f0] sm:$0xff] }
  0xa6   :  { %v6885_v54 = vcombine.high %v189_v46, %v193_v47  ;;  %v6884_v63 = vcombine.low %v189_v46, %v193_v47  ;;  %v233_v28 = vld [vmem:[#allocation5 + $0x2b8] sm:$0xff]  ;;  %v9030_v47 = vld [vmem:[#allocation2 + $0x60] ss:$8 sps:$4 sm:$0xff]  }
  0xa7   :  { %v9022_v29 = vld [vmem:[#allocation2 + $0x50] ss:$8 sps:$4 sm:$0xff]  }
  0xa8   :  { %1143 = vmatpush1.bf16.msra.mxu0 %v6942_v51  ;;  %1336 = vmatpush1.bf16.msra.mxu1 %v6944_v52  ;;  %v200_v51 = vld [vmem:[#allocation5 + $0x1b0] sm:$0xff]  ;;  %v6883_v52 = vcombine.high %v188_v41, %v192_v42  ;;  %v249_v46 = vld [vmem:[#allocation5 + $0x338] sm:$0xff] }
  0xa9   :  { %1144 = vmatprep.subr.bf16.mxu0 %v6951_v53  ;;  %1337 = vmatprep.subr.bf16.mxu1 %v6953_v55  ;;  %v6876_v53 = vcombine.low %v181_v37, %v185_v38  ;;  %v197_v55 = vld [vmem:[#allocation5 + $0x198] sm:$0xff]  ;;  %v248_v41 = vld [vmem:[#allocation5 + $0x330] sm:$0xff] }
  0xaa   :  { %v6893_v2 = vcombine.high %v197_v55, %v201_v56  ;;  %v6892_v7 = vcombine.low %v197_v55, %v201_v56  ;;  %v241_v37 = vld [vmem:[#allocation5 + $0x2f8] sm:$0xff] }
  0xab   :  { %v257_v55 = vld [vmem:[#allocation5 + $0x378] sm:$0xff] }
  0xac   :  { %1145 = vmatpush1.bf16.msra.mxu0 %v6950_v59  ;;  %1338 = vmatpush1.bf16.msra.mxu1 %v6952_v60  ;;  %v204_v59 = vld [vmem:[#allocation5 + $0x1d0] sm:$0xff] }
  0xad   :  { %1146 = vmatprep.subr.bf16.mxu0 %v6959_v61  ;;  %1339 = vmatprep.subr.bf16.mxu1 %v6961_v62  ;;  %v208_v60 = vld [vmem:[#allocation5 + $0x1f0] sm:$0xff]  ;;  %v8115_v61 = vld [vmem:[#allocation2 + $0x44] ss:$8 sps:$4 sm:$0xff]   ;;  %v6891_v62 = vcombine.high %v196_v50, %v200_v51 }
  0xae   :  { %v6898_v12 = vcombine.low %v204_v59, %v208_v60 }
  0xb0   :  { %1147 = vmatpush1.bf16.msra.mxu0 %v6958_v3  ;;  %1340 = vmatpush1.bf16.msra.mxu1 %v6960_v4  ;;  %v6890_v3 = vcombine.low %v196_v50, %v200_v51  ;;  %v212_v4 = vld [vmem:[#allocation5 + $0x210] sm:$0xff] }
  0xb1   :  { %1502 = vmatprep.subr.bf16.mxu0 %v6843_v5  ;;  %1695 = vmatprep.subr.bf16.mxu1 %v6845_v8  ;;  %v216_v5 = vld [vmem:[#allocation5 + $0x230] sm:$0xff]  ;;  %v6901_v8 = vcombine.high %v205_v0, %v209_v1 }
  0xb2   :  { %v6906_v21 = vcombine.low %v212_v4, %v216_v5  ;;  %v256_v50 = vld [vmem:[#allocation5 + $0x370] sm:$0xff] }
  0xb3   :  { %1149 = vmatmul.mubr.bf16.vlgmr.msra.gmra.mrb[0].mxu0 %v8105_v6  ;;  %1342 = vmatmul.mubr.bf16.vlgmr.msra.gmra.mrb[0].mxu1 %v8105_v6  ;;  %v6899_v6 = vcombine.high %v204_v59, %v208_v60  ;;  %v9032_v51 = vld [vmem:[#allocation2 + $0x74] ss:$8 sps:$4 sm:$0xff]  }
  0xb4   :  { %1503 = vmatpush1.bf16.msra.mxu0 %v6842_v13  ;;  %1158 = vmatprep.mubr.bf16.mxu0 %v8106_v9  ;;  %v220_v13 = vld [vmem:[#allocation5 + $0x250] sm:$0xff] }
  0xb5   :  { %1351 = vmatprep.mubr.bf16.mxu1 %v8106_v9  ;;  %1504 = vmatprep.subr.bf16.mxu0 %v6851_v16  ;;  %v213_v9 = vld [vmem:[#allocation5 + $0x218] sm:$0xff]  ;;  %v6907_v16 = vcombine.high %v212_v4, %v216_v5  ;;  %v6915_v24 = vcombine.high %v220_v13, %v224_v14  ;;  %v264_v59 = vld [vmem:[#allocation5 + $0x3b0] sm:$0xff]  ;;  %v9040_v5 = vld [vmem:[#allocation2 + $0x84] ss:$8 sps:$4 sm:$0xff]  }
  0xb6   :  { %1696 = vmatpush1.bf16.msra.mxu1 %v6844_v17  ;;  %v6900_v17 = vcombine.low %v205_v0, %v209_v1  ;;  %v6909_v20 = vcombine.high %v213_v9, %v217_v10  ;;  %v6908_v25 = vcombine.low %v213_v9, %v217_v10  ;;  %v265_v0 = vld [vmem:[#allocation5 + $0x3b8] sm:$0xff]  ;;  %v272_v4 = vld [vmem:[#allocation5 + $0x3f0] sm:$0xff] }
  0xb7   :  { %1697 = vmatprep.subr.bf16.mxu1 %v6853_v18  ;;  %v221_v18 = vld [vmem:[#allocation5 + $0x258] sm:$0xff] }
  0xb8   :  { %1505 = vmatpush1.bf16.msra.mxu0 %v6850_v19  ;;  %v225_v19 = vld [vmem:[#allocation5 + $0x278] sm:$0xff] }
  0xb9   :  { %1506 = vmatprep.subr.bf16.mxu0 %v6859_v23  ;;  %v232_v23 = vld [vmem:[#allocation5 + $0x2b0] sm:$0xff]  ;;  %v273_v9 = vld [vmem:[#allocation5 + $0x3f8] sm:$0xff] }
  0xba   :  { %1698 = vmatpush1.bf16.msra.mxu1 %v6852_v27  ;;  %v229_v27 = vld [vmem:[#allocation5 + $0x298] sm:$0xff] }
  0xbb   :  { %1159 = vmatmul.mubr.bf16.gmra.mrb[4].mxu0 %v8108_v22  ;;  %1699 = vmatprep.subr.bf16.mxu1 %v6861_v30  ;;  %v6914_v30 = vcombine.low %v220_v13, %v224_v14  ;;  %v6925_v38 = vcombine.high %v229_v27, %v233_v28  ;;  %v9038_v1 = vld [vmem:[#allocation2 + $0x70] ss:$8 sps:$4 sm:$0xff]  }
  0xbc   :  { %1352 = vmatmul.mubr.bf16.gmra.mrb[4].mxu1 %v8108_v22  ;;  %1168 = vmatprep.mubr.bf16.mxu0 %v8109_v26  ;;  %v228_v22 = vld [vmem:[#allocation5 + $0x290] sm:$0xff] }
  0xbd   :  { %1361 = vmatprep.mubr.bf16.mxu1 %v8109_v26  ;;  %1507 = vmatpush1.bf16.msra.mxu0 %v6858_v31  ;;  %v6917_v26 = vcombine.high %v221_v18, %v225_v19  ;;  %v236_v31 = vld [vmem:[#allocation5 + $0x2d0] sm:$0xff] }
  0xbe   :  { %1508 = vmatprep.subr.bf16.mxu0 %v6867_v34  ;;  %1700 = vmatpush1.bf16.msra.mxu1 %v6860_v35  ;;  %v6923_v34 = vcombine.high %v228_v22, %v232_v23  ;;  %v6916_v35 = vcombine.low %v221_v18, %v225_v19  ;;  %v6931_v42 = vcombine.high %v236_v31, %v240_v32  ;;  %v9048_v19 = vld [vmem:[#allocation2 + $0x94] ss:$8 sps:$4 sm:$0xff]  }
  0xbf   :  { %1701 = vmatprep.subr.bf16.mxu1 %v6869_v36  ;;  %v237_v36 = vld [vmem:[#allocation5 + $0x2d8] sm:$0xff] }
  0xc1   :  { %1509 = vmatpush1.bf16.msra.mxu0 %v6866_v40  ;;  %v244_v40 = vld [vmem:[#allocation5 + $0x310] sm:$0xff] }
  0xc2   :  { %1510 = vmatprep.subr.bf16.mxu0 %v6875_v44  ;;  %1702 = vmatpush1.bf16.msra.mxu1 %v6868_v45  ;;  %v6933_v44 = vcombine.high %v237_v36, %v241_v37  ;;  %v245_v45 = vld [vmem:[#allocation5 + $0x318] sm:$0xff] }
  0xc3   :  { %1169 = vmatmul.mubr.bf16.gmra.mrb[8].mxu0 %v8111_v39  ;;  %1703 = vmatprep.subr.bf16.mxu1 %v6877_v48  ;;  %v6930_v48 = vcombine.low %v236_v31, %v240_v32  ;;  %v6941_v56 = vcombine.high %v245_v45, %v249_v46  ;;  %v9086_v31 = vld [vmem:[#allocation2 + $0xd0] ss:$8 sps:$4 sm:$0xff]   ;;  %v9088_v32 = vld [vmem:[#allocation2 + $0xe4] ss:$8 sps:$4 sm:$0xff]  }
  0xc4   :  { %1362 = vmatmul.mubr.bf16.gmra.mrb[8].mxu1 %v8111_v39  ;;  %1178 = vmatprep.mubr.bf16.mxu0 %v8112_v43  ;;  %v6922_v39 = vcombine.low %v228_v22, %v232_v23  ;;  %v9054_v22 = vld [vmem:[#allocation2 + $0x90] ss:$8 sps:$4 sm:$0xff]   ;;  %v9056_v23 = vld [vmem:[#allocation2 + $0xa4] ss:$8 sps:$4 sm:$0xff]  }
  0xc5   :  { %1371 = vmatprep.mubr.bf16.mxu1 %v8112_v43  ;;  %1511 = vmatpush1.bf16.msra.mxu0 %v6874_v49  ;;  %v6924_v43 = vcombine.low %v229_v27, %v233_v28  ;;  %v252_v49 = vld [vmem:[#allocation5 + $0x350] sm:$0xff]  ;;  %v9072_v27 = vld [vmem:[#allocation2 + $0xc4] ss:$8 sps:$4 sm:$0xff]   ;;  %v9078_v28 = vld [vmem:[#allocation2 + $0xc0] ss:$8 sps:$4 sm:$0xff]  }
  0xc6   :  { %1512 = vmatprep.subr.bf16.mxu0 %v6883_v52  ;;  %1704 = vmatpush1.bf16.msra.mxu1 %v6876_v53  ;;  %v6939_v52 = vcombine.high %v244_v40, %v248_v41  ;;  %v6932_v53 = vcombine.low %v237_v36, %v241_v37  ;;  %v6947_v60 = vcombine.high %v252_v49, %v256_v50  ;;  %v9102_v36 = vld [vmem:[#allocation2 + $0xf0] ss:$8 sps:$4 sm:$0xff]   ;;  %v8703_v37 = vld [vmem:[#allocation2 + $0x4] ss:$8 sps:$4 sm:$0xff]  }
  0xc7   :  { %1705 = vmatprep.subr.bf16.mxu1 %v6885_v54  ;;  %v253_v54 = vld [vmem:[#allocation5 + $0x358] sm:$0xff] }
  0xc9   :  { %1513 = vmatpush1.bf16.msra.mxu0 %v6882_v58  ;;  %v260_v58 = vld [vmem:[#allocation5 + $0x390] sm:$0xff] }
  0xca   :  { %1514 = vmatprep.subr.bf16.mxu0 %v6891_v62  ;;  %1706 = vmatpush1.bf16.msra.mxu1 %v6884_v63  ;;  %v6949_v62 = vcombine.high %v253_v54, %v257_v55  ;;  %v261_v63 = vld [vmem:[#allocation5 + $0x398] sm:$0xff] }
  0xcb   :  { %1179 = vmatmul.mubr.bf16.gmra.mrb[12].mxu0 %v8114_v57  ;;  %1707 = vmatprep.subr.bf16.mxu1 %v6893_v2  ;;  %v6946_v2 = vcombine.low %v252_v49, %v256_v50  ;;  %v6957_v10 = vcombine.high %v261_v63, %v265_v0  ;;  %v6956_v13 = vcombine.low %v261_v63, %v265_v0  ;;  %v8157_v49 = vld [vmem:[#allocation8 + $0x40] ss:$16 sps:$4 sm:$0xff]   ;;  %v8162_v50 = vld [vmem:[#allocation8 + $0x64] ss:$16 sps:$4 sm:$0xff]   ;;  %v8201_v0 = vld [vmem:[#allocation8 + $0xac] ss:$16 sps:$4 sm:$0xff]  }
  0xcc   :  { %1372 = vmatmul.mubr.bf16.gmra.mrb[12].mxu1 %v8114_v57  ;;  %1188 = vmatprep.mubr.bf16.mxu0 %v8115_v61  ;;  %v6938_v57 = vcombine.low %v244_v40, %v248_v41  ;;  %v8178_v40 = vld [vmem:[#allocation8 + $0x8] ss:$16 sps:$4 sm:$0xff]   ;;  %v8183_v41 = vld [vmem:[#allocation8 + $0x2c] ss:$16 sps:$4 sm:$0xff]  }
  0xcd   :  { %1381 = vmatprep.mubr.bf16.mxu1 %v8115_v61  ;;  %1515 = vmatpush1.bf16.msra.mxu0 %v6890_v3  ;;  %v6940_v61 = vcombine.low %v245_v45, %v249_v46  ;;  %v268_v3 = vld [vmem:[#allocation5 + $0x3d0] sm:$0xff]  ;;  %v8159_v45 = vld [vmem:[#allocation8 + $0x44] ss:$16 sps:$4 sm:$0xff]   ;;  %v8708_v63 = vld [vmem:[#allocation2 + $0x20] ss:$8 sps:$4 sm:$0xff]  }
  0xce   :  { %1516 = vmatprep.subr.bf16.mxu0 %v6899_v6  ;;  %1708 = vmatpush1.bf16.msra.mxu1 %v6892_v7  ;;  %v6955_v6 = vcombine.high %v260_v58, %v264_v59  ;;  %v6948_v7 = vcombine.low %v253_v54, %v257_v55  ;;  %v6962_v18 = vcombine.low %v268_v3, %v272_v4  ;;  %v8181_v46 = vld [vmem:[#allocation8 + $0x28] ss:$16 sps:$4 sm:$0xff]   ;;  %v8192_v54 = vld [vmem:[#allocation8 + $0x6c] ss:$16 sps:$4 sm:$0xff]  }
  0xcf   :  { %1709 = vmatprep.subr.bf16.mxu1 %v6901_v8  ;;  %v269_v8 = vld [vmem:[#allocation5 + $0x3d8] sm:$0xff]  ;;  %v8707_v55 = vld [vmem:[#allocation2 + $0x24] ss:$8 sps:$4 sm:$0xff]  }
  0xd0   :  { %v6965_v14 = vcombine.high %v269_v8, %v273_v9 }
  0xd1   :  { %1517 = vmatpush1.bf16.msra.mxu0 %v6898_v12  ;;  %v6963_v12 = vcombine.high %v268_v3, %v272_v4  ;;  %v8166_v3 = vld [vmem:[#allocation8 + $0xa0] ss:$16 sps:$4 sm:$0xff]   ;;  %v8171_v4 = vld [vmem:[#allocation8 + $0xc4] ss:$16 sps:$4 sm:$0xff]  }
  0xd2   :  { %1518 = vmatprep.subr.bf16.mxu0 %v6907_v16  ;;  %1710 = vmatpush1.bf16.msra.mxu1 %v6900_v17  ;;  %v8153_v16 = vld [vmem:[#allocation8 + $0x4] ss:$16 sps:$4 sm:$0xff]   ;;  %v9046_v17 = vld [vmem:[#allocation2 + $0x80] ss:$8 sps:$4 sm:$0xff]  }
  0xd3   :  { %1189 = vmatmul.mubr.bf16.gmra.mrb[16].mxu0 %v8117_v11  ;;  %1711 = vmatprep.subr.bf16.mxu1 %v6909_v20  ;;  %v6964_v20 = vcombine.low %v269_v8, %v273_v9  ;;  %v8169_v8 = vld [vmem:[#allocation8 + $0xc0] ss:$16 sps:$4 sm:$0xff]   ;;  %v8174_v9 = vld [vmem:[#allocation8 + $0xe4] ss:$16 sps:$4 sm:$0xff]  }
  0xd4   :  { %1382 = vmatmul.mubr.bf16.gmra.mrb[16].mxu1 %v8117_v11  ;;  %1198 = vmatprep.mubr.bf16.mxu0 %v9018_v15  ;;  %v6954_v11 = vcombine.low %v260_v58, %v264_v59  ;;  %v8190_v58 = vld [vmem:[#allocation8 + $0x68] ss:$16 sps:$4 sm:$0xff]   ;;  %v8198_v59 = vld [vmem:[#allocation8 + $0x8c] ss:$16 sps:$4 sm:$0xff]  }
  0xd5   :  { %1391 = vmatprep.mubr.bf16.mxu1 %v9018_v15  ;;  %1519 = vmatpush1.bf16.msra.mxu0 %v6906_v21  ;;  %v8180_v21 = vld [vmem:[#allocation8 + $0xc] ss:$16 sps:$4 sm:$0xff]  }
  0xd6   :  { %1520 = vmatprep.subr.bf16.mxu0 %v6915_v24  ;;  %1712 = vmatpush1.bf16.msra.mxu1 %v6908_v25  ;;  %v9062_v24 = vld [vmem:[#allocation2 + $0xa0] ss:$8 sps:$4 sm:$0xff]   ;;  %v9064_v25 = vld [vmem:[#allocation2 + $0xb4] ss:$8 sps:$4 sm:$0xff]  }
  0xd7   :  { %1713 = vmatprep.subr.bf16.mxu1 %v6917_v26  ;;  %v9070_v26 = vld [vmem:[#allocation2 + $0xb0] ss:$8 sps:$4 sm:$0xff]  }
  0xd9   :  { %1521 = vmatpush1.bf16.msra.mxu0 %v6914_v30  ;;  %v9080_v30 = vld [vmem:[#allocation2 + $0xd4] ss:$8 sps:$4 sm:$0xff]  }
  0xda   :  { %1522 = vmatprep.subr.bf16.mxu0 %v6923_v34  ;;  %1714 = vmatpush1.bf16.msra.mxu1 %v6916_v35  ;;  %v9094_v34 = vld [vmem:[#allocation2 + $0xe0] ss:$8 sps:$4 sm:$0xff]   ;;  %v9096_v35 = vld [vmem:[#allocation2 + $0xf4] ss:$8 sps:$4 sm:$0xff]  }
  0xdb   :  { %1199 = vmatmul.mubr.bf16.gmra.mrb[20].mxu0 %v9022_v29  ;;  %1715 = vmatprep.subr.bf16.mxu1 %v6925_v38  ;;  %v8151_v38 = vld [vmem:[#allocation8] ss:$16 sps:$4 sm:$0xff]  }
  0xdc   :  { %1392 = vmatmul.mubr.bf16.gmra.mrb[20].mxu1 %v9022_v29  ;;  %1208 = vmatprep.mubr.bf16.mxu0 %v9024_v33 }
  0xdd   :  { %1401 = vmatprep.mubr.bf16.mxu1 %v9024_v33  ;;  %1523 = vmatpush1.bf16.msra.mxu0 %v6922_v39  ;;  %v8156_v39 = vld [vmem:[#allocation8 + $0x24] ss:$16 sps:$4 sm:$0xff]  }
  0xde   :  { %1524 = vmatprep.subr.bf16.mxu0 %v6931_v42  ;;  %1716 = vmatpush1.bf16.msra.mxu1 %v6924_v43  ;;  %v8154_v42 = vld [vmem:[#allocation8 + $0x20] ss:$16 sps:$4 sm:$0xff]  }
  0xdf   :  { %1717 = vmatprep.subr.bf16.mxu1 %v6933_v44  ;;  %v8704_v43 = vld [vmem:[#allocation2] ss:$8 sps:$4 sm:$0xff]   ;;  %v8705_v44 = vld [vmem:[#allocation2 + $0x14] ss:$8 sps:$4 sm:$0xff]  }
  0xe1   :  { %1525 = vmatpush1.bf16.msra.mxu0 %v6930_v48  ;;  %v8189_v48 = vld [vmem:[#allocation8 + $0x4c] ss:$16 sps:$4 sm:$0xff]  }
  0xe2   :  { %1526 = vmatprep.subr.bf16.mxu0 %v6939_v52  ;;  %1718 = vmatpush1.bf16.msra.mxu1 %v6932_v53  ;;  %v8187_v52 = vld [vmem:[#allocation8 + $0x48] ss:$16 sps:$4 sm:$0xff]  }
  0xe3   :  { %1209 = vmatmul.mubr.bf16.gmra.mrb[24].mxu0 %v9030_v47  ;;  %1719 = vmatprep.subr.bf16.mxu1 %v6941_v56  ;;  %v8706_v53 = vld [vmem:[#allocation2 + $0x10] ss:$8 sps:$4 sm:$0xff]  }
  0xe4   :  { %1402 = vmatmul.mubr.bf16.gmra.mrb[24].mxu1 %v9030_v47  ;;  %1218 = vmatprep.mubr.bf16.mxu0 %v9032_v51  ;;  %v8160_v56 = vld [vmem:[#allocation8 + $0x60] ss:$16 sps:$4 sm:$0xff]  }
  0xe5   :  { %1411 = vmatprep.mubr.bf16.mxu1 %v9032_v51  ;;  %1527 = vmatpush1.bf16.msra.mxu0 %v6938_v57  ;;  %v8165_v57 = vld [vmem:[#allocation8 + $0x84] ss:$16 sps:$4 sm:$0xff]  }
  0xe6   :  { %1528 = vmatprep.subr.bf16.mxu0 %v6947_v60  ;;  %1720 = vmatpush1.bf16.msra.mxu1 %v6940_v61  ;;  %v8163_v60 = vld [vmem:[#allocation8 + $0x80] ss:$16 sps:$4 sm:$0xff]   ;;  %v8168_v61 = vld [vmem:[#allocation8 + $0xa4] ss:$16 sps:$4 sm:$0xff]  }
  0xe7   :  { %1721 = vmatprep.subr.bf16.mxu1 %v6949_v62  ;;  %v8196_v62 = vld [vmem:[#allocation8 + $0x88] ss:$16 sps:$4 sm:$0xff]  }
  0xe9   :  { %1529 = vmatpush1.bf16.msra.mxu0 %v6946_v2  ;;  %v8709_v2 = vld [vmem:[#allocation2 + $0x34] ss:$8 sps:$4 sm:$0xff]  }
  0xea   :  { %1530 = vmatprep.subr.bf16.mxu0 %v6955_v6  ;;  %1722 = vmatpush1.bf16.msra.mxu1 %v6948_v7  ;;  %v8199_v6 = vld [vmem:[#allocation8 + $0xa8] ss:$16 sps:$4 sm:$0xff]   ;;  %v8207_v7 = vld [vmem:[#allocation8 + $0xcc] ss:$16 sps:$4 sm:$0xff]  }
  0xeb   :  { %1219 = vmatmul.mubr.bf16.gmra.mrb[28].mxu0 %v9038_v1  ;;  %1723 = vmatprep.subr.bf16.mxu1 %v6957_v10  ;;  %v8205_v10 = vld [vmem:[#allocation8 + $0xc8] ss:$16 sps:$4 sm:$0xff]  }
  0xec   :  { %1412 = vmatmul.mubr.bf16.gmra.mrb[28].mxu1 %v9038_v1  ;;  %1228 = vmatprep.mubr.bf16.mxu0 %v9040_v5 }
  0xed   :  { %1421 = vmatprep.mubr.bf16.mxu1 %v9040_v5  ;;  %1531 = vmatpush1.bf16.msra.mxu0 %v6954_v11  ;;  %v8710_v11 = vld [vmem:[#allocation2 + $0x30] ss:$8 sps:$4 sm:$0xff]  }
  0xee   :  { %1532 = vmatprep.subr.bf16.mxu0 %v6963_v12  ;;  %1724 = vmatpush1.bf16.msra.mxu1 %v6956_v13  ;;  %v8210_v12 = vld [vmem:[#allocation8 + $0xec] ss:$16 sps:$4 sm:$0xff]  }
  0xef   :  { %1725 = vmatprep.subr.bf16.mxu1 %v6965_v14  ;;  %v8711_v13 = vld [vmem:[#allocation2 + $0x44] ss:$8 sps:$4 sm:$0xff]   ;;  %v8172_v14 = vld [vmem:[#allocation8 + $0xe0] ss:$16 sps:$4 sm:$0xff]  }
  0xf1   :  { %1533 = vmatpush1.bf16.msra.mxu0 %v6962_v18  ;;  %v8208_v18 = vld [vmem:[#allocation8 + $0xe8] ss:$16 sps:$4 sm:$0xff]  }
  0xf2   :  { %1726 = vmatpush1.bf16.msra.mxu1 %v6964_v20  ;;  %3830 = vmatprep.subr.bf16.mxu0 %v8153_v16  ;;  %v8177_v16 = vld [vmem:[#allocation8 + $0x104] ss:$16 sps:$4 sm:$0xff]   ;;  %v8216_v20 = vld [vmem:[#allocation8 + $0x10c] ss:$16 sps:$4 sm:$0xff]  }
  0xf3   :  { %1229 = vmatmul.mubr.bf16.gmra.mrb[32].mxu0 %v9046_v17  ;;  %4602 = vmatprep.subr.bf16.mxu1 %v8180_v21  ;;  %v8175_v21 = vld [vmem:[#allocation8 + $0x100] ss:$16 sps:$4 sm:$0xff]  }
  0xf4   :  { %1422 = vmatmul.mubr.bf16.gmra.mrb[32].mxu1 %v9046_v17  ;;  %1238 = vmatprep.mubr.bf16.mxu0 %v9048_v19 }
  0xf5   :  { %1431 = vmatprep.mubr.bf16.mxu1 %v9048_v19 }
  0xfb   :  { %1239 = vmatmul.mubr.bf16.gmra.mrb[36].mxu0 %v9054_v22 }
  0xfc   :  { %1432 = vmatmul.mubr.bf16.gmra.mrb[36].mxu1 %v9054_v22  ;;  %1248 = vmatprep.mubr.bf16.mxu0 %v9056_v23 }
  0xfd   :  { %1441 = vmatprep.mubr.bf16.mxu1 %v9056_v23 }
 0x103   :  { %1249 = vmatmul.mubr.bf16.gmra.mrb[40].mxu0 %v9062_v24 }
 0x104   :  { %1442 = vmatmul.mubr.bf16.gmra.mrb[40].mxu1 %v9062_v24  ;;  %1258 = vmatprep.mubr.bf16.mxu0 %v9064_v25 }
 0x105   :  { %1451 = vmatprep.mubr.bf16.mxu1 %v9064_v25 }
 0x10b   :  { %1259 = vmatmul.mubr.bf16.gmra.mrb[44].mxu0 %v9070_v26 }
 0x10c   :  { %1452 = vmatmul.mubr.bf16.gmra.mrb[44].mxu1 %v9070_v26  ;;  %1268 = vmatprep.mubr.bf16.mxu0 %v9072_v27 }
 0x10d   :  { %1461 = vmatprep.mubr.bf16.mxu1 %v9072_v27 }
 0x113   :  { %1269 = vmatmul.mubr.bf16.gmra.mrb[48].mxu0 %v9078_v28 }
 0x114   :  { %1462 = vmatmul.mubr.bf16.gmra.mrb[48].mxu1 %v9078_v28  ;;  %1278 = vmatprep.mubr.bf16.mxu0 %v9080_v30 }
 0x115   :  { %1471 = vmatprep.mubr.bf16.mxu1 %v9080_v30 }
 0x11b   :  { %1279 = vmatmul.mubr.bf16.gmra.mrb[52].mxu0 %v9086_v31 }
 0x11c   :  { %1472 = vmatmul.mubr.bf16.gmra.mrb[52].mxu1 %v9086_v31  ;;  %1288 = vmatprep.mubr.bf16.mxu0 %v9088_v32 }
 0x11d   :  { %1481 = vmatprep.mubr.bf16.mxu1 %v9088_v32 }
 0x123   :  { %1289 = vmatmul.mubr.bf16.gmra.mrb[56].mxu0 %v9094_v34 }
 0x124   :  { %1482 = vmatmul.mubr.bf16.gmra.mrb[56].mxu1 %v9094_v34  ;;  %1298 = vmatprep.mubr.bf16.mxu0 %v9096_v35 }
 0x125   :  { %1491 = vmatprep.mubr.bf16.mxu1 %v9096_v35 }
 0x12b   :  { %1299 = vmatmul.mubr.bf16.gmra.mrb[60].mxu0 %v9102_v36 }
 0x12c   :  { %1492 = vmatmul.mubr.bf16.gmra.mrb[60].mxu1 %v9102_v36  ;;  %1534 = vmatprep.mubr.bf16.mxu0 %v8703_v37 }
 0x12d   :  { %1727 = vmatprep.mubr.bf16.mxu1 %v8703_v37  ;;  %v8186_v37 = vld [vmem:[#allocation8 + $0x124] ss:$16 sps:$4 sm:$0xff]  }
 0x133   :  { %1535 = vmatmul.mubr.bf16.vlgmr.msra.gmra.mrb[64].mxu0 %v8704_v43 }
 0x134   :  { %1728 = vmatmul.mubr.bf16.vlgmr.msra.gmra.mrb[64].mxu1 %v8704_v43  ;;  %3831 = vmatpush1.bf16.msra.mxu0 %v8151_v38  ;;  %v8214_v38 = vld [vmem:[#allocation8 + $0x108] ss:$16 sps:$4 sm:$0xff]  }
 0x135   :  { %1544 = vmatprep.mubr.bf16.mxu0 %v8705_v44  ;;  %1737 = vmatprep.mubr.bf16.mxu1 %v8705_v44  ;;  %v8217_v43 = vld [vmem:[#allocation8 + $0x128] ss:$16 sps:$4 sm:$0xff]   ;;  %v8225_v44 = vld [vmem:[#allocation8 + $0x14c] ss:$16 sps:$4 sm:$0xff]  }
 0x136   :  { %3832 = vmatprep.subr.bf16.mxu0 %v8156_v39  ;;  %4603 = vmatpush1.bf16.msra.mxu1 %v8178_v40  ;;  %v8712_v39 = vld [vmem:[#allocation2 + $0x40] ss:$8 sps:$4 sm:$0xff]   ;;  %v8219_v40 = vld [vmem:[#allocation8 + $0x12c] ss:$16 sps:$4 sm:$0xff]  }
 0x137   :  { %4604 = vmatprep.subr.bf16.mxu1 %v8183_v41  ;;  %v8184_v41 = vld [vmem:[#allocation8 + $0x120] ss:$16 sps:$4 sm:$0xff]  }
 0x138   :  { %3833 = vmatpush1.bf16.msra.mxu0 %v8154_v42  ;;  %v8195_v42 = vld [vmem:[#allocation8 + $0x144] ss:$16 sps:$4 sm:$0xff]  }
 0x139   :  { %3834 = vmatprep.subr.bf16.mxu0 %v8159_v45  ;;  %v8193_v45 = vld [vmem:[#allocation8 + $0x140] ss:$16 sps:$4 sm:$0xff]  }
 0x13a   :  { %4605 = vmatpush1.bf16.msra.mxu1 %v8181_v46  ;;  %v8204_v46 = vld [vmem:[#allocation8 + $0x164] ss:$16 sps:$4 sm:$0xff]  }
 0x13b   :  { %1545 = vmatmul.mubr.bf16.gmra.mrb[68].mxu0 %v8706_v53  ;;  %4606 = vmatprep.subr.bf16.mxu1 %v8189_v48  ;;  %v8223_v48 = vld [vmem:[#allocation8 + $0x148] ss:$16 sps:$4 sm:$0xff]  }
 0x13c   :  { %1738 = vmatmul.mubr.bf16.gmra.mrb[68].mxu1 %v8706_v53  ;;  %1554 = vmatprep.mubr.bf16.mxu0 %v8707_v55  ;;  %v8234_v53 = vld [vmem:[#allocation8 + $0x18c] ss:$16 sps:$4 sm:$0xff]  }
 0x13d   :  { %1747 = vmatprep.mubr.bf16.mxu1 %v8707_v55  ;;  %3835 = vmatpush1.bf16.msra.mxu0 %v8157_v49  ;;  %v8228_v49 = vld [vmem:[#allocation8 + $0x16c] ss:$16 sps:$4 sm:$0xff]   ;;  %v8222_v55 = vld [vmem:[#allocation8 + $0x1a4] ss:$16 sps:$4 sm:$0xff]  }
 0x13e   :  { %3836 = vmatprep.subr.bf16.mxu0 %v8162_v50  ;;  %4607 = vmatpush1.bf16.msra.mxu1 %v8187_v52  ;;  %v8213_v50 = vld [vmem:[#allocation8 + $0x184] ss:$16 sps:$4 sm:$0xff]   ;;  %v8226_v52 = vld [vmem:[#allocation8 + $0x168] ss:$16 sps:$4 sm:$0xff]  }
 0x13f   :  { %4608 = vmatprep.subr.bf16.mxu1 %v8192_v54  ;;  %v8211_v54 = vld [vmem:[#allocation8 + $0x180] ss:$16 sps:$4 sm:$0xff]  }
 0x141   :  { %3837 = vmatpush1.bf16.msra.mxu0 %v8160_v56  ;;  %v8232_v56 = vld [vmem:[#allocation8 + $0x188] ss:$16 sps:$4 sm:$0xff]  }
 0x142   :  { %3838 = vmatprep.subr.bf16.mxu0 %v8165_v57  ;;  %4609 = vmatpush1.bf16.msra.mxu1 %v8190_v58  ;;  %v8231_v57 = vld [vmem:[#allocation8 + $0x1c4] ss:$16 sps:$4 sm:$0xff]   ;;  %v8235_v58 = vld [vmem:[#allocation8 + $0x1a8] ss:$16 sps:$4 sm:$0xff]  }
 0x143   :  { %1555 = vmatmul.mubr.bf16.gmra.mrb[72].mxu0 %v8708_v63  ;;  %4610 = vmatprep.subr.bf16.mxu1 %v8198_v59  ;;  %v8243_v59 = vld [vmem:[#allocation8 + $0x1cc] ss:$16 sps:$4 sm:$0xff]  }
 0x144   :  { %1748 = vmatmul.mubr.bf16.gmra.mrb[72].mxu1 %v8708_v63  ;;  %1564 = vmatprep.mubr.bf16.mxu0 %v8709_v2  ;;  %v8244_v63 = vld [vmem:[#allocation8 + $0x1e8] ss:$16 sps:$4 sm:$0xff]  }
 0x145   :  { %1757 = vmatprep.mubr.bf16.mxu1 %v8709_v2  ;;  %3839 = vmatpush1.bf16.msra.mxu0 %v8163_v60  ;;  %v8229_v60 = vld [vmem:[#allocation8 + $0x1c0] ss:$16 sps:$4 sm:$0xff]   ;;  %v8276_v2 = vld [vmem:[#allocation8 + $0x20c] ss:$16 sps:$4 sm:$0xff]  }
 0x146   :  { %3840 = vmatprep.subr.bf16.mxu0 %v8168_v61  ;;  %4611 = vmatpush1.bf16.msra.mxu1 %v8196_v62  ;;  %v8240_v61 = vld [vmem:[#allocation8 + $0x1e4] ss:$16 sps:$4 sm:$0xff]   ;;  %v8241_v62 = vld [vmem:[#allocation8 + $0x1c8] ss:$16 sps:$4 sm:$0xff]  }
 0x147   :  { %4612 = vmatprep.subr.bf16.mxu1 %v8201_v0  ;;  %v8249_v0 = vld [vmem:[#allocation8 + $0x204] ss:$16 sps:$4 sm:$0xff]  }
 0x149   :  { %3841 = vmatpush1.bf16.msra.mxu0 %v8166_v3 }
 0x14a   :  { %3842 = vmatprep.subr.bf16.mxu0 %v8171_v4  ;;  %4613 = vmatpush1.bf16.msra.mxu1 %v8199_v6 }
 0x14b   :  { %1565 = vmatmul.mubr.bf16.gmra.mrb[76].mxu0 %v8710_v11  ;;  %4614 = vmatprep.subr.bf16.mxu1 %v8207_v7 }
 0x14c   :  { %1758 = vmatmul.mubr.bf16.gmra.mrb[76].mxu1 %v8710_v11  ;;  %1574 = vmatprep.mubr.bf16.mxu0 %v8711_v13 }
 0x14d   :  { %1767 = vmatprep.mubr.bf16.mxu1 %v8711_v13  ;;  %3843 = vmatpush1.bf16.msra.mxu0 %v8169_v8 }
 0x14e   :  { %3844 = vmatprep.subr.bf16.mxu0 %v8174_v9  ;;  %4615 = vmatpush1.bf16.msra.mxu1 %v8205_v10 }
 0x14f   :  { %4616 = vmatprep.subr.bf16.mxu1 %v8210_v12 }
 0x151   :  { %3845 = vmatpush1.bf16.msra.mxu0 %v8172_v14 }
 0x152   :  { %3846 = vmatprep.subr.bf16.mxu0 %v8177_v16  ;;  %4617 = vmatpush1.bf16.msra.mxu1 %v8208_v18 }
 0x153   :  { %1575 = vmatmul.mubr.bf16.gmra.mrb[80].mxu0 %v8712_v39  ;;  %4618 = vmatprep.subr.bf16.mxu1 %v8216_v20 }
 0x154   :  { %1768 = vmatmul.mubr.bf16.gmra.mrb[80].mxu1 %v8712_v39  ;;  %1584 = vmatprep.mubr.bf16.mxu0 %v9018_v15 }
 0x155   :  { %1777 = vmatprep.mubr.bf16.mxu1 %v9018_v15  ;;  %3847 = vmatpush1.bf16.msra.mxu0 %v8175_v21  ;;  %v8202_v15 = vld [vmem:[#allocation8 + $0x160] ss:$16 sps:$4 sm:$0xff]  }
 0x156   :  { %3848 = vmatprep.subr.bf16.mxu0 %v8186_v37  ;;  %4619 = vmatpush1.bf16.msra.mxu1 %v8214_v38 }
 0x157   :  { %4620 = vmatprep.subr.bf16.mxu1 %v8219_v40 }
 0x159   :  { %3849 = vmatpush1.bf16.msra.mxu0 %v8184_v41 }
 0x15a   :  { %3850 = vmatprep.subr.bf16.mxu0 %v8195_v42  ;;  %4621 = vmatpush1.bf16.msra.mxu1 %v8217_v43 }
 0x15b   :  { %1585 = vmatmul.mubr.bf16.gmra.mrb[84].mxu0 %v9022_v29  ;;  %4622 = vmatprep.subr.bf16.mxu1 %v8225_v44 }
 0x15c   :  { %1778 = vmatmul.mubr.bf16.gmra.mrb[84].mxu1 %v9022_v29  ;;  %1594 = vmatprep.mubr.bf16.mxu0 %v9024_v33  ;;  %v8237_v29 = vld [vmem:[#allocation8 + $0x1ac] ss:$16 sps:$4 sm:$0xff]  }
 0x15d   :  { %1787 = vmatprep.mubr.bf16.mxu1 %v9024_v33  ;;  %3851 = vmatpush1.bf16.msra.mxu0 %v8193_v45  ;;  %v8220_v33 = vld [vmem:[#allocation8 + $0x1a0] ss:$16 sps:$4 sm:$0xff]  }
 0x15e   :  { %3852 = vmatprep.subr.bf16.mxu0 %v8204_v46  ;;  %4623 = vmatpush1.bf16.msra.mxu1 %v8223_v48 }
 0x15f   :  { %4624 = vmatprep.subr.bf16.mxu1 %v8228_v49 }
 0x161   :  { %3853 = vmatpush1.bf16.msra.mxu0 %v8202_v15 }
 0x162   :  { %3854 = vmatprep.subr.bf16.mxu0 %v8213_v50  ;;  %4625 = vmatpush1.bf16.msra.mxu1 %v8226_v52 }
 0x163   :  { %1595 = vmatmul.mubr.bf16.gmra.mrb[88].mxu0 %v9030_v47  ;;  %4626 = vmatprep.subr.bf16.mxu1 %v8234_v53 }
 0x164   :  { %1788 = vmatmul.mubr.bf16.gmra.mrb[88].mxu1 %v9030_v47  ;;  %1604 = vmatprep.mubr.bf16.mxu0 %v9032_v51  ;;  %v8246_v47 = vld [vmem:[#allocation8 + $0x1ec] ss:$16 sps:$4 sm:$0xff]  }
 0x165   :  { %1797 = vmatprep.mubr.bf16.mxu1 %v9032_v51  ;;  %3855 = vmatpush1.bf16.msra.mxu0 %v8211_v54  ;;  %v8238_v51 = vld [vmem:[#allocation8 + $0x1e0] ss:$16 sps:$4 sm:$0xff]  }
 0x166   :  { %3856 = vmatprep.subr.bf16.mxu0 %v8222_v55  ;;  %4627 = vmatpush1.bf16.msra.mxu1 %v8232_v56 }
 0x167   :  { %4628 = vmatprep.subr.bf16.mxu1 %v8237_v29 }
 0x169   :  { %3857 = vmatpush1.bf16.msra.mxu0 %v8220_v33 }
 0x16a   :  { %3858 = vmatprep.subr.bf16.mxu0 %v8231_v57  ;;  %4629 = vmatpush1.bf16.msra.mxu1 %v8235_v58 }
 0x16b   :  { %1605 = vmatmul.mubr.bf16.gmra.mrb[92].mxu0 %v9038_v1  ;;  %4630 = vmatprep.subr.bf16.mxu1 %v8243_v59 }
 0x16c   :  { %1798 = vmatmul.mubr.bf16.gmra.mrb[92].mxu1 %v9038_v1  ;;  %1614 = vmatprep.mubr.bf16.mxu0 %v9040_v5  ;;  %v10715_v1 = vlaneseq }
 0x16d   :  { %1807 = vmatprep.mubr.bf16.mxu1 %v9040_v5  ;;  %3859 = vmatpush1.bf16.msra.mxu0 %v8229_v60 }
 0x16e   :  { %3860 = vmatprep.subr.bf16.mxu0 %v8240_v61  ;;  %4631 = vmatpush1.bf16.msra.mxu1 %v8241_v62  ;;  %v9126_v5 = vshrl.u32 %v10715_v1, 7 }
 0x16f   :  { %4632 = vmatprep.subr.bf16.mxu1 %v8246_v47 }
 0x170   :  { %10752 = vst [vmem:[#allocation19_spill] sm:$0xff] %v9126_v5  ;;  %v10719_v3 = vsub.s32 0, %v9126_v5  ;;  %v10717_v4 = vsub.s32 1, %v9126_v5  ;;  %v10716_v6 = vsub.s32 3, %v9126_v5 }
 0x171   :  { %3861 = vmatpush1.bf16.msra.mxu0 %v8238_v51 }
 0x172   :  { %4633 = vmatpush1.bf16.msra.mxu1 %v8244_v63  ;;  %4023 = vmatprep.subr.bf16.mxu0 %v8249_v0 }
 0x173   :  { %1615 = vmatmul.mubr.bf16.gmra.mrb[96].mxu0 %v9046_v17  ;;  %4795 = vmatprep.subr.bf16.mxu1 %v8276_v2 }
 0x174   :  { %1808 = vmatmul.mubr.bf16.gmra.mrb[96].mxu1 %v9046_v17  ;;  %1624 = vmatprep.mubr.bf16.mxu0 %v9048_v19  ;;  %v274_v17 = vld [vmem:[#allocation7] sm:$0xff] }
 0x175   :  { %1817 = vmatprep.mubr.bf16.mxu1 %v9048_v19  ;;  %v9136_v19 = vrot.slane %v274_v17, %v10719_v3 }
 0x17b   :  { %1625 = vmatmul.mubr.bf16.gmra.mrb[100].mxu0 %v9054_v22 }
 0x17c   :  { %1818 = vmatmul.mubr.bf16.gmra.mrb[100].mxu1 %v9054_v22  ;;  %1634 = vmatprep.mubr.bf16.mxu0 %v9056_v23  ;;  %v9141_v22 = vrot.slane %v274_v17, %v10717_v4 }
 0x17d   :  { %1827 = vmatprep.mubr.bf16.mxu1 %v9056_v23  ;;  %v10718_v23 = vsub.s32 2, %v9126_v5 }
 0x17f   :  { %v9149_v8 = vrot.slane %v274_v17, %v10718_v23 }
 0x183   :  { %1635 = vmatmul.mubr.bf16.gmra.mrb[104].mxu0 %v9062_v24 }
 0x184   :  { %1828 = vmatmul.mubr.bf16.gmra.mrb[104].mxu1 %v9062_v24  ;;  %1644 = vmatprep.mubr.bf16.mxu0 %v9064_v25  ;;  %v9153_v24 = vrot.slane %v274_v17, %v10716_v6 }
 0x185   :  { %1837 = vmatprep.mubr.bf16.mxu1 %v9064_v25 }
 0x186   :  { %v1150_v7 = vpop.f32.mrb[0].mxu0  ;;  %v1343_v11 = vpop.f32.mrb[0].mxu1 }
 0x187   :  { %v1151_v9 = vadd.f32 %v1150_v7, %v9136_v19  ;;  %v1152_v10 = vpop.f32.mrb[1].mxu0  ;;  %v1344_v14 = vadd.f32 %v1343_v11, %v9149_v8  ;;  %v1345_v16 = vpop.f32.mrb[1].mxu1 }
 0x188   :  { %v1153_v12 = vadd.f32 %v1152_v10, %v9141_v22  ;;  %v1154_v13 = vpop.f32.mrb[2].mxu0  ;;  %v1346_v20 = vadd.f32 %v1345_v16, %v9153_v24  ;;  %v1347_v21 = vpop.f32.mrb[2].mxu1 }
 0x189   :  { %v1155_v25 = vadd.f32 %v1154_v13, %v9136_v19  ;;  %v1156_v18 = vpop.f32.mrb[3].mxu0  ;;  %v1890_v38 = vmax.f32 %v1344_v14, 0.0  ;;  %v1348_v39 = vadd.f32 %v1347_v21, %v9149_v8  ;;  %v1349_v40 = vpop.f32.mrb[3].mxu1  ;;  %v1888_v41 = vmax.f32 %v1151_v9, 0.0 }
 0x18a   :  { %v1157_v37 = vadd.f32 %v1156_v18, %v9141_v22  ;;  %v1891_v43 = vmax.f32 %v1346_v20, 0.0  ;;  %v1350_v44 = vadd.f32 %v1349_v40, %v9153_v24  ;;  %v1889_v45 = vmax.f32 %v1153_v12, 0.0 }
 0x18b   :  { %v1896_v42 = vmax.f32 %v1155_v25, 0.0  ;;  %1645 = vmatmul.mubr.bf16.gmra.mrb[108].mxu0 %v9070_v26  ;;  %v1898_v48 = vmax.f32 %v1348_v39, 0.0 }
 0x18c   :  { %v1897_v46 = vmax.f32 %v1157_v37, 0.0  ;;  %1838 = vmatmul.mubr.bf16.gmra.mrb[108].mxu1 %v9070_v26  ;;  %1654 = vmatprep.mubr.bf16.mxu0 %v9072_v27  ;;  %v1899_v15 = vmax.f32 %v1350_v44, 0.0 }
 0x18d   :  { %v9166_v49 = vpack.c.bf16 %v1896_v42, %v1888_v41  ;;  %1847 = vmatprep.mubr.bf16.mxu1 %v9072_v27  ;;  %v9171_v53 = vpack.c.bf16 %v1898_v48, %v1890_v38 }
 0x18e   :  { %v1160_v50 = vpop.f32.mrb[4].mxu0  ;;  %v9169_v52 = vpack.c.bf16 %v1897_v46, %v1889_v45  ;;  %v9174_v29 = vpack.c.bf16 %v1899_v15, %v1891_v43 }
 0x18f   :  { %v1161_v54 = vadd.f32 %v1160_v50, %v9136_v19  ;;  %v1162_v55 = vpop.f32.mrb[5].mxu0  ;;  %v1353_v56 = vpop.f32.mrb[4].mxu1 }
 0x190   :  { %v1163_v26 = vadd.f32 %v1162_v55, %v9141_v22  ;;  %v1164_v33 = vpop.f32.mrb[6].mxu0  ;;  %v1354_v57 = vadd.f32 %v1353_v56, %v9149_v8  ;;  %v1355_v58 = vpop.f32.mrb[5].mxu1 }
 0x191   :  { %v1165_v27 = vadd.f32 %v1164_v33, %v9136_v19  ;;  %v1166_v59 = vpop.f32.mrb[7].mxu0  ;;  %v1356_v60 = vadd.f32 %v1355_v58, %v9153_v24  ;;  %v1357_v61 = vpop.f32.mrb[6].mxu1  ;;  %v1904_v0 = vmax.f32 %v1161_v54, 0.0 }
 0x192   :  { %v1167_v62 = vadd.f32 %v1166_v59, %v9141_v22  ;;  %v1906_v47 = vmax.f32 %v1354_v57, 0.0  ;;  %v1358_v51 = vadd.f32 %v1357_v61, %v9149_v8  ;;  %v1359_v63 = vpop.f32.mrb[7].mxu1  ;;  %v1905_v9 = vmax.f32 %v1163_v26, 0.0 }
 0x193   :  { %v1912_v2 = vmax.f32 %v1165_v27, 0.0  ;;  %1655 = vmatmul.mubr.bf16.gmra.mrb[112].mxu0 %v9078_v28  ;;  %v1907_v17 = vmax.f32 %v1356_v60, 0.0  ;;  %v1360_v7 = vadd.f32 %v1359_v63, %v9153_v24 }
 0x194   :  { %v1913_v10 = vmax.f32 %v1167_v62, 0.0  ;;  %1848 = vmatmul.mubr.bf16.gmra.mrb[112].mxu1 %v9078_v28  ;;  %1664 = vmatprep.mubr.bf16.mxu0 %v9080_v30  ;;  %v1914_v11 = vmax.f32 %v1358_v51, 0.0 }
 0x195   :  { %1857 = vmatprep.mubr.bf16.mxu1 %v9080_v30  ;;  %v9187_v12 = vpack.c.bf16 %v1912_v2, %v1904_v0  ;;  %v1915_v13 = vmax.f32 %v1360_v7, 0.0 }
 0x196   :  { %v1170_v14 = vpop.f32.mrb[8].mxu0  ;;  %v9189_v16 = vpack.c.bf16 %v1913_v10, %v1905_v9  ;;  %v9191_v25 = vpack.c.bf16 %v1914_v11, %v1906_v47 }
 0x197   :  { %v1171_v18 = vadd.f32 %v1170_v14, %v9136_v19  ;;  %v1172_v20 = vpop.f32.mrb[9].mxu0  ;;  %v1363_v21 = vpop.f32.mrb[8].mxu1  ;;  %v9194_v37 = vpack.c.bf16 %v1915_v13, %v1907_v17 }
 0x198   :  { %v1173_v28 = vadd.f32 %v1172_v20, %v9141_v22  ;;  %v1174_v38 = vpop.f32.mrb[10].mxu0  ;;  %v1364_v39 = vadd.f32 %v1363_v21, %v9149_v8  ;;  %v1365_v30 = vpop.f32.mrb[9].mxu1 }
 0x199   :  { %v1175_v40 = vadd.f32 %v1174_v38, %v9136_v19  ;;  %v1176_v41 = vpop.f32.mrb[11].mxu0  ;;  %v1366_v42 = vadd.f32 %v1365_v30, %v9153_v24  ;;  %v1367_v43 = vpop.f32.mrb[10].mxu1  ;;  %v1920_v15 = vmax.f32 %v1171_v18, 0.0 }
 0x19a   :  { %v1177_v44 = vadd.f32 %v1176_v41, %v9141_v22  ;;  %v1922_v45 = vmax.f32 %v1364_v39, 0.0  ;;  %v1368_v46 = vadd.f32 %v1367_v43, %v9149_v8  ;;  %v1369_v48 = vpop.f32.mrb[11].mxu1  ;;  %v1921_v56 = vmax.f32 %v1173_v28, 0.0 }
 0x19b   :  { %v1928_v50 = vmax.f32 %v1175_v40, 0.0  ;;  %1665 = vmatmul.mubr.bf16.gmra.mrb[116].mxu0 %v9086_v31  ;;  %v1923_v54 = vmax.f32 %v1366_v42, 0.0  ;;  %v1370_v55 = vadd.f32 %v1369_v48, %v9153_v24 }
 0x19c   :  { %v1929_v26 = vmax.f32 %v1177_v44, 0.0  ;;  %1858 = vmatmul.mubr.bf16.gmra.mrb[116].mxu1 %v9086_v31  ;;  %1674 = vmatprep.mubr.bf16.mxu0 %v9088_v32  ;;  %v1930_v33 = vmax.f32 %v1368_v46, 0.0 }
 0x19d   :  { %1867 = vmatprep.mubr.bf16.mxu1 %v9088_v32  ;;  %v9207_v57 = vpack.c.bf16 %v1928_v50, %v1920_v15  ;;  %v1931_v58 = vmax.f32 %v1370_v55, 0.0 }
 0x19e   :  { %v1180_v27 = vpop.f32.mrb[12].mxu0  ;;  %v9209_v59 = vpack.c.bf16 %v1929_v26, %v1921_v56  ;;  %v9211_v60 = vpack.c.bf16 %v1930_v33, %v1922_v45 }
 0x19f   :  { %v1181_v61 = vadd.f32 %v1180_v27, %v9136_v19  ;;  %v1182_v62 = vpop.f32.mrb[13].mxu0  ;;  %v1373_v47 = vpop.f32.mrb[12].mxu1  ;;  %v9214_v51 = vpack.c.bf16 %v1931_v58, %v1923_v54 }
 0x1a0   :  { %v1183_v31 = vadd.f32 %v1182_v62, %v9141_v22  ;;  %v1184_v63 = vpop.f32.mrb[14].mxu0  ;;  %v1374_v0 = vadd.f32 %v1373_v47, %v9149_v8  ;;  %v1375_v32 = vpop.f32.mrb[13].mxu1 }
 0x1a1   :  { %v1185_v2 = vadd.f32 %v1184_v63, %v9136_v19  ;;  %v1186_v17 = vpop.f32.mrb[15].mxu0  ;;  %v1376_v7 = vadd.f32 %v1375_v32, %v9153_v24  ;;  %v1377_v9 = vpop.f32.mrb[14].mxu1  ;;  %v1936_v18 = vmax.f32 %v1181_v61, 0.0 }
 0x1a2   :  { %v1187_v10 = vadd.f32 %v1186_v17, %v9141_v22  ;;  %v1938_v11 = vmax.f32 %v1374_v0, 0.0  ;;  %v1378_v13 = vadd.f32 %v1377_v9, %v9149_v8  ;;  %v1379_v14 = vpop.f32.mrb[15].mxu1  ;;  %v1937_v38 = vmax.f32 %v1183_v31, 0.0 }
 0x1a3   :  { %v1944_v20 = vmax.f32 %v1185_v2, 0.0  ;;  %1675 = vmatmul.mubr.bf16.gmra.mrb[120].mxu0 %v9094_v34  ;;  %v1939_v21 = vmax.f32 %v1376_v7, 0.0  ;;  %v1380_v28 = vadd.f32 %v1379_v14, %v9153_v24 }
 0x1a4   :  { %v1945_v39 = vmax.f32 %v1187_v10, 0.0  ;;  %1868 = vmatmul.mubr.bf16.gmra.mrb[120].mxu1 %v9094_v34  ;;  %1684 = vmatprep.mubr.bf16.mxu0 %v9096_v35  ;;  %v1946_v30 = vmax.f32 %v1378_v13, 0.0 }
 0x1a5   :  { %1877 = vmatprep.mubr.bf16.mxu1 %v9096_v35  ;;  %v9227_v40 = vpack.c.bf16 %v1944_v20, %v1936_v18  ;;  %v1947_v41 = vmax.f32 %v1380_v28, 0.0 }
 0x1a6   :  { %v1190_v42 = vpop.f32.mrb[16].mxu0  ;;  %v9229_v43 = vpack.c.bf16 %v1945_v39, %v1937_v38  ;;  %v9231_v44 = vpack.c.bf16 %v1946_v30, %v1938_v11 }
 0x1a7   :  { %v1191_v45 = vadd.f32 %v1190_v42, %v9136_v19  ;;  %v1192_v46 = vpop.f32.mrb[17].mxu0  ;;  %v1383_v48 = vpop.f32.mrb[16].mxu1  ;;  %v9234_v15 = vpack.c.bf16 %v1947_v41, %v1939_v21  ;;  %v8247_v41 = vld [vmem:[#allocation8 + $0x200] ss:$16 sps:$4 sm:$0xff]  }
 0x1a8   :  { %v1193_v34 = vadd.f32 %v1192_v46, %v9141_v22  ;;  %v1194_v50 = vpop.f32.mrb[18].mxu0  ;;  %v1384_v54 = vadd.f32 %v1383_v48, %v9149_v8  ;;  %v1385_v35 = vpop.f32.mrb[17].mxu1  ;;  %v8252_v48 = vld [vmem:[#allocation8 + $0x224] ss:$16 sps:$4 sm:$0xff]  }
 0x1a9   :  { %v1195_v55 = vadd.f32 %v1194_v50, %v9136_v19  ;;  %v1196_v56 = vpop.f32.mrb[19].mxu0  ;;  %v1386_v26 = vadd.f32 %v1385_v35, %v9153_v24  ;;  %v1387_v33 = vpop.f32.mrb[18].mxu1  ;;  %v1952_v47 = vmax.f32 %v1191_v45, 0.0 }
 0x1aa   :  { %v1197_v58 = vadd.f32 %v1196_v56, %v9141_v22  ;;  %v1954_v27 = vmax.f32 %v1384_v54, 0.0  ;;  %v1388_v61 = vadd.f32 %v1387_v33, %v9149_v8  ;;  %v1389_v62 = vpop.f32.mrb[19].mxu1  ;;  %v1953_v32 = vmax.f32 %v1193_v34, 0.0  ;;  %v8274_v34 = vld [vmem:[#allocation8 + $0x208] ss:$16 sps:$4 sm:$0xff]  }
 0x1ab   :  { %v1960_v31 = vmax.f32 %v1195_v55, 0.0  ;;  %1685 = vmatmul.mubr.bf16.gmra.mrb[124].mxu0 %v9102_v36  ;;  %v1955_v63 = vmax.f32 %v1386_v26, 0.0  ;;  %v1390_v0 = vadd.f32 %v1389_v62, %v9153_v24  ;;  %v8279_v26 = vld [vmem:[#allocation8 + $0x22c] ss:$16 sps:$4 sm:$0xff]  }
 0x1ac   :  { %v1961_v2 = vmax.f32 %v1197_v58, 0.0  ;;  %1878 = vmatmul.mubr.bf16.gmra.mrb[124].mxu1 %v9102_v36  ;;  %3862 = vmatprep.mubr.bf16.mxu0 %v9169_v52  ;;  %v1962_v17 = vmax.f32 %v1388_v61, 0.0 }
 0x1ad   :  { %v9246_v7 = vpack.c.bf16 %v1960_v31, %v1952_v47  ;;  %4634 = vmatprep.mubr.bf16.mxu1 %v9169_v52  ;;  %v1963_v9 = vmax.f32 %v1390_v0, 0.0  ;;  %v8250_v31 = vld [vmem:[#allocation8 + $0x220] ss:$16 sps:$4 sm:$0xff]  }
 0x1ae   :  { %v9249_v10 = vpack.c.bf16 %v1961_v2, %v1953_v32  ;;  %v1200_v11 = vpop.f32.mrb[20].mxu0  ;;  %v9251_v13 = vpack.c.bf16 %v1962_v17, %v1954_v27  ;;  %v8255_v2 = vld [vmem:[#allocation8 + $0x244] ss:$16 sps:$4 sm:$0xff]   ;;  %v8277_v17 = vld [vmem:[#allocation8 + $0x228] ss:$16 sps:$4 sm:$0xff]  }
 0x1af   :  { %v1201_v14 = vadd.f32 %v1200_v11, %v9136_v19  ;;  %v1202_v18 = vpop.f32.mrb[21].mxu0  ;;  %v9254_v20 = vpack.c.bf16 %v1963_v9, %v1955_v63  ;;  %v1393_v21 = vpop.f32.mrb[20].mxu1 }
 0x1b0   :  { %v1203_v36 = vadd.f32 %v1202_v18, %v9141_v22  ;;  %v1204_v28 = vpop.f32.mrb[22].mxu0  ;;  %v1394_v38 = vadd.f32 %v1393_v21, %v9149_v8  ;;  %v1395_v39 = vpop.f32.mrb[21].mxu1 }
 0x1b1   :  { %v1205_v52 = vadd.f32 %v1204_v28, %v9136_v19  ;;  %v1206_v30 = vpop.f32.mrb[23].mxu0  ;;  %v1396_v42 = vadd.f32 %v1395_v39, %v9153_v24  ;;  %v1397_v45 = vpop.f32.mrb[22].mxu1  ;;  %v1968_v55 = vmax.f32 %v1201_v14, 0.0  ;;  %v8285_v14 = vld [vmem:[#allocation8 + $0x24c] ss:$16 sps:$4 sm:$0xff]  }
 0x1b2   :  { %v1207_v46 = vadd.f32 %v1206_v30, %v9141_v22  ;;  %v1970_v50 = vmax.f32 %v1394_v38, 0.0  ;;  %v1398_v54 = vadd.f32 %v1397_v45, %v9149_v8  ;;  %v1399_v35 = vpop.f32.mrb[23].mxu1  ;;  %v1969_v27 = vmax.f32 %v1203_v36, 0.0  ;;  %v8253_v30 = vld [vmem:[#allocation8 + $0x240] ss:$16 sps:$4 sm:$0xff]  }
 0x1b3   :  { %v1976_v56 = vmax.f32 %v1205_v52, 0.0  ;;  %3863 = vmatmul.mubr.bf16.vlgmr.msra.gmra.mrb[128].mxu0 %v9166_v49  ;;  %v1971_v33 = vmax.f32 %v1396_v42, 0.0  ;;  %v1400_v58 = vadd.f32 %v1399_v35, %v9153_v24 }
 0x1b4   :  { %v1977_v61 = vmax.f32 %v1207_v46, 0.0  ;;  %4635 = vmatmul.mubr.bf16.vlgmr.msra.gmra.mrb[128].mxu1 %v9166_v49  ;;  %3872 = vmatprep.mubr.bf16.mxu0 %v9189_v16  ;;  %v1978_v62 = vmax.f32 %v1398_v54, 0.0  ;;  %v8258_v46 = vld [vmem:[#allocation8 + $0x264] ss:$16 sps:$4 sm:$0xff]  }
 0x1b5   :  { %v9266_v47 = vpack.c.bf16 %v1976_v56, %v1968_v55  ;;  %4024 = vmatpush1.bf16.msra.mxu0 %v8247_v41  ;;  %4644 = vmatprep.mubr.bf16.mxu1 %v9189_v16  ;;  %v1979_v63 = vmax.f32 %v1400_v58, 0.0  ;;  %v8288_v56 = vld [vmem:[#allocation8 + $0x26c] ss:$16 sps:$4 sm:$0xff]  }
 0x1b6   :  { %v9269_v0 = vpack.c.bf16 %v1977_v61, %v1969_v27  ;;  %v1210_v32 = vpop.f32.mrb[24].mxu0  ;;  %4025 = vmatprep.subr.bf16.mxu0 %v8252_v48  ;;  %4796 = vmatpush1.bf16.msra.mxu1 %v8274_v34  ;;  %v9271_v9 = vpack.c.bf16 %v1978_v62, %v1970_v50  ;;  %v8283_v48 = vld [vmem:[#allocation8 + $0x248] ss:$16 sps:$4 sm:$0xff]  }
 0x1b7   :  { %v1211_v49 = vadd.f32 %v1210_v32, %v9136_v19  ;;  %v1212_v11 = vpop.f32.mrb[25].mxu0  ;;  %4797 = vmatprep.subr.bf16.mxu1 %v8279_v26  ;;  %v9274_v18 = vpack.c.bf16 %v1979_v63, %v1971_v33  ;;  %v1403_v21 = vpop.f32.mrb[24].mxu1 }
 0x1b8   :  { %v1213_v16 = vadd.f32 %v1212_v11, %v9141_v22  ;;  %v1214_v36 = vpop.f32.mrb[26].mxu0  ;;  %v1404_v28 = vadd.f32 %v1403_v21, %v9149_v8  ;;  %v1405_v38 = vpop.f32.mrb[25].mxu1  ;;  %v8294_v21 = vld [vmem:[#allocation8 + $0x28c] ss:$16 sps:$4 sm:$0xff]  }
 0x1b9   :  { %v1215_v39 = vadd.f32 %v1214_v36, %v9136_v19  ;;  %v1216_v52 = vpop.f32.mrb[27].mxu0  ;;  %4026 = vmatpush1.bf16.msra.mxu0 %v8250_v31  ;;  %v1406_v41 = vadd.f32 %v1405_v38, %v9153_v24  ;;  %v1407_v42 = vpop.f32.mrb[26].mxu1  ;;  %v1984_v35 = vmax.f32 %v1211_v49, 0.0  ;;  %v8256_v31 = vld [vmem:[#allocation8 + $0x260] ss:$16 sps:$4 sm:$0xff]  }
 0x1ba   :  { %v1217_v45 = vadd.f32 %v1216_v52, %v9141_v22  ;;  %4027 = vmatprep.subr.bf16.mxu0 %v8255_v2  ;;  %4798 = vmatpush1.bf16.msra.mxu1 %v8277_v17  ;;  %v1986_v34 = vmax.f32 %v1404_v28, 0.0  ;;  %v1408_v50 = vadd.f32 %v1407_v42, %v9149_v8  ;;  %v1409_v54 = vpop.f32.mrb[27].mxu1  ;;  %v1985_v58 = vmax.f32 %v1213_v16, 0.0  ;;  %v8261_v17 = vld [vmem:[#allocation8 + $0x284] ss:$16 sps:$4 sm:$0xff]  }
 0x1bb   :  { %v1992_v55 = vmax.f32 %v1215_v39, 0.0  ;;  %3873 = vmatmul.mubr.bf16.gmra.mrb[132].mxu0 %v9187_v12  ;;  %4799 = vmatprep.subr.bf16.mxu1 %v8285_v14  ;;  %v1987_v26 = vmax.f32 %v1406_v41, 0.0  ;;  %v1410_v33 = vadd.f32 %v1409_v54, %v9153_v24  ;;  %v8286_v49 = vld [vmem:[#allocation8 + $0x268] ss:$16 sps:$4 sm:$0xff]   ;;  %v8259_v41 = vld [vmem:[#allocation8 + $0x280] ss:$16 sps:$4 sm:$0xff]  }
 0x1bc   :  { %v1993_v27 = vmax.f32 %v1217_v45, 0.0  ;;  %4645 = vmatmul.mubr.bf16.gmra.mrb[132].mxu1 %v9187_v12  ;;  %3882 = vmatprep.mubr.bf16.mxu0 %v9209_v59  ;;  %v1994_v61 = vmax.f32 %v1408_v50, 0.0 }
 0x1bd   :  { %v9286_v62 = vpack.c.bf16 %v1992_v55, %v1984_v35  ;;  %4654 = vmatprep.mubr.bf16.mxu1 %v9209_v59  ;;  %4028 = vmatpush1.bf16.msra.mxu0 %v8253_v30  ;;  %v1995_v63 = vmax.f32 %v1410_v33, 0.0 }
 0x1be   :  { %v9289_v32 = vpack.c.bf16 %v1993_v27, %v1985_v58  ;;  %v1220_v2 = vpop.f32.mrb[28].mxu0  ;;  %4029 = vmatprep.subr.bf16.mxu0 %v8258_v46  ;;  %4800 = vmatpush1.bf16.msra.mxu1 %v8283_v48  ;;  %v9291_v11 = vpack.c.bf16 %v1994_v61, %v1986_v34  ;;  %v8264_v48 = vld [vmem:[#allocation8 + $0x2a4] ss:$16 sps:$4 sm:$0xff]   ;;  %v8292_v34 = vld [vmem:[#allocation8 + $0x288] ss:$16 sps:$4 sm:$0xff]  }
 0x1bf   :  { %v1221_v12 = vadd.f32 %v1220_v2, %v9136_v19  ;;  %v1222_v14 = vpop.f32.mrb[29].mxu0  ;;  %4801 = vmatprep.subr.bf16.mxu1 %v8288_v56  ;;  %v9294_v16 = vpack.c.bf16 %v1995_v63, %v1987_v26  ;;  %v1413_v59 = vpop.f32.mrb[28].mxu1  ;;  %v8297_v26 = vld [vmem:[#allocation8 + $0x2ac] ss:$16 sps:$4 sm:$0xff]   ;;  %v8262_v2 = vld [vmem:[#allocation8 + $0x2a0] ss:$16 sps:$4 sm:$0xff]  }
 0x1c0   :  { %v1223_v36 = vadd.f32 %v1222_v14, %v9141_v22  ;;  %v1224_v28 = vpop.f32.mrb[30].mxu0  ;;  %v1414_v38 = vadd.f32 %v1413_v59, %v9149_v8  ;;  %v1415_v39 = vpop.f32.mrb[29].mxu1  ;;  %v8267_v14 = vld [vmem:[#allocation8 + $0x2c4] ss:$16 sps:$4 sm:$0xff]  }
 0x1c1   :  { %v1225_v52 = vadd.f32 %v1224_v28, %v9136_v19  ;;  %v1226_v30 = vpop.f32.mrb[31].mxu0  ;;  %4030 = vmatpush1.bf16.msra.mxu0 %v8256_v31  ;;  %v1416_v42 = vadd.f32 %v1415_v39, %v9153_v24  ;;  %v1417_v45 = vpop.f32.mrb[30].mxu1  ;;  %v2000_v55 = vmax.f32 %v1221_v12, 0.0  ;;  %v8303_v28 = vld [vmem:[#allocation8 + $0x2cc] ss:$16 sps:$4 sm:$0xff]  }
 0x1c2   :  { %v1227_v46 = vadd.f32 %v1226_v30, %v9141_v22  ;;  %4031 = vmatprep.subr.bf16.mxu0 %v8261_v17  ;;  %4802 = vmatpush1.bf16.msra.mxu1 %v8286_v49  ;;  %v2002_v50 = vmax.f32 %v1414_v38, 0.0  ;;  %v1418_v54 = vadd.f32 %v1417_v45, %v9149_v8  ;;  %v1419_v35 = vpop.f32.mrb[31].mxu1  ;;  %v2001_v27 = vmax.f32 %v1223_v36, 0.0 }
 0x1c3   :  { %v2008_v56 = vmax.f32 %v1225_v52, 0.0  ;;  %3883 = vmatmul.mubr.bf16.gmra.mrb[136].mxu0 %v9207_v57  ;;  %4803 = vmatprep.subr.bf16.mxu1 %v8294_v21  ;;  %v2003_v33 = vmax.f32 %v1416_v42, 0.0  ;;  %v1420_v58 = vadd.f32 %v1419_v35, %v9153_v24  ;;  %v8295_v21 = vld [vmem:[#allocation8 + $0x2a8] ss:$16 sps:$4 sm:$0xff]  }
 0x1c4   :  { %v2009_v61 = vmax.f32 %v1227_v46, 0.0  ;;  %4655 = vmatmul.mubr.bf16.gmra.mrb[136].mxu1 %v9207_v57  ;;  %3892 = vmatprep.mubr.bf16.mxu0 %v9229_v43  ;;  %v2010_v31 = vmax.f32 %v1418_v54, 0.0  ;;  %v8265_v46 = vld [vmem:[#allocation8 + $0x2c0] ss:$16 sps:$4 sm:$0xff]   ;;  %v8270_v54 = vld [vmem:[#allocation8 + $0x2e4] ss:$16 sps:$4 sm:$0xff]  }
 0x1c5   :  { %v9306_v63 = vpack.c.bf16 %v2008_v56, %v2000_v55  ;;  %4664 = vmatprep.mubr.bf16.mxu1 %v9229_v43  ;;  %4032 = vmatpush1.bf16.msra.mxu0 %v8259_v41  ;;  %v2011_v17 = vmax.f32 %v1420_v58, 0.0  ;;  %v8301_v35 = vld [vmem:[#allocation8 + $0x2c8] ss:$16 sps:$4 sm:$0xff]  }
 0x1c6   :  { %v9309_v49 = vpack.c.bf16 %v2009_v61, %v2001_v27  ;;  %v1230_v12 = vpop.f32.mrb[32].mxu0  ;;  %4033 = vmatprep.subr.bf16.mxu0 %v8264_v48  ;;  %4804 = vmatpush1.bf16.msra.mxu1 %v8292_v34  ;;  %v9311_v59 = vpack.c.bf16 %v2010_v31, %v2002_v50  ;;  %v8306_v27 = vld [vmem:[#allocation8 + $0x2ec] ss:$16 sps:$4 sm:$0xff]  }
 0x1c7   :  { %v1231_v57 = vadd.f32 %v1230_v12, %v9136_v19  ;;  %v1232_v36 = vpop.f32.mrb[33].mxu0  ;;  %4805 = vmatprep.subr.bf16.mxu1 %v8297_v26  ;;  %v9314_v38 = vpack.c.bf16 %v2011_v17, %v2003_v33  ;;  %v1423_v43 = vpop.f32.mrb[32].mxu1 }
 0x1c8   :  { %v1233_v39 = vadd.f32 %v1232_v36, %v9141_v22  ;;  %v1234_v52 = vpop.f32.mrb[34].mxu0  ;;  %v1424_v30 = vadd.f32 %v1423_v43, %v9149_v8  ;;  %v1425_v41 = vpop.f32.mrb[33].mxu1  ;;  %v8273_v43 = vld [vmem:[#allocation8 + $0x304] ss:$16 sps:$4 sm:$0xff]  }
 0x1c9   :  { %v1235_v42 = vadd.f32 %v1234_v52, %v9136_v19  ;;  %v1236_v45 = vpop.f32.mrb[35].mxu0  ;;  %4034 = vmatpush1.bf16.msra.mxu0 %v8262_v2  ;;  %v1426_v48 = vadd.f32 %v1425_v41, %v9153_v24  ;;  %v1427_v34 = vpop.f32.mrb[34].mxu1  ;;  %v2016_v33 = vmax.f32 %v1231_v57, 0.0  ;;  %v8312_v41 = vld [vmem:[#allocation8 + $0x30c] ss:$16 sps:$4 sm:$0xff]  }
 0x1ca   :  { %v1237_v50 = vadd.f32 %v1236_v45, %v9141_v22  ;;  %4035 = vmatprep.subr.bf16.mxu0 %v8267_v14  ;;  %4806 = vmatpush1.bf16.msra.mxu1 %v8295_v21  ;;  %v2018_v55 = vmax.f32 %v1424_v30, 0.0  ;;  %v1428_v56 = vadd.f32 %v1427_v34, %v9149_v8  ;;  %v1429_v26 = vpop.f32.mrb[35].mxu1  ;;  %v2017_v2 = vmax.f32 %v1233_v39, 0.0  ;;  %v8268_v21 = vld [vmem:[#allocation8 + $0x2e0] ss:$16 sps:$4 sm:$0xff]  }
 0x1cb   :  { %v2024_v58 = vmax.f32 %v1235_v42, 0.0  ;;  %3893 = vmatmul.mubr.bf16.gmra.mrb[140].mxu0 %v9227_v40  ;;  %4807 = vmatprep.subr.bf16.mxu1 %v8303_v28  ;;  %v2019_v61 = vmax.f32 %v1426_v48, 0.0  ;;  %v1430_v31 = vadd.f32 %v1429_v26, %v9153_v24  ;;  %v8304_v39 = vld [vmem:[#allocation8 + $0x2e8] ss:$16 sps:$4 sm:$0xff]  }
 0x1cc   :  { %v2025_v17 = vmax.f32 %v1237_v50, 0.0  ;;  %4665 = vmatmul.mubr.bf16.gmra.mrb[140].mxu1 %v9227_v40  ;;  %3902 = vmatprep.mubr.bf16.mxu0 %v9249_v10  ;;  %v2026_v12 = vmax.f32 %v1428_v56, 0.0 }
 0x1cd   :  { %v9326_v14 = vpack.c.bf16 %v2024_v58, %v2016_v33  ;;  %4674 = vmatprep.mubr.bf16.mxu1 %v9249_v10  ;;  %4036 = vmatpush1.bf16.msra.mxu0 %v8265_v46  ;;  %v2027_v57 = vmax.f32 %v1430_v31, 0.0  ;;  %v8282_v33 = vld [vmem:[#allocation8 + $0x324] ss:$16 sps:$4 sm:$0xff]   ;;  %v8310_v58 = vld [vmem:[#allocation8 + $0x308] ss:$16 sps:$4 sm:$0xff]  }
 0x1ce   :  { %v9329_v36 = vpack.c.bf16 %v2025_v17, %v2017_v2  ;;  %v1240_v28 = vpop.f32.mrb[36].mxu0  ;;  %4037 = vmatprep.subr.bf16.mxu0 %v8270_v54  ;;  %4808 = vmatpush1.bf16.msra.mxu1 %v8301_v35  ;;  %v9331_v52 = vpack.c.bf16 %v2026_v12, %v2018_v55  ;;  %v8271_v35 = vld [vmem:[#allocation8 + $0x300] ss:$16 sps:$4 sm:$0xff]   ;;  %v8315_v12 = vld [vmem:[#allocation8 + $0x32c] ss:$16 sps:$4 sm:$0xff]  }
 0x1cf   :  { %v1241_v40 = vadd.f32 %v1240_v28, %v9136_v19  ;;  %v1242_v30 = vpop.f32.mrb[37].mxu0  ;;  %4809 = vmatprep.subr.bf16.mxu1 %v8306_v27  ;;  %v9334_v42 = vpack.c.bf16 %v2027_v57, %v2019_v61  ;;  %v1433_v10 = vpop.f32.mrb[36].mxu1 }
 0x1d0   :  { %v1243_v45 = vadd.f32 %v1242_v30, %v9141_v22  ;;  %v1244_v46 = vpop.f32.mrb[38].mxu0  ;;  %v1434_v48 = vadd.f32 %v1433_v10, %v9149_v8  ;;  %v1435_v34 = vpop.f32.mrb[37].mxu1 }
 0x1d1   :  { %v1245_v50 = vadd.f32 %v1244_v46, %v9136_v19  ;;  %v1246_v54 = vpop.f32.mrb[39].mxu0  ;;  %4038 = vmatpush1.bf16.msra.mxu0 %v8268_v21  ;;  %v1436_v55 = vadd.f32 %v1435_v34, %v9153_v24  ;;  %v1437_v56 = vpop.f32.mrb[38].mxu1  ;;  %v2032_v2 = vmax.f32 %v1241_v40, 0.0  ;;  %v8280_v40 = vld [vmem:[#allocation8 + $0x320] ss:$16 sps:$4 sm:$0xff]  }
 0x1d2   :  { %v1247_v26 = vadd.f32 %v1246_v54, %v9141_v22  ;;  %4039 = vmatprep.subr.bf16.mxu0 %v8273_v43  ;;  %4810 = vmatpush1.bf16.msra.mxu1 %v8304_v39  ;;  %v2034_v27 = vmax.f32 %v1434_v48, 0.0  ;;  %v1438_v61 = vadd.f32 %v1437_v56, %v9149_v8  ;;  %v1439_v31 = vpop.f32.mrb[39].mxu1  ;;  %v2033_v28 = vmax.f32 %v1243_v45, 0.0  ;;  %v8291_v48 = vld [vmem:[#allocation8 + $0x344] ss:$16 sps:$4 sm:$0xff]  }
 0x1d3   :  { %v2040_v17 = vmax.f32 %v1245_v50, 0.0  ;;  %3903 = vmatmul.mubr.bf16.gmra.mrb[144].mxu0 %v9246_v7  ;;  %4811 = vmatprep.subr.bf16.mxu1 %v8312_v41  ;;  %v2035_v21 = vmax.f32 %v1436_v55, 0.0  ;;  %v1440_v57 = vadd.f32 %v1439_v31, %v9153_v24  ;;  %v8313_v45 = vld [vmem:[#allocation8 + $0x328] ss:$16 sps:$4 sm:$0xff]   ;;  %v8321_v54 = vld [vmem:[#allocation8 + $0x34c] ss:$16 sps:$4 sm:$0xff]  }
 0x1d4   :  { %v2041_v30 = vmax.f32 %v1247_v26, 0.0  ;;  %4675 = vmatmul.mubr.bf16.gmra.mrb[144].mxu1 %v9246_v7  ;;  %3912 = vmatprep.mubr.bf16.mxu0 %v9269_v0  ;;  %v2042_v43 = vmax.f32 %v1438_v61, 0.0 }
 0x1d5   :  { %v9346_v39 = vpack.c.bf16 %v2040_v17, %v2032_v2  ;;  %4684 = vmatprep.mubr.bf16.mxu1 %v9269_v0  ;;  %4040 = vmatpush1.bf16.msra.mxu0 %v8271_v35  ;;  %v2043_v10 = vmax.f32 %v1440_v57, 0.0 }
 0x1d6   :  { %v9349_v46 = vpack.c.bf16 %v2041_v30, %v2033_v28  ;;  %v1250_v41 = vpop.f32.mrb[40].mxu0  ;;  %4041 = vmatprep.subr.bf16.mxu0 %v8282_v33  ;;  %4812 = vmatpush1.bf16.msra.mxu1 %v8310_v58  ;;  %v9351_v34 = vpack.c.bf16 %v2042_v43, %v2034_v27  ;;  %v8289_v27 = vld [vmem:[#allocation8 + $0x340] ss:$16 sps:$4 sm:$0xff]  }
 0x1d7   :  { %v1251_v7 = vadd.f32 %v1250_v41, %v9136_v19  ;;  %v1252_v50 = vpop.f32.mrb[41].mxu0  ;;  %4813 = vmatprep.subr.bf16.mxu1 %v8315_v12  ;;  %v9354_v55 = vpack.c.bf16 %v2043_v10, %v2035_v21  ;;  %v1443_v0 = vpop.f32.mrb[40].mxu1  ;;  %v8300_v12 = vld [vmem:[#allocation8 + $0x364] ss:$16 sps:$4 sm:$0xff]   ;;  %v8319_v21 = vld [vmem:[#allocation8 + $0x348] ss:$16 sps:$4 sm:$0xff]  }
 0x1d8   :  { %v1253_v35 = vadd.f32 %v1252_v50, %v9141_v22  ;;  %v1254_v56 = vpop.f32.mrb[42].mxu0  ;;  %v1444_v26 = vadd.f32 %v1443_v0, %v9149_v8  ;;  %v1445_v61 = vpop.f32.mrb[41].mxu1 }
 0x1d9   :  { %v1255_v33 = vadd.f32 %v1254_v56, %v9136_v19  ;;  %v1256_v58 = vpop.f32.mrb[43].mxu0  ;;  %4042 = vmatpush1.bf16.msra.mxu0 %v8280_v40  ;;  %v1446_v31 = vadd.f32 %v1445_v61, %v9153_v24  ;;  %v1447_v2 = vpop.f32.mrb[42].mxu1  ;;  %v2048_v43 = vmax.f32 %v1251_v7, 0.0  ;;  %v8324_v40 = vld [vmem:[#allocation8 + $0x36c] ss:$16 sps:$4 sm:$0xff]  }
 0x1da   :  { %v1257_v17 = vadd.f32 %v1256_v58, %v9141_v22  ;;  %4043 = vmatprep.subr.bf16.mxu0 %v8291_v48  ;;  %4814 = vmatpush1.bf16.msra.mxu1 %v8313_v45  ;;  %v2050_v57 = vmax.f32 %v1444_v26, 0.0  ;;  %v1448_v28 = vadd.f32 %v1447_v2, %v9149_v8  ;;  %v1449_v30 = vpop.f32.mrb[43].mxu1  ;;  %v2049_v0 = vmax.f32 %v1253_v35, 0.0  ;;  %v8298_v7 = vld [vmem:[#allocation8 + $0x360] ss:$16 sps:$4 sm:$0xff]  }
 0x1db   :  { %v2056_v10 = vmax.f32 %v1255_v33, 0.0  ;;  %3913 = vmatmul.mubr.bf16.gmra.mrb[148].mxu0 %v9266_v47  ;;  %4815 = vmatprep.subr.bf16.mxu1 %v8321_v54  ;;  %v2051_v41 = vmax.f32 %v1446_v31, 0.0  ;;  %v1450_v50 = vadd.f32 %v1449_v30, %v9153_v24  ;;  %v8309_v33 = vld [vmem:[#allocation8 + $0x384] ss:$16 sps:$4 sm:$0xff]   ;;  %v8322_v35 = vld [vmem:[#allocation8 + $0x368] ss:$16 sps:$4 sm:$0xff]  }
 0x1dc   :  { %v2057_v56 = vmax.f32 %v1257_v17, 0.0  ;;  %4685 = vmatmul.mubr.bf16.gmra.mrb[148].mxu1 %v9266_v47  ;;  %3922 = vmatprep.mubr.bf16.mxu0 %v9289_v32  ;;  %v2058_v48 = vmax.f32 %v1448_v28, 0.0  ;;  %v8330_v2 = vld [vmem:[#allocation8 + $0x38c] ss:$16 sps:$4 sm:$0xff]  }
 0x1dd   :  { %v9366_v45 = vpack.c.bf16 %v2056_v10, %v2048_v43  ;;  %4694 = vmatprep.mubr.bf16.mxu1 %v9289_v32  ;;  %4044 = vmatpush1.bf16.msra.mxu0 %v8289_v27  ;;  %v2059_v26 = vmax.f32 %v1450_v50, 0.0 }
 0x1de   :  { %v9369_v61 = vpack.c.bf16 %v2057_v56, %v2049_v0  ;;  %v1260_v54 = vpop.f32.mrb[44].mxu0  ;;  %4045 = vmatprep.subr.bf16.mxu0 %v8300_v12  ;;  %4816 = vmatpush1.bf16.msra.mxu1 %v8319_v21  ;;  %v9371_v58 = vpack.c.bf16 %v2058_v48, %v2050_v57  ;;  %v8307_v57 = vld [vmem:[#allocation8 + $0x380] ss:$16 sps:$4 sm:$0xff]   ;;  %v8328_v0 = vld [vmem:[#allocation8 + $0x388] ss:$16 sps:$4 sm:$0xff]  }
 0x1df   :  { %v1261_v47 = vadd.f32 %v1260_v54, %v9136_v19  ;;  %v1262_v31 = vpop.f32.mrb[45].mxu0  ;;  %4817 = vmatprep.subr.bf16.mxu1 %v8324_v40  ;;  %v9374_v17 = vpack.c.bf16 %v2059_v26, %v2051_v41  ;;  %v1453_v32 = vpop.f32.mrb[44].mxu1  ;;  %v8318_v41 = vld [vmem:[#allocation8 + $0x3a4] ss:$16 sps:$4 sm:$0xff]  }
 0x1e0   :  { %v1263_v27 = vadd.f32 %v1262_v31, %v9141_v22  ;;  %v1264_v28 = vpop.f32.mrb[46].mxu0  ;;  %v1454_v30 = vadd.f32 %v1453_v32, %v9149_v8  ;;  %v1455_v43 = vpop.f32.mrb[45].mxu1 }
 0x1e1   :  { %v1265_v12 = vadd.f32 %v1264_v28, %v9136_v19  ;;  %v1266_v21 = vpop.f32.mrb[47].mxu0  ;;  %4046 = vmatpush1.bf16.msra.mxu0 %v8298_v7  ;;  %v1456_v10 = vadd.f32 %v1455_v43, %v9153_v24  ;;  %v1457_v50 = vpop.f32.mrb[46].mxu1  ;;  %v2064_v54 = vmax.f32 %v1261_v47, 0.0  ;;  %v8333_v7 = vld [vmem:[#allocation8 + $0x3ac] ss:$16 sps:$4 sm:$0xff]  }
 0x1e2   :  { %v1267_v40 = vadd.f32 %v1266_v21, %v9141_v22  ;;  %4047 = vmatprep.subr.bf16.mxu0 %v8309_v33  ;;  %4818 = vmatpush1.bf16.msra.mxu1 %v8322_v35  ;;  %v2066_v56 = vmax.f32 %v1454_v30, 0.0  ;;  %v1458_v48 = vadd.f32 %v1457_v50, %v9149_v8  ;;  %v1459_v26 = vpop.f32.mrb[47].mxu1  ;;  %v2065_v43 = vmax.f32 %v1263_v27, 0.0  ;;  %v8316_v47 = vld [vmem:[#allocation8 + $0x3a0] ss:$16 sps:$4 sm:$0xff]  }
 0x1e3   :  { %v2072_v31 = vmax.f32 %v1265_v12, 0.0  ;;  %3923 = vmatmul.mubr.bf16.gmra.mrb[152].mxu0 %v9286_v62  ;;  %4819 = vmatprep.subr.bf16.mxu1 %v8330_v2  ;;  %v2067_v32 = vmax.f32 %v1456_v10, 0.0  ;;  %v1460_v28 = vadd.f32 %v1459_v26, %v9153_v24  ;;  %v8327_v21 = vld [vmem:[#allocation8 + $0x3c4] ss:$16 sps:$4 sm:$0xff]   ;;  %v8331_v27 = vld [vmem:[#allocation8 + $0x3a8] ss:$16 sps:$4 sm:$0xff]  }
 0x1e4   :  { %v2073_v1 = vmax.f32 %v1267_v40, 0.0  ;;  %4695 = vmatmul.mubr.bf16.gmra.mrb[152].mxu1 %v9286_v62  ;;  %3932 = vmatprep.mubr.bf16.mxu0 %v9309_v49  ;;  %v2074_v33 = vmax.f32 %v1458_v48, 0.0  ;;  %v8339_v40 = vld [vmem:[#allocation8 + $0x3cc] ss:$16 sps:$4 sm:$0xff]  }
 0x1e5   :  { %v9386_v35 = vpack.c.bf16 %v2072_v31, %v2064_v54  ;;  %4704 = vmatprep.mubr.bf16.mxu1 %v9309_v49  ;;  %4048 = vmatpush1.bf16.msra.mxu0 %v8307_v57  ;;  %v2075_v30 = vmax.f32 %v1460_v28, 0.0 }
 0x1e6   :  { %v9389_v12 = vpack.c.bf16 %v2073_v1, %v2065_v43  ;;  %v1270_v2 = vpop.f32.mrb[48].mxu0  ;;  %4049 = vmatprep.subr.bf16.mxu0 %v8318_v41  ;;  %4820 = vmatpush1.bf16.msra.mxu1 %v8328_v0  ;;  %v9391_v10 = vpack.c.bf16 %v2074_v33, %v2066_v56  ;;  %v8325_v56 = vld [vmem:[#allocation8 + $0x3c0] ss:$16 sps:$4 sm:$0xff]   ;;  %v8337_v43 = vld [vmem:[#allocation8 + $0x3c8] ss:$16 sps:$4 sm:$0xff]  }
 0x1e7   :  { %v1271_v62 = vadd.f32 %v1270_v2, %v9136_v19  ;;  %v1272_v50 = vpop.f32.mrb[49].mxu0  ;;  %4821 = vmatprep.subr.bf16.mxu1 %v8333_v7  ;;  %v9394_v48 = vpack.c.bf16 %v2075_v30, %v2067_v32  ;;  %v1463_v49 = vpop.f32.mrb[48].mxu1  ;;  %v8336_v32 = vld [vmem:[#allocation8 + $0x3e4] ss:$16 sps:$4 sm:$0xff]  }
 0x1e8   :  { %v1273_v57 = vadd.f32 %v1272_v50, %v9141_v22  ;;  %v1274_v26 = vpop.f32.mrb[50].mxu0  ;;  %v1464_v1 = vadd.f32 %v1463_v49, %v9149_v8  ;;  %v1465_v54 = vpop.f32.mrb[49].mxu1 }
 0x1e9   :  { %v1275_v41 = vadd.f32 %v1274_v26, %v9136_v19  ;;  %v1276_v0 = vpop.f32.mrb[51].mxu0  ;;  %4050 = vmatpush1.bf16.msra.mxu0 %v8316_v47  ;;  %v1466_v31 = vadd.f32 %v1465_v54, %v9153_v24  ;;  %v1467_v28 = vpop.f32.mrb[50].mxu1  ;;  %v2080_v50 = vmax.f32 %v1271_v62, 0.0  ;;  %v8342_v47 = vld [vmem:[#allocation8 + $0x3ec] ss:$16 sps:$4 sm:$0xff]  }
 0x1ea   :  { %v1277_v7 = vadd.f32 %v1276_v0, %v9141_v22  ;;  %4051 = vmatprep.subr.bf16.mxu0 %v8327_v21  ;;  %4822 = vmatpush1.bf16.msra.mxu1 %v8331_v27  ;;  %v2082_v33 = vmax.f32 %v1464_v1, 0.0  ;;  %v1468_v30 = vadd.f32 %v1467_v28, %v9149_v8  ;;  %v1469_v2 = vpop.f32.mrb[51].mxu1  ;;  %v2081_v6 = vmax.f32 %v1273_v57, 0.0  ;;  %v8334_v62 = vld [vmem:[#allocation8 + $0x3e0] ss:$16 sps:$4 sm:$0xff]  }
 0x1eb   :  { %v2088_v49 = vmax.f32 %v1275_v41, 0.0  ;;  %3933 = vmatmul.mubr.bf16.gmra.mrb[156].mxu0 %v9306_v63  ;;  %4823 = vmatprep.subr.bf16.mxu1 %v8339_v40  ;;  %v2083_v26 = vmax.f32 %v1466_v31, 0.0  ;;  %v1470_v54 = vadd.f32 %v1469_v2, %v9153_v24  ;;  %v8340_v0 = vld [vmem:[#allocation8 + $0x3e8] ss:$16 sps:$4 sm:$0xff]   ;;  %v8345_v57 = vld [vmem:[#allocation8 + $0x404] ss:$16 sps:$4 sm:$0xff]  }
 0x1ec   :  { %v2089_v4 = vmax.f32 %v1277_v7, 0.0  ;;  %4705 = vmatmul.mubr.bf16.gmra.mrb[156].mxu1 %v9306_v63  ;;  %3942 = vmatprep.mubr.bf16.mxu0 %v9329_v36  ;;  %v2090_v21 = vmax.f32 %v1468_v30, 0.0 }
 0x1ed   :  { %v9406_v27 = vpack.c.bf16 %v2088_v49, %v2080_v50  ;;  %4714 = vmatprep.mubr.bf16.mxu1 %v9329_v36  ;;  %4052 = vmatpush1.bf16.msra.mxu0 %v8325_v56  ;;  %v2091_v1 = vmax.f32 %v1470_v54, 0.0  ;;  %v8372_v54 = vld [vmem:[#allocation8 + $0x40c] ss:$16 sps:$4 sm:$0xff]  }
 0x1ee   :  { %v9409_v41 = vpack.c.bf16 %v2089_v4, %v2081_v6  ;;  %v1280_v40 = vpop.f32.mrb[52].mxu0  ;;  %4053 = vmatprep.subr.bf16.mxu0 %v8336_v32  ;;  %4824 = vmatpush1.bf16.msra.mxu1 %v8337_v43  ;;  %v9411_v31 = vpack.c.bf16 %v2090_v21, %v2082_v33 }
 0x1ef   :  { %v1281_v63 = vadd.f32 %v1280_v40, %v9136_v19  ;;  %v1282_v28 = vpop.f32.mrb[53].mxu0  ;;  %4825 = vmatprep.subr.bf16.mxu1 %v8342_v47  ;;  %v9414_v7 = vpack.c.bf16 %v2091_v1, %v2083_v26  ;;  %v1473_v30 = vpop.f32.mrb[52].mxu1 }
 0x1f0   :  { %v1283_v36 = vadd.f32 %v1282_v28, %v9141_v22  ;;  %v1284_v56 = vpop.f32.mrb[54].mxu0  ;;  %v1474_v4 = vadd.f32 %v1473_v30, %v9149_v8  ;;  %v1475_v6 = vpop.f32.mrb[53].mxu1 }
 0x1f1   :  { %v1285_v32 = vadd.f32 %v1284_v56, %v9136_v19  ;;  %v1286_v43 = vpop.f32.mrb[55].mxu0  ;;  %4054 = vmatpush1.bf16.msra.mxu0 %v8334_v62  ;;  %v1476_v33 = vadd.f32 %v1475_v6, %v9153_v24  ;;  %v1477_v2 = vpop.f32.mrb[54].mxu1  ;;  %v2096_v21 = vmax.f32 %v1281_v63, 0.0 }
 0x1f2   :  { %v1287_v50 = vadd.f32 %v1286_v43, %v9141_v22  ;;  %4826 = vmatpush1.bf16.msra.mxu1 %v8340_v0  ;;  %4216 = vmatprep.subr.bf16.mxu0 %v8345_v57  ;;  %v2098_v49 = vmax.f32 %v1474_v4, 0.0  ;;  %v1478_v47 = vadd.f32 %v1477_v2, %v9149_v8  ;;  %v1479_v26 = vpop.f32.mrb[55].mxu1  ;;  %v2097_v62 = vmax.f32 %v1283_v36, 0.0 }
 0x1f3   :  { %v2104_v1 = vmax.f32 %v1285_v32, 0.0  ;;  %3943 = vmatmul.mubr.bf16.gmra.mrb[160].mxu0 %v9326_v14  ;;  %v2099_v40 = vmax.f32 %v1476_v33, 0.0  ;;  %v1480_v28 = vadd.f32 %v1479_v26, %v9153_v24  ;;  %4988 = vmatprep.subr.bf16.mxu1 %v8372_v54 }
 0x1f4   :  { %v2105_v30 = vmax.f32 %v1287_v50, 0.0  ;;  %4715 = vmatmul.mubr.bf16.gmra.mrb[160].mxu1 %v9326_v14  ;;  %3952 = vmatprep.mubr.bf16.mxu0 %v9349_v46  ;;  %v2106_v0 = vmax.f32 %v1478_v47, 0.0 }
 0x1f5   :  { %v9426_v57 = vpack.c.bf16 %v2104_v1, %v2096_v21  ;;  %4724 = vmatprep.mubr.bf16.mxu1 %v9349_v46  ;;  %v2107_v56 = vmax.f32 %v1480_v28, 0.0 }
 0x1f6   :  { %v9429_v63 = vpack.c.bf16 %v2105_v30, %v2097_v62  ;;  %v1290_v4 = vpop.f32.mrb[56].mxu0  ;;  %v9431_v6 = vpack.c.bf16 %v2106_v0, %v2098_v49 }
 0x1f7   :  { %v1291_v32 = vadd.f32 %v1290_v4, %v9136_v19  ;;  %v1292_v36 = vpop.f32.mrb[57].mxu0  ;;  %v9434_v43 = vpack.c.bf16 %v2107_v56, %v2099_v40  ;;  %v1483_v14 = vpop.f32.mrb[56].mxu1 }
 0x1f8   :  { %v1293_v33 = vadd.f32 %v1292_v36, %v9141_v22  ;;  %v1294_v2 = vpop.f32.mrb[58].mxu0  ;;  %v1484_v50 = vadd.f32 %v1483_v14, %v9149_v8  ;;  %v1485_v47 = vpop.f32.mrb[57].mxu1 }
 0x1f9   :  { %v1295_v46 = vadd.f32 %v1294_v2, %v9136_v19  ;;  %v1296_v26 = vpop.f32.mrb[59].mxu0  ;;  %v1486_v54 = vadd.f32 %v1485_v47, %v9153_v24  ;;  %v1487_v21 = vpop.f32.mrb[58].mxu1  ;;  %v2112_v62 = vmax.f32 %v1291_v32, 0.0  ;;  %v298_v32 = vsub.s32 5, %v9126_v5 }
 0x1fa   :  { %v1297_v49 = vadd.f32 %v1296_v26, %v9141_v22  ;;  %v2114_v1 = vmax.f32 %v1484_v50, 0.0  ;;  %v1488_v28 = vadd.f32 %v1487_v21, %v9149_v8  ;;  %v1489_v40 = vpop.f32.mrb[59].mxu1  ;;  %v2113_v4 = vmax.f32 %v1293_v33, 0.0 }
 0x1fb   :  { %v2120_v30 = vmax.f32 %v1295_v46, 0.0  ;;  %3953 = vmatmul.mubr.bf16.gmra.mrb[164].mxu0 %v9346_v39  ;;  %v2115_v0 = vmax.f32 %v1486_v54, 0.0  ;;  %v1490_v56 = vadd.f32 %v1489_v40, %v9153_v24  ;;  %v294_v50 = vsub.s32 4, %v9126_v5 }
 0x1fc   :  { %v2121_v36 = vmax.f32 %v1297_v49, 0.0  ;;  %4725 = vmatmul.mubr.bf16.gmra.mrb[164].mxu1 %v9346_v39  ;;  %3962 = vmatprep.mubr.bf16.mxu0 %v9369_v61  ;;  %v2122_v14 = vmax.f32 %v1488_v28, 0.0 }
 0x1fd   :  { %v9446_v2 = vpack.c.bf16 %v2120_v30, %v2112_v62  ;;  %4734 = vmatprep.mubr.bf16.mxu1 %v9369_v61  ;;  %v2123_v47 = vmax.f32 %v1490_v56, 0.0 }
 0x1fe   :  { %v9451_v46 = vpack.c.bf16 %v2121_v36, %v2113_v4  ;;  %v1300_v26 = vpop.f32.mrb[60].mxu0  ;;  %v9453_v54 = vpack.c.bf16 %v2122_v14, %v2114_v1  ;;  %v8713_v4 = vld [vmem:[#allocation7] sm:$0xff] }
 0x1ff   :  { %v1301_v33 = vadd.f32 %v1300_v26, %v9136_v19  ;;  %v1302_v39 = vpop.f32.mrb[61].mxu0  ;;  %v9456_v21 = vpack.c.bf16 %v2123_v47, %v2115_v0  ;;  %v1493_v49 = vpop.f32.mrb[60].mxu1  ;;  %v9461_v36 = vrot.slane %v8713_v4, %v294_v50  ;;  %v9463_v1 = vrot.slane %v8713_v4, %v298_v32 }
 0x200   :  { %10753 = vst [vmem:[#allocation20_spill] sm:$0xff] %v9453_v54  ;;  %v1303_v28 = vadd.f32 %v1302_v39, %v9141_v22  ;;  %v1304_v40 = vpop.f32.mrb[62].mxu0  ;;  %v1494_v61 = vadd.f32 %v1493_v49, %v9149_v8  ;;  %v1495_v62 = vpop.f32.mrb[61].mxu1 }
 0x201   :  { %v1305_v30 = vadd.f32 %v1304_v40, %v9136_v19  ;;  %v1306_v56 = vpop.f32.mrb[63].mxu0  ;;  %v1496_v14 = vadd.f32 %v1495_v62, %v9153_v24  ;;  %v1497_v26 = vpop.f32.mrb[62].mxu1  ;;  %v2128_v0 = vmax.f32 %v1301_v33, 0.0  ;;  %v302_v33 = vsub.s32 6, %v9126_v5 }
 0x202   :  { %v1307_v47 = vadd.f32 %v1306_v56, %v9141_v22  ;;  %v2130_v23 = vmax.f32 %v1494_v61, 0.0  ;;  %v1498_v39 = vadd.f32 %v1497_v26, %v9149_v8  ;;  %v1499_v3 = vpop.f32.mrb[63].mxu1  ;;  %v2129_v49 = vmax.f32 %v1303_v28, 0.0 }
 0x203   :  { %v2136_v54 = vmax.f32 %v1305_v30, 0.0  ;;  %3963 = vmatmul.mubr.bf16.gmra.mrb[168].mxu0 %v9366_v45  ;;  %v2131_v19 = vmax.f32 %v1496_v14, 0.0  ;;  %v1500_v50 = vadd.f32 %v1499_v3, %v9153_v24  ;;  %v306_v22 = vsub.s32 7, %v9126_v5 }
 0x204   :  { %v2137_v40 = vmax.f32 %v1307_v47, 0.0  ;;  %4735 = vmatmul.mubr.bf16.gmra.mrb[168].mxu1 %v9366_v45  ;;  %3972 = vmatprep.mubr.bf16.mxu0 %v9389_v12  ;;  %v2138_v32 = vmax.f32 %v1498_v39, 0.0  ;;  %v9481_v3 = vrot.slane %v8713_v4, %v302_v33 }
 0x205   :  { %v9474_v61 = vpack.c.bf16 %v2136_v54, %v2128_v0  ;;  %4744 = vmatprep.mubr.bf16.mxu1 %v9389_v12  ;;  %v2139_v8 = vmax.f32 %v1500_v50, 0.0  ;;  %v9483_v24 = vrot.slane %v8713_v4, %v306_v22 }
 0x206   :  { %v9477_v28 = vpack.c.bf16 %v2137_v40, %v2129_v49  ;;  %v1536_v62 = vpop.f32.mrb[64].mxu0  ;;  %v9479_v30 = vpack.c.bf16 %v2138_v32, %v2130_v23 }
 0x207   :  { %v1537_v45 = vadd.f32 %v1536_v62, %v9461_v36  ;;  %v1538_v56 = vpop.f32.mrb[65].mxu0  ;;  %v9486_v14 = vpack.c.bf16 %v2139_v8, %v2131_v19  ;;  %v1729_v26 = vpop.f32.mrb[64].mxu1 }
 0x208   :  { %v1539_v54 = vadd.f32 %v1538_v56, %v9463_v1  ;;  %v1540_v0 = vpop.f32.mrb[66].mxu0  ;;  %v1730_v12 = vadd.f32 %v1729_v26, %v9481_v3  ;;  %v1731_v47 = vpop.f32.mrb[65].mxu1 }
 0x209   :  { %v1541_v39 = vadd.f32 %v1540_v0, %v9461_v36  ;;  %v1542_v23 = vpop.f32.mrb[67].mxu0  ;;  %v1732_v49 = vadd.f32 %v1731_v47, %v9483_v24  ;;  %v1733_v50 = vpop.f32.mrb[66].mxu1  ;;  %v1892_v33 = vmax.f32 %v1537_v45, 0.0 }
 0x20a   :  { %v1543_v4 = vadd.f32 %v1542_v23, %v9463_v1  ;;  %v1894_v40 = vmax.f32 %v1730_v12, 0.0  ;;  %v1734_v32 = vadd.f32 %v1733_v50, %v9481_v3  ;;  %v1735_v19 = vpop.f32.mrb[67].mxu1  ;;  %v1893_v56 = vmax.f32 %v1539_v54, 0.0 }
 0x20b   :  { %v1900_v22 = vmax.f32 %v1541_v39, 0.0  ;;  %3973 = vmatmul.mubr.bf16.gmra.mrb[172].mxu0 %v9386_v35  ;;  %v1895_v8 = vmax.f32 %v1732_v49, 0.0  ;;  %v1736_v62 = vadd.f32 %v1735_v19, %v9483_v24 }
 0x20c   :  { %v1901_v26 = vmax.f32 %v1543_v4, 0.0  ;;  %4745 = vmatmul.mubr.bf16.gmra.mrb[172].mxu1 %v9386_v35  ;;  %3982 = vmatprep.mubr.bf16.mxu0 %v9409_v41  ;;  %v1902_v0 = vmax.f32 %v1734_v32, 0.0 }
 0x20d   :  { %v9498_v47 = vpack.c.bf16 %v1900_v22, %v1892_v33  ;;  %4754 = vmatprep.mubr.bf16.mxu1 %v9409_v41  ;;  %v1903_v12 = vmax.f32 %v1736_v62, 0.0 }
 0x20e   :  { %v9501_v23 = vpack.c.bf16 %v1901_v26, %v1893_v56  ;;  %v1546_v45 = vpop.f32.mrb[68].mxu0  ;;  %v9503_v39 = vpack.c.bf16 %v1902_v0, %v1894_v40 }
 0x20f   :  { %v1547_v49 = vadd.f32 %v1546_v45, %v9461_v36  ;;  %v1548_v50 = vpop.f32.mrb[69].mxu0  ;;  %v9506_v54 = vpack.c.bf16 %v1903_v12, %v1895_v8  ;;  %v1739_v4 = vpop.f32.mrb[68].mxu1 }
 0x210   :  { %10754 = vst [vmem:[#allocation21_spill] sm:$0xff] %v9503_v39  ;;  %v1549_v35 = vadd.f32 %v1548_v50, %v9463_v1  ;;  %v1550_v19 = vpop.f32.mrb[70].mxu0  ;;  %v1740_v32 = vadd.f32 %v1739_v4, %v9481_v3  ;;  %v1741_v33 = vpop.f32.mrb[69].mxu1 }
 0x211   :  { %10755 = vst [vmem:[#allocation22_spill] sm:$0xff] %v9506_v54  ;;  %v1551_v41 = vadd.f32 %v1550_v19, %v9461_v36  ;;  %v1552_v22 = vpop.f32.mrb[71].mxu0  ;;  %v1742_v62 = vadd.f32 %v1741_v33, %v9483_v24  ;;  %v1743_v56 = vpop.f32.mrb[70].mxu1  ;;  %v1908_v12 = vmax.f32 %v1547_v49, 0.0 }
 0x212   :  { %v1553_v40 = vadd.f32 %v1552_v22, %v9463_v1  ;;  %v1910_v26 = vmax.f32 %v1740_v32, 0.0  ;;  %v1744_v0 = vadd.f32 %v1743_v56, %v9481_v3  ;;  %v1745_v8 = vpop.f32.mrb[71].mxu1  ;;  %v1909_v5 = vmax.f32 %v1549_v35, 0.0 }
 0x213   :  { %v1916_v45 = vmax.f32 %v1551_v41, 0.0  ;;  %3983 = vmatmul.mubr.bf16.gmra.mrb[176].mxu0 %v9406_v27  ;;  %v1911_v50 = vmax.f32 %v1742_v62, 0.0  ;;  %v1746_v4 = vadd.f32 %v1745_v8, %v9483_v24 }
 0x214   :  { %v1917_v39 = vmax.f32 %v1553_v40, 0.0  ;;  %4755 = vmatmul.mubr.bf16.gmra.mrb[176].mxu1 %v9406_v27  ;;  %3992 = vmatprep.mubr.bf16.mxu0 %v9429_v63  ;;  %v1918_v19 = vmax.f32 %v1744_v0, 0.0 }
 0x215   :  { %v9518_v33 = vpack.c.bf16 %v1916_v45, %v1908_v12  ;;  %4764 = vmatprep.mubr.bf16.mxu1 %v9429_v63  ;;  %v1919_v32 = vmax.f32 %v1746_v4, 0.0 }
 0x216   :  { %v9521_v22 = vpack.c.bf16 %v1917_v39, %v1909_v5  ;;  %v1556_v49 = vpop.f32.mrb[72].mxu0  ;;  %v9523_v41 = vpack.c.bf16 %v1918_v19, %v1910_v26 }
 0x217   :  { %v1557_v62 = vadd.f32 %v1556_v49, %v9461_v36  ;;  %v1558_v56 = vpop.f32.mrb[73].mxu0  ;;  %v9526_v35 = vpack.c.bf16 %v1919_v32, %v1911_v50  ;;  %v1749_v40 = vpop.f32.mrb[72].mxu1 }
 0x218   :  { %10756 = vst [vmem:[#allocation23_spill] sm:$0xff] %v9523_v41  ;;  %v1559_v27 = vadd.f32 %v1558_v56, %v9463_v1  ;;  %v1560_v8 = vpop.f32.mrb[74].mxu0  ;;  %v1750_v0 = vadd.f32 %v1749_v40, %v9481_v3  ;;  %v1751_v12 = vpop.f32.mrb[73].mxu1 }
 0x219   :  { %10757 = vst [vmem:[#allocation24_spill] sm:$0xff] %v9526_v35  ;;  %v1561_v63 = vadd.f32 %v1560_v8, %v9461_v36  ;;  %v1562_v45 = vpop.f32.mrb[75].mxu0  ;;  %v1752_v5 = vadd.f32 %v1751_v12, %v9483_v24  ;;  %v1753_v39 = vpop.f32.mrb[74].mxu1  ;;  %v1924_v32 = vmax.f32 %v1557_v62, 0.0 }
 0x21a   :  { %v1563_v26 = vadd.f32 %v1562_v45, %v9463_v1  ;;  %v1926_v4 = vmax.f32 %v1750_v0, 0.0  ;;  %v1754_v19 = vadd.f32 %v1753_v39, %v9481_v3  ;;  %v1755_v50 = vpop.f32.mrb[75].mxu1  ;;  %v1925_v41 = vmax.f32 %v1559_v27, 0.0 }
 0x21b   :  { %v1932_v49 = vmax.f32 %v1561_v63, 0.0  ;;  %3993 = vmatmul.mubr.bf16.gmra.mrb[180].mxu0 %v9426_v57  ;;  %v1927_v56 = vmax.f32 %v1752_v5, 0.0  ;;  %v1756_v40 = vadd.f32 %v1755_v50, %v9483_v24 }
 0x21c   :  { %v1933_v35 = vmax.f32 %v1563_v26, 0.0  ;;  %4765 = vmatmul.mubr.bf16.gmra.mrb[180].mxu1 %v9426_v57  ;;  %4002 = vmatprep.mubr.bf16.mxu0 %v9451_v46  ;;  %v1934_v8 = vmax.f32 %v1754_v19, 0.0 }
 0x21d   :  { %v9538_v12 = vpack.c.bf16 %v1932_v49, %v1924_v32  ;;  %4774 = vmatprep.mubr.bf16.mxu1 %v9451_v46  ;;  %v1935_v0 = vmax.f32 %v1756_v40, 0.0 }
 0x21e   :  { %v9541_v45 = vpack.c.bf16 %v1933_v35, %v1925_v41  ;;  %v1566_v62 = vpop.f32.mrb[76].mxu0  ;;  %v9543_v63 = vpack.c.bf16 %v1934_v8, %v1926_v4 }
 0x21f   :  { %v1567_v5 = vadd.f32 %v1566_v62, %v9461_v36  ;;  %v1568_v39 = vpop.f32.mrb[77].mxu0  ;;  %v9546_v27 = vpack.c.bf16 %v1935_v0, %v1927_v56  ;;  %v1759_v26 = vpop.f32.mrb[76].mxu1 }
 0x220   :  { %10758 = vst [vmem:[#allocation25_spill] sm:$0xff] %v9543_v63  ;;  %v1569_v57 = vadd.f32 %v1568_v39, %v9463_v1  ;;  %v1570_v50 = vpop.f32.mrb[78].mxu0  ;;  %v1760_v19 = vadd.f32 %v1759_v26, %v9481_v3  ;;  %v1761_v32 = vpop.f32.mrb[77].mxu1 }
 0x221   :  { %10759 = vst [vmem:[#allocation26_spill] sm:$0xff] %v9546_v27  ;;  %v1571_v46 = vadd.f32 %v1570_v50, %v9461_v36  ;;  %v1572_v49 = vpop.f32.mrb[79].mxu0  ;;  %v1762_v41 = vadd.f32 %v1761_v32, %v9483_v24  ;;  %v1763_v35 = vpop.f32.mrb[78].mxu1  ;;  %v1940_v0 = vmax.f32 %v1567_v5, 0.0 }
 0x222   :  { %v1573_v4 = vadd.f32 %v1572_v49, %v9463_v1  ;;  %v1942_v40 = vmax.f32 %v1760_v19, 0.0  ;;  %v1764_v8 = vadd.f32 %v1763_v35, %v9481_v3  ;;  %v1765_v56 = vpop.f32.mrb[79].mxu1  ;;  %v1941_v63 = vmax.f32 %v1569_v57, 0.0 }
 0x223   :  { %v1948_v62 = vmax.f32 %v1571_v46, 0.0  ;;  %4003 = vmatmul.mubr.bf16.gmra.mrb[184].mxu0 %v9446_v2  ;;  %v1943_v39 = vmax.f32 %v1762_v41, 0.0  ;;  %v1766_v26 = vadd.f32 %v1765_v56, %v9483_v24 }
 0x224   :  { %v1949_v27 = vmax.f32 %v1573_v4, 0.0  ;;  %4775 = vmatmul.mubr.bf16.gmra.mrb[184].mxu1 %v9446_v2  ;;  %4012 = vmatprep.mubr.bf16.mxu0 %v9477_v28  ;;  %v1950_v50 = vmax.f32 %v1764_v8, 0.0 }
 0x225   :  { %v9558_v32 = vpack.c.bf16 %v1948_v62, %v1940_v0  ;;  %4784 = vmatprep.mubr.bf16.mxu1 %v9477_v28  ;;  %v1951_v19 = vmax.f32 %v1766_v26, 0.0 }
 0x226   :  { %v9561_v49 = vpack.c.bf16 %v1949_v27, %v1941_v63  ;;  %v1576_v5 = vpop.f32.mrb[80].mxu0  ;;  %v9563_v46 = vpack.c.bf16 %v1950_v50, %v1942_v40 }
 0x227   :  { %v1577_v41 = vadd.f32 %v1576_v5, %v9461_v36  ;;  %v1578_v35 = vpop.f32.mrb[81].mxu0  ;;  %v9566_v57 = vpack.c.bf16 %v1951_v19, %v1943_v39  ;;  %v1769_v4 = vpop.f32.mrb[80].mxu1 }
 0x228   :  { %10760 = vst [vmem:[#allocation27_spill] sm:$0xff] %v9563_v46  ;;  %v1579_v2 = vadd.f32 %v1578_v35, %v9463_v1  ;;  %v1580_v56 = vpop.f32.mrb[82].mxu0  ;;  %v1770_v8 = vadd.f32 %v1769_v4, %v9481_v3  ;;  %v1771_v0 = vpop.f32.mrb[81].mxu1 }
 0x229   :  { %10761 = vst [vmem:[#allocation28_spill] sm:$0xff] %v9566_v57  ;;  %v1581_v28 = vadd.f32 %v1580_v56, %v9461_v36  ;;  %v1582_v62 = vpop.f32.mrb[83].mxu0  ;;  %v1772_v63 = vadd.f32 %v1771_v0, %v9483_v24  ;;  %v1773_v27 = vpop.f32.mrb[82].mxu1  ;;  %v1956_v19 = vmax.f32 %v1577_v41, 0.0 }
 0x22a   :  { %v1583_v40 = vadd.f32 %v1582_v62, %v9463_v1  ;;  %v1958_v26 = vmax.f32 %v1770_v8, 0.0  ;;  %v1774_v50 = vadd.f32 %v1773_v27, %v9481_v3  ;;  %v1775_v39 = vpop.f32.mrb[83].mxu1  ;;  %v1957_v46 = vmax.f32 %v1579_v2, 0.0 }
 0x22b   :  { %v1964_v5 = vmax.f32 %v1581_v28, 0.0  ;;  %4013 = vmatmul.mubr.bf16.gmra.mrb[188].mxu0 %v9474_v61  ;;  %v1959_v35 = vmax.f32 %v1772_v63, 0.0  ;;  %v1776_v4 = vadd.f32 %v1775_v39, %v9483_v24 }
 0x22c   :  { %v1965_v57 = vmax.f32 %v1583_v40, 0.0  ;;  %4785 = vmatmul.mubr.bf16.gmra.mrb[188].mxu1 %v9474_v61  ;;  %4055 = vmatprep.mubr.bf16.mxu0 %v9174_v29  ;;  %v1966_v56 = vmax.f32 %v1774_v50, 0.0 }
 0x22d   :  { %v9578_v0 = vpack.c.bf16 %v1964_v5, %v1956_v19  ;;  %4827 = vmatprep.mubr.bf16.mxu1 %v9174_v29  ;;  %v1967_v8 = vmax.f32 %v1776_v4, 0.0 }
 0x22e   :  { %v9581_v62 = vpack.c.bf16 %v1965_v57, %v1957_v46  ;;  %v1586_v41 = vpop.f32.mrb[84].mxu0  ;;  %v9583_v28 = vpack.c.bf16 %v1966_v56, %v1958_v26  ;;  %v8343_v46 = vld [vmem:[#allocation8 + $0x400] ss:$16 sps:$4 sm:$0xff]   ;;  %v8348_v56 = vld [vmem:[#allocation8 + $0x424] ss:$16 sps:$4 sm:$0xff]  }
 0x22f   :  { %10762 = vst [vmem:[#allocation29_spill] sm:$0xff] %v9578_v0  ;;  %v1587_v63 = vadd.f32 %v1586_v41, %v9461_v36  ;;  %v1588_v27 = vpop.f32.mrb[85].mxu0  ;;  %v9586_v2 = vpack.c.bf16 %v1967_v8, %v1959_v35  ;;  %v1779_v40 = vpop.f32.mrb[84].mxu1  ;;  %v8370_v41 = vld [vmem:[#allocation8 + $0x408] ss:$16 sps:$4 sm:$0xff]  }
 0x230   :  { %10763 = vst [vmem:[#allocation30_spill] sm:$0xff] %v9581_v62  ;;  %10764 = vst [vmem:[#allocation31_spill] sm:$0xff] %v9583_v28  ;;  %v1589_v61 = vadd.f32 %v1588_v27, %v9463_v1  ;;  %v1590_v39 = vpop.f32.mrb[86].mxu0  ;;  %v1780_v50 = vadd.f32 %v1779_v40, %v9481_v3  ;;  %v1781_v19 = vpop.f32.mrb[85].mxu1  ;;  %v8375_v40 = vld [vmem:[#allocation8 + $0x42c] ss:$16 sps:$4 sm:$0xff]  }
 0x231   :  { %10765 = vst [vmem:[#allocation32_spill] sm:$0xff] %v9586_v2  ;;  %v1591_v29 = vadd.f32 %v1590_v39, %v9461_v36  ;;  %v1592_v5 = vpop.f32.mrb[87].mxu0  ;;  %v1782_v57 = vadd.f32 %v1781_v19, %v9483_v24  ;;  %v1783_v26 = vpop.f32.mrb[86].mxu1  ;;  %v1972_v27 = vmax.f32 %v1587_v63, 0.0  ;;  %v8346_v63 = vld [vmem:[#allocation8 + $0x420] ss:$16 sps:$4 sm:$0xff]  }
 0x232   :  { %v1593_v4 = vadd.f32 %v1592_v5, %v9463_v1  ;;  %v1974_v35 = vmax.f32 %v1780_v50, 0.0  ;;  %v1784_v8 = vadd.f32 %v1783_v26, %v9481_v3  ;;  %v1785_v28 = vpop.f32.mrb[87].mxu1  ;;  %v1973_v0 = vmax.f32 %v1589_v61, 0.0 }
 0x233   :  { %v1980_v2 = vmax.f32 %v1591_v29, 0.0  ;;  %4056 = vmatmul.mubr.bf16.vlgmr.msra.gmra.mrb[128].mxu0 %v9171_v53  ;;  %v1975_v54 = vmax.f32 %v1782_v57, 0.0  ;;  %v1786_v39 = vadd.f32 %v1785_v28, %v9483_v24  ;;  %v8351_v57 = vld [vmem:[#allocation8 + $0x444] ss:$16 sps:$4 sm:$0xff]   ;;  %v8373_v28 = vld [vmem:[#allocation8 + $0x428] ss:$16 sps:$4 sm:$0xff]  }
 0x234   :  { %v1981_v62 = vmax.f32 %v1593_v4, 0.0  ;;  %4828 = vmatmul.mubr.bf16.vlgmr.msra.gmra.mrb[128].mxu1 %v9171_v53  ;;  %4065 = vmatprep.mubr.bf16.mxu0 %v9194_v37  ;;  %v1982_v19 = vmax.f32 %v1784_v8, 0.0 }
 0x235   :  { %v9598_v5 = vpack.c.bf16 %v1980_v2, %v1972_v27  ;;  %4217 = vmatpush1.bf16.msra.mxu0 %v8343_v46  ;;  %4837 = vmatprep.mubr.bf16.mxu1 %v9194_v37  ;;  %v1983_v50 = vmax.f32 %v1786_v39, 0.0  ;;  %v8381_v2 = vld [vmem:[#allocation8 + $0x44c] ss:$16 sps:$4 sm:$0xff]  }
 0x236   :  { %v9601_v29 = vpack.c.bf16 %v1981_v62, %v1973_v0  ;;  %v1596_v26 = vpop.f32.mrb[88].mxu0  ;;  %4218 = vmatprep.subr.bf16.mxu0 %v8348_v56  ;;  %4989 = vmatpush1.bf16.msra.mxu1 %v8370_v41  ;;  %v9603_v61 = vpack.c.bf16 %v1982_v19, %v1974_v35  ;;  %v8349_v35 = vld [vmem:[#allocation8 + $0x440] ss:$16 sps:$4 sm:$0xff]  }
 0x237   :  { %10766 = vst [vmem:[#allocation33_spill] sm:$0xff] %v9598_v5  ;;  %v1597_v53 = vadd.f32 %v1596_v26, %v9461_v36  ;;  %v1598_v4 = vpop.f32.mrb[89].mxu0  ;;  %4990 = vmatprep.subr.bf16.mxu1 %v8375_v40  ;;  %v9606_v8 = vpack.c.bf16 %v1983_v50, %v1975_v54  ;;  %v1789_v46 = vpop.f32.mrb[88].mxu1  ;;  %v8354_v54 = vld [vmem:[#allocation8 + $0x464] ss:$16 sps:$4 sm:$0xff]  }
 0x238   :  { %10767 = vst [vmem:[#allocation34_spill] sm:$0xff] %v9601_v29  ;;  %10768 = vst [vmem:[#allocation35_spill] sm:$0xff] %v9603_v61  ;;  %v1599_v37 = vadd.f32 %v1598_v4, %v9463_v1  ;;  %v1600_v27 = vpop.f32.mrb[90].mxu0  ;;  %v1790_v0 = vadd.f32 %v1789_v46, %v9481_v3  ;;  %v1791_v62 = vpop.f32.mrb[89].mxu1  ;;  %v8379_v50 = vld [vmem:[#allocation8 + $0x448] ss:$16 sps:$4 sm:$0xff]  }
 0x239   :  { %10769 = vst [vmem:[#allocation36_spill] sm:$0xff] %v9606_v8  ;;  %v1601_v56 = vadd.f32 %v1600_v27, %v9461_v36  ;;  %v1602_v41 = vpop.f32.mrb[91].mxu0  ;;  %4219 = vmatpush1.bf16.msra.mxu0 %v8346_v63  ;;  %v1792_v39 = vadd.f32 %v1791_v62, %v9483_v24  ;;  %v1793_v19 = vpop.f32.mrb[90].mxu1  ;;  %v1988_v46 = vmax.f32 %v1597_v53, 0.0  ;;  %v8384_v63 = vld [vmem:[#allocation8 + $0x46c] ss:$16 sps:$4 sm:$0xff]  }
 0x23a   :  { %v1603_v40 = vadd.f32 %v1602_v41, %v9463_v1  ;;  %4220 = vmatprep.subr.bf16.mxu0 %v8351_v57  ;;  %4991 = vmatpush1.bf16.msra.mxu1 %v8373_v28  ;;  %v1990_v26 = vmax.f32 %v1790_v0, 0.0  ;;  %v1794_v4 = vadd.f32 %v1793_v19, %v9481_v3  ;;  %v1795_v61 = vpop.f32.mrb[91].mxu1  ;;  %v1989_v5 = vmax.f32 %v1599_v37, 0.0  ;;  %v8352_v53 = vld [vmem:[#allocation8 + $0x460] ss:$16 sps:$4 sm:$0xff]  }
 0x23b   :  { %v1996_v8 = vmax.f32 %v1601_v56, 0.0  ;;  %4066 = vmatmul.mubr.bf16.gmra.mrb[132].mxu0 %v9191_v25  ;;  %4992 = vmatprep.subr.bf16.mxu1 %v8381_v2  ;;  %v1991_v27 = vmax.f32 %v1792_v39, 0.0  ;;  %v1796_v62 = vadd.f32 %v1795_v61, %v9483_v24  ;;  %v8357_v41 = vld [vmem:[#allocation8 + $0x484] ss:$16 sps:$4 sm:$0xff]   ;;  %v8382_v61 = vld [vmem:[#allocation8 + $0x468] ss:$16 sps:$4 sm:$0xff]  }
 0x23c   :  { %v1997_v29 = vmax.f32 %v1603_v40, 0.0  ;;  %4838 = vmatmul.mubr.bf16.gmra.mrb[132].mxu1 %v9191_v25  ;;  %4075 = vmatprep.mubr.bf16.mxu0 %v9214_v51  ;;  %v1998_v57 = vmax.f32 %v1794_v4, 0.0 }
 0x23d   :  { %v9618_v28 = vpack.c.bf16 %v1996_v8, %v1988_v46  ;;  %4847 = vmatprep.mubr.bf16.mxu1 %v9214_v51  ;;  %4221 = vmatpush1.bf16.msra.mxu0 %v8349_v35  ;;  %v1999_v0 = vmax.f32 %v1796_v62, 0.0  ;;  %v8390_v8 = vld [vmem:[#allocation8 + $0x48c] ss:$16 sps:$4 sm:$0xff]   ;;  %v8388_v62 = vld [vmem:[#allocation8 + $0x488] ss:$16 sps:$4 sm:$0xff]  }
 0x23e   :  { %v9621_v56 = vpack.c.bf16 %v1997_v29, %v1989_v5  ;;  %v1606_v2 = vpop.f32.mrb[92].mxu0  ;;  %4222 = vmatprep.subr.bf16.mxu0 %v8354_v54  ;;  %4993 = vmatpush1.bf16.msra.mxu1 %v8379_v50  ;;  %v9623_v37 = vpack.c.bf16 %v1998_v57, %v1990_v26  ;;  %v8355_v26 = vld [vmem:[#allocation8 + $0x480] ss:$16 sps:$4 sm:$0xff]  }
 0x23f   :  { %v1607_v25 = vadd.f32 %v1606_v2, %v9461_v36  ;;  %v1608_v39 = vpop.f32.mrb[93].mxu0  ;;  %4994 = vmatprep.subr.bf16.mxu1 %v8384_v63  ;;  %v9626_v19 = vpack.c.bf16 %v1999_v0, %v1991_v27  ;;  %v1799_v51 = vpop.f32.mrb[92].mxu1  ;;  %v8360_v27 = vld [vmem:[#allocation8 + $0x4a4] ss:$16 sps:$4 sm:$0xff]  }
 0x240   :  { %10770 = vst [vmem:[#allocation37_spill] sm:$0xff] %v9623_v37  ;;  %v1609_v35 = vadd.f32 %v1608_v39, %v9463_v1  ;;  %v1610_v40 = vpop.f32.mrb[94].mxu0  ;;  %v1800_v5 = vadd.f32 %v1799_v51, %v9481_v3  ;;  %v1801_v29 = vpop.f32.mrb[93].mxu1 }
 0x241   :  { %10771 = vst [vmem:[#allocation38_spill] sm:$0xff] %v9626_v19  ;;  %v1611_v54 = vadd.f32 %v1610_v40, %v9461_v36  ;;  %v1612_v50 = vpop.f32.mrb[95].mxu0  ;;  %4223 = vmatpush1.bf16.msra.mxu0 %v8352_v53  ;;  %v1802_v4 = vadd.f32 %v1801_v29, %v9483_v24  ;;  %v1803_v46 = vpop.f32.mrb[94].mxu1  ;;  %v2004_v39 = vmax.f32 %v1607_v25, 0.0  ;;  %v8393_v53 = vld [vmem:[#allocation8 + $0x4ac] ss:$16 sps:$4 sm:$0xff]  }
 0x242   :  { %v1613_v63 = vadd.f32 %v1612_v50, %v9463_v1  ;;  %4224 = vmatprep.subr.bf16.mxu0 %v8357_v41  ;;  %4995 = vmatpush1.bf16.msra.mxu1 %v8382_v61  ;;  %v2006_v57 = vmax.f32 %v1800_v5, 0.0  ;;  %v1804_v0 = vadd.f32 %v1803_v46, %v9481_v3  ;;  %v1805_v2 = vpop.f32.mrb[95].mxu1  ;;  %v2005_v37 = vmax.f32 %v1609_v35, 0.0  ;;  %v8358_v25 = vld [vmem:[#allocation8 + $0x4a0] ss:$16 sps:$4 sm:$0xff]  }
 0x243   :  { %v2012_v51 = vmax.f32 %v1611_v54, 0.0  ;;  %4076 = vmatmul.mubr.bf16.gmra.mrb[136].mxu0 %v9211_v60  ;;  %4996 = vmatprep.subr.bf16.mxu1 %v8390_v8  ;;  %v2007_v40 = vmax.f32 %v1802_v4, 0.0  ;;  %v1806_v29 = vadd.f32 %v1805_v2, %v9483_v24  ;;  %v8363_v50 = vld [vmem:[#allocation8 + $0x4c4] ss:$16 sps:$4 sm:$0xff]   ;;  %v8391_v35 = vld [vmem:[#allocation8 + $0x4a8] ss:$16 sps:$4 sm:$0xff]  }
 0x244   :  { %v2013_v19 = vmax.f32 %v1613_v63, 0.0  ;;  %4848 = vmatmul.mubr.bf16.gmra.mrb[136].mxu1 %v9211_v60  ;;  %4085 = vmatprep.mubr.bf16.mxu0 %v9234_v15  ;;  %v2014_v41 = vmax.f32 %v1804_v0, 0.0  ;;  %v8399_v63 = vld [vmem:[#allocation8 + $0x4cc] ss:$16 sps:$4 sm:$0xff]  }
 0x245   :  { %v9638_v61 = vpack.c.bf16 %v2012_v51, %v2004_v39  ;;  %4857 = vmatprep.mubr.bf16.mxu1 %v9234_v15  ;;  %4225 = vmatpush1.bf16.msra.mxu0 %v8355_v26  ;;  %v2015_v5 = vmax.f32 %v1806_v29, 0.0  ;;  %v8397_v29 = vld [vmem:[#allocation8 + $0x4c8] ss:$16 sps:$4 sm:$0xff]  }
 0x246   :  { %v9641_v54 = vpack.c.bf16 %v2013_v19, %v2005_v37  ;;  %v1616_v8 = vpop.f32.mrb[96].mxu0  ;;  %4226 = vmatprep.subr.bf16.mxu0 %v8360_v27  ;;  %4997 = vmatpush1.bf16.msra.mxu1 %v8388_v62  ;;  %v9643_v4 = vpack.c.bf16 %v2014_v41, %v2006_v57  ;;  %v8361_v57 = vld [vmem:[#allocation8 + $0x4c0] ss:$16 sps:$4 sm:$0xff]  }
 0x247   :  { %v1617_v60 = vadd.f32 %v1616_v8, %v9461_v36  ;;  %v1618_v46 = vpop.f32.mrb[97].mxu0  ;;  %4998 = vmatprep.subr.bf16.mxu1 %v8393_v53  ;;  %v9646_v0 = vpack.c.bf16 %v2015_v5, %v2007_v40  ;;  %v1809_v15 = vpop.f32.mrb[96].mxu1  ;;  %v8366_v40 = vld [vmem:[#allocation8 + $0x4e4] ss:$16 sps:$4 sm:$0xff]  }
 0x248   :  { %10772 = vst [vmem:[#allocation39_spill] sm:$0xff] %v9643_v4  ;;  %v1619_v26 = vadd.f32 %v1618_v46, %v9463_v1  ;;  %v1620_v2 = vpop.f32.mrb[98].mxu0  ;;  %v1810_v37 = vadd.f32 %v1809_v15, %v9481_v3  ;;  %v1811_v19 = vpop.f32.mrb[97].mxu1 }
 0x249   :  { %10773 = vst [vmem:[#allocation40_spill] sm:$0xff] %v9646_v0  ;;  %v1621_v27 = vadd.f32 %v1620_v2, %v9461_v36  ;;  %v1622_v62 = vpop.f32.mrb[99].mxu0  ;;  %4227 = vmatpush1.bf16.msra.mxu0 %v8358_v25  ;;  %v1812_v39 = vadd.f32 %v1811_v19, %v9483_v24  ;;  %v1813_v51 = vpop.f32.mrb[98].mxu1  ;;  %v2020_v46 = vmax.f32 %v1617_v60, 0.0  ;;  %v8402_v25 = vld [vmem:[#allocation8 + $0x4ec] ss:$16 sps:$4 sm:$0xff]  }
 0x24a   :  { %v1623_v53 = vadd.f32 %v1622_v62, %v9463_v1  ;;  %4228 = vmatprep.subr.bf16.mxu0 %v8363_v50  ;;  %4999 = vmatpush1.bf16.msra.mxu1 %v8391_v35  ;;  %v2022_v41 = vmax.f32 %v1810_v37, 0.0  ;;  %v1814_v5 = vadd.f32 %v1813_v51, %v9481_v3  ;;  %v1815_v8 = vpop.f32.mrb[99].mxu1  ;;  %v2021_v4 = vmax.f32 %v1619_v26, 0.0  ;;  %v8364_v60 = vld [vmem:[#allocation8 + $0x4e0] ss:$16 sps:$4 sm:$0xff]  }
 0x24b   :  { %v2028_v15 = vmax.f32 %v1621_v27, 0.0  ;;  %4086 = vmatmul.mubr.bf16.gmra.mrb[140].mxu0 %v9231_v44  ;;  %5000 = vmatprep.subr.bf16.mxu1 %v8399_v63  ;;  %v2023_v2 = vmax.f32 %v1812_v39, 0.0  ;;  %v1816_v19 = vadd.f32 %v1815_v8, %v9483_v24  ;;  %v8369_v62 = vld [vmem:[#allocation8 + $0x504] ss:$16 sps:$4 sm:$0xff]   ;;  %v8400_v26 = vld [vmem:[#allocation8 + $0x4e8] ss:$16 sps:$4 sm:$0xff]  }
 0x24c   :  { %v2029_v0 = vmax.f32 %v1623_v53, 0.0  ;;  %4858 = vmatmul.mubr.bf16.gmra.mrb[140].mxu1 %v9231_v44  ;;  %4095 = vmatprep.mubr.bf16.mxu0 %v9254_v20  ;;  %v2030_v50 = vmax.f32 %v1814_v5, 0.0  ;;  %v8408_v53 = vld [vmem:[#allocation8 + $0x50c] ss:$16 sps:$4 sm:$0xff]  }
 0x24d   :  { %v9658_v35 = vpack.c.bf16 %v2028_v15, %v2020_v46  ;;  %4867 = vmatprep.mubr.bf16.mxu1 %v9254_v20  ;;  %4229 = vmatpush1.bf16.msra.mxu0 %v8361_v57  ;;  %v2031_v37 = vmax.f32 %v1816_v19, 0.0  ;;  %v8406_v19 = vld [vmem:[#allocation8 + $0x508] ss:$16 sps:$4 sm:$0xff]  }
 0x24e   :  { %v9661_v27 = vpack.c.bf16 %v2029_v0, %v2021_v4  ;;  %v1626_v63 = vpop.f32.mrb[100].mxu0  ;;  %4230 = vmatprep.subr.bf16.mxu0 %v8366_v40  ;;  %5001 = vmatpush1.bf16.msra.mxu1 %v8397_v29  ;;  %v9663_v39 = vpack.c.bf16 %v2030_v50, %v2022_v41  ;;  %v8367_v41 = vld [vmem:[#allocation8 + $0x500] ss:$16 sps:$4 sm:$0xff]  }
 0x24f   :  { %v1627_v44 = vadd.f32 %v1626_v63, %v9461_v36  ;;  %v1628_v51 = vpop.f32.mrb[101].mxu0  ;;  %5002 = vmatprep.subr.bf16.mxu1 %v8402_v25  ;;  %v9666_v5 = vpack.c.bf16 %v2031_v37, %v2023_v2  ;;  %v1819_v20 = vpop.f32.mrb[100].mxu1  ;;  %v8378_v2 = vld [vmem:[#allocation8 + $0x524] ss:$16 sps:$4 sm:$0xff]  }
 0x250   :  { %10774 = vst [vmem:[#allocation41_spill] sm:$0xff] %v9663_v39  ;;  %v1629_v57 = vadd.f32 %v1628_v51, %v9463_v1  ;;  %v1630_v8 = vpop.f32.mrb[102].mxu0  ;;  %v1820_v4 = vadd.f32 %v1819_v20, %v9481_v3  ;;  %v1821_v0 = vpop.f32.mrb[101].mxu1 }
 0x251   :  { %10775 = vst [vmem:[#allocation42_spill] sm:$0xff] %v9666_v5  ;;  %v1631_v40 = vadd.f32 %v1630_v8, %v9461_v36  ;;  %v1632_v29 = vpop.f32.mrb[103].mxu0  ;;  %4231 = vmatpush1.bf16.msra.mxu0 %v8364_v60  ;;  %v1822_v46 = vadd.f32 %v1821_v0, %v9483_v24  ;;  %v1823_v15 = vpop.f32.mrb[102].mxu1  ;;  %v2036_v51 = vmax.f32 %v1627_v44, 0.0  ;;  %v8411_v60 = vld [vmem:[#allocation8 + $0x52c] ss:$16 sps:$4 sm:$0xff]  }
 0x252   :  { %v1633_v25 = vadd.f32 %v1632_v29, %v9463_v1  ;;  %4232 = vmatprep.subr.bf16.mxu0 %v8369_v62  ;;  %5003 = vmatpush1.bf16.msra.mxu1 %v8400_v26  ;;  %v2038_v50 = vmax.f32 %v1820_v4, 0.0  ;;  %v1824_v37 = vadd.f32 %v1823_v15, %v9481_v3  ;;  %v1825_v63 = vpop.f32.mrb[103].mxu1  ;;  %v2037_v39 = vmax.f32 %v1629_v57, 0.0  ;;  %v8376_v44 = vld [vmem:[#allocation8 + $0x520] ss:$16 sps:$4 sm:$0xff]  }
 0x253   :  { %v2044_v20 = vmax.f32 %v1631_v40, 0.0  ;;  %4096 = vmatmul.mubr.bf16.gmra.mrb[144].mxu0 %v9251_v13  ;;  %5004 = vmatprep.subr.bf16.mxu1 %v8408_v53  ;;  %v2039_v8 = vmax.f32 %v1822_v46, 0.0  ;;  %v1826_v0 = vadd.f32 %v1825_v63, %v9483_v24  ;;  %v8387_v29 = vld [vmem:[#allocation8 + $0x544] ss:$16 sps:$4 sm:$0xff]   ;;  %v8409_v57 = vld [vmem:[#allocation8 + $0x528] ss:$16 sps:$4 sm:$0xff]  }
 0x254   :  { %v2045_v5 = vmax.f32 %v1633_v25, 0.0  ;;  %4868 = vmatmul.mubr.bf16.gmra.mrb[144].mxu1 %v9251_v13  ;;  %4105 = vmatprep.mubr.bf16.mxu0 %v9274_v18  ;;  %v2046_v62 = vmax.f32 %v1824_v37, 0.0  ;;  %v8417_v25 = vld [vmem:[#allocation8 + $0x54c] ss:$16 sps:$4 sm:$0xff]  }
 0x255   :  { %v9678_v26 = vpack.c.bf16 %v2044_v20, %v2036_v51  ;;  %4877 = vmatprep.mubr.bf16.mxu1 %v9274_v18  ;;  %4233 = vmatpush1.bf16.msra.mxu0 %v8367_v41  ;;  %v2047_v4 = vmax.f32 %v1826_v0, 0.0  ;;  %v8415_v0 = vld [vmem:[#allocation8 + $0x548] ss:$16 sps:$4 sm:$0xff]  }
 0x256   :  { %v9681_v40 = vpack.c.bf16 %v2045_v5, %v2037_v39  ;;  %v1636_v53 = vpop.f32.mrb[104].mxu0  ;;  %4234 = vmatprep.subr.bf16.mxu0 %v8378_v2  ;;  %5005 = vmatpush1.bf16.msra.mxu1 %v8406_v19  ;;  %v9683_v46 = vpack.c.bf16 %v2046_v62, %v2038_v50  ;;  %v8385_v50 = vld [vmem:[#allocation8 + $0x540] ss:$16 sps:$4 sm:$0xff]  }
 0x257   :  { %v1637_v13 = vadd.f32 %v1636_v53, %v9461_v36  ;;  %v1638_v15 = vpop.f32.mrb[105].mxu0  ;;  %5006 = vmatprep.subr.bf16.mxu1 %v8411_v60  ;;  %v9686_v37 = vpack.c.bf16 %v2047_v4, %v2039_v8  ;;  %v1829_v18 = vpop.f32.mrb[104].mxu1  ;;  %v8396_v8 = vld [vmem:[#allocation8 + $0x564] ss:$16 sps:$4 sm:$0xff]  }
 0x258   :  { %10776 = vst [vmem:[#allocation43_spill] sm:$0xff] %v9683_v46  ;;  %v1639_v41 = vadd.f32 %v1638_v15, %v9463_v1  ;;  %v1640_v63 = vpop.f32.mrb[106].mxu0  ;;  %v1830_v39 = vadd.f32 %v1829_v18, %v9481_v3  ;;  %v1831_v5 = vpop.f32.mrb[105].mxu1 }
 0x259   :  { %10777 = vst [vmem:[#allocation44_spill] sm:$0xff] %v9686_v37  ;;  %v1641_v2 = vadd.f32 %v1640_v63, %v9461_v36  ;;  %v1642_v19 = vpop.f32.mrb[107].mxu0  ;;  %4235 = vmatpush1.bf16.msra.mxu0 %v8376_v44  ;;  %v1832_v51 = vadd.f32 %v1831_v5, %v9483_v24  ;;  %v1833_v20 = vpop.f32.mrb[106].mxu1  ;;  %v2052_v15 = vmax.f32 %v1637_v13, 0.0  ;;  %v8420_v44 = vld [vmem:[#allocation8 + $0x56c] ss:$16 sps:$4 sm:$0xff]  }
 0x25a   :  { %v1643_v60 = vadd.f32 %v1642_v19, %v9463_v1  ;;  %4236 = vmatprep.subr.bf16.mxu0 %v8387_v29  ;;  %5007 = vmatpush1.bf16.msra.mxu1 %v8409_v57  ;;  %v2054_v62 = vmax.f32 %v1830_v39, 0.0  ;;  %v1834_v4 = vadd.f32 %v1833_v20, %v9481_v3  ;;  %v1835_v53 = vpop.f32.mrb[107].mxu1  ;;  %v2053_v46 = vmax.f32 %v1639_v41, 0.0  ;;  %v8394_v13 = vld [vmem:[#allocation8 + $0x560] ss:$16 sps:$4 sm:$0xff]  }
 0x25b   :  { %v2060_v18 = vmax.f32 %v1641_v2, 0.0  ;;  %4106 = vmatmul.mubr.bf16.gmra.mrb[148].mxu0 %v9271_v9  ;;  %5008 = vmatprep.subr.bf16.mxu1 %v8417_v25  ;;  %v2055_v63 = vmax.f32 %v1832_v51, 0.0  ;;  %v1836_v5 = vadd.f32 %v1835_v53, %v9483_v24  ;;  %v8405_v19 = vld [vmem:[#allocation8 + $0x584] ss:$16 sps:$4 sm:$0xff]   ;;  %v8418_v41 = vld [vmem:[#allocation8 + $0x568] ss:$16 sps:$4 sm:$0xff]  }
 0x25c   :  { %v2061_v37 = vmax.f32 %v1643_v60, 0.0  ;;  %4878 = vmatmul.mubr.bf16.gmra.mrb[148].mxu1 %v9271_v9  ;;  %4115 = vmatprep.mubr.bf16.mxu0 %v9294_v16  ;;  %v2062_v29 = vmax.f32 %v1834_v4, 0.0  ;;  %v8426_v60 = vld [vmem:[#allocation8 + $0x58c] ss:$16 sps:$4 sm:$0xff]  }
 0x25d   :  { %v9698_v57 = vpack.c.bf16 %v2060_v18, %v2052_v15  ;;  %4887 = vmatprep.mubr.bf16.mxu1 %v9294_v16  ;;  %4237 = vmatpush1.bf16.msra.mxu0 %v8385_v50  ;;  %v2063_v39 = vmax.f32 %v1836_v5, 0.0  ;;  %v8424_v5 = vld [vmem:[#allocation8 + $0x588] ss:$16 sps:$4 sm:$0xff]  }
 0x25e   :  { %v9701_v2 = vpack.c.bf16 %v2061_v37, %v2053_v46  ;;  %v1646_v25 = vpop.f32.mrb[108].mxu0  ;;  %4238 = vmatprep.subr.bf16.mxu0 %v8396_v8  ;;  %5009 = vmatpush1.bf16.msra.mxu1 %v8415_v0  ;;  %v9703_v51 = vpack.c.bf16 %v2062_v29, %v2054_v62  ;;  %v8403_v62 = vld [vmem:[#allocation8 + $0x580] ss:$16 sps:$4 sm:$0xff]  }
 0x25f   :  { %v1647_v9 = vadd.f32 %v1646_v25, %v9461_v36  ;;  %v1648_v20 = vpop.f32.mrb[109].mxu0  ;;  %5010 = vmatprep.subr.bf16.mxu1 %v8420_v44  ;;  %v9706_v4 = vpack.c.bf16 %v2063_v39, %v2055_v63  ;;  %v1839_v16 = vpop.f32.mrb[108].mxu1  ;;  %v8414_v63 = vld [vmem:[#allocation8 + $0x5a4] ss:$16 sps:$4 sm:$0xff]  }
 0x260   :  { %10778 = vst [vmem:[#allocation45_spill] sm:$0xff] %v9703_v51  ;;  %v1649_v50 = vadd.f32 %v1648_v20, %v9463_v1  ;;  %v1650_v53 = vpop.f32.mrb[110].mxu0  ;;  %v1840_v46 = vadd.f32 %v1839_v16, %v9481_v3  ;;  %v1841_v37 = vpop.f32.mrb[109].mxu1 }
 0x261   :  { %10779 = vst [vmem:[#allocation46_spill] sm:$0xff] %v9706_v4  ;;  %v1651_v8 = vadd.f32 %v1650_v53, %v9461_v36  ;;  %v1652_v0 = vpop.f32.mrb[111].mxu0  ;;  %4239 = vmatpush1.bf16.msra.mxu0 %v8394_v13  ;;  %v1842_v15 = vadd.f32 %v1841_v37, %v9483_v24  ;;  %v1843_v18 = vpop.f32.mrb[110].mxu1  ;;  %v2068_v20 = vmax.f32 %v1647_v9, 0.0  ;;  %v8429_v13 = vld [vmem:[#allocation8 + $0x5ac] ss:$16 sps:$4 sm:$0xff]  }
 0x262   :  { %v1653_v44 = vadd.f32 %v1652_v0, %v9463_v1  ;;  %4240 = vmatprep.subr.bf16.mxu0 %v8405_v19  ;;  %5011 = vmatpush1.bf16.msra.mxu1 %v8418_v41  ;;  %v2070_v29 = vmax.f32 %v1840_v46, 0.0  ;;  %v1844_v39 = vadd.f32 %v1843_v18, %v9481_v3  ;;  %v1845_v25 = vpop.f32.mrb[111].mxu1  ;;  %v2069_v51 = vmax.f32 %v1649_v50, 0.0  ;;  %v8412_v9 = vld [vmem:[#allocation8 + $0x5a0] ss:$16 sps:$4 sm:$0xff]  }
 0x263   :  { %v2076_v16 = vmax.f32 %v1651_v8, 0.0  ;;  %4116 = vmatmul.mubr.bf16.gmra.mrb[152].mxu0 %v9291_v11  ;;  %5012 = vmatprep.subr.bf16.mxu1 %v8426_v60  ;;  %v2071_v53 = vmax.f32 %v1842_v15, 0.0  ;;  %v1846_v37 = vadd.f32 %v1845_v25, %v9483_v24  ;;  %v8423_v0 = vld [vmem:[#allocation8 + $0x5c4] ss:$16 sps:$4 sm:$0xff]   ;;  %v8427_v50 = vld [vmem:[#allocation8 + $0x5a8] ss:$16 sps:$4 sm:$0xff]  }
 0x264   :  { %v2077_v4 = vmax.f32 %v1653_v44, 0.0  ;;  %4888 = vmatmul.mubr.bf16.gmra.mrb[152].mxu1 %v9291_v11  ;;  %4125 = vmatprep.mubr.bf16.mxu0 %v9314_v38  ;;  %v2078_v19 = vmax.f32 %v1844_v39, 0.0  ;;  %v8435_v44 = vld [vmem:[#allocation8 + $0x5cc] ss:$16 sps:$4 sm:$0xff]  }
 0x265   :  { %v9718_v41 = vpack.c.bf16 %v2076_v16, %v2068_v20  ;;  %4897 = vmatprep.mubr.bf16.mxu1 %v9314_v38  ;;  %4241 = vmatpush1.bf16.msra.mxu0 %v8403_v62  ;;  %v2079_v46 = vmax.f32 %v1846_v37, 0.0  ;;  %v8433_v37 = vld [vmem:[#allocation8 + $0x5c8] ss:$16 sps:$4 sm:$0xff]  }
 0x266   :  { %v9721_v8 = vpack.c.bf16 %v2077_v4, %v2069_v51  ;;  %v1656_v60 = vpop.f32.mrb[112].mxu0  ;;  %4242 = vmatprep.subr.bf16.mxu0 %v8414_v63  ;;  %5013 = vmatpush1.bf16.msra.mxu1 %v8424_v5  ;;  %v9723_v15 = vpack.c.bf16 %v2078_v19, %v2070_v29  ;;  %v8421_v29 = vld [vmem:[#allocation8 + $0x5c0] ss:$16 sps:$4 sm:$0xff]  }
 0x267   :  { %v1657_v11 = vadd.f32 %v1656_v60, %v9461_v36  ;;  %v1658_v18 = vpop.f32.mrb[113].mxu0  ;;  %5014 = vmatprep.subr.bf16.mxu1 %v8429_v13  ;;  %v9726_v39 = vpack.c.bf16 %v2079_v46, %v2071_v53  ;;  %v1849_v38 = vpop.f32.mrb[112].mxu1  ;;  %v8432_v53 = vld [vmem:[#allocation8 + $0x5e4] ss:$16 sps:$4 sm:$0xff]  }
 0x268   :  { %10780 = vst [vmem:[#allocation47_spill] sm:$0xff] %v9723_v15  ;;  %v1659_v62 = vadd.f32 %v1658_v18, %v9463_v1  ;;  %v1660_v25 = vpop.f32.mrb[114].mxu0  ;;  %v1850_v51 = vadd.f32 %v1849_v38, %v9481_v3  ;;  %v1851_v4 = vpop.f32.mrb[113].mxu1 }
 0x269   :  { %10781 = vst [vmem:[#allocation48_spill] sm:$0xff] %v9726_v39  ;;  %v1661_v63 = vadd.f32 %v1660_v25, %v9461_v36  ;;  %v1662_v5 = vpop.f32.mrb[115].mxu0  ;;  %4243 = vmatpush1.bf16.msra.mxu0 %v8412_v9  ;;  %v1852_v20 = vadd.f32 %v1851_v4, %v9483_v24  ;;  %v1853_v16 = vpop.f32.mrb[114].mxu1  ;;  %v2084_v18 = vmax.f32 %v1657_v11, 0.0  ;;  %v8438_v9 = vld [vmem:[#allocation8 + $0x5ec] ss:$16 sps:$4 sm:$0xff]  }
 0x26a   :  { %v1663_v13 = vadd.f32 %v1662_v5, %v9463_v1  ;;  %4244 = vmatprep.subr.bf16.mxu0 %v8423_v0  ;;  %5015 = vmatpush1.bf16.msra.mxu1 %v8427_v50  ;;  %v2086_v19 = vmax.f32 %v1850_v51, 0.0  ;;  %v1854_v46 = vadd.f32 %v1853_v16, %v9481_v3  ;;  %v1855_v60 = vpop.f32.mrb[115].mxu1  ;;  %v2085_v15 = vmax.f32 %v1659_v62, 0.0  ;;  %v8430_v11 = vld [vmem:[#allocation8 + $0x5e0] ss:$16 sps:$4 sm:$0xff]  }
 0x26b   :  { %v2092_v38 = vmax.f32 %v1661_v63, 0.0  ;;  %4126 = vmatmul.mubr.bf16.gmra.mrb[156].mxu0 %v9311_v59  ;;  %5016 = vmatprep.subr.bf16.mxu1 %v8435_v44  ;;  %v2087_v25 = vmax.f32 %v1852_v20, 0.0  ;;  %v1856_v4 = vadd.f32 %v1855_v60, %v9483_v24  ;;  %v8436_v5 = vld [vmem:[#allocation8 + $0x5e8] ss:$16 sps:$4 sm:$0xff]   ;;  %v8441_v62 = vld [vmem:[#allocation8 + $0x604] ss:$16 sps:$4 sm:$0xff]  }
 0x26c   :  { %v2093_v39 = vmax.f32 %v1663_v13, 0.0  ;;  %4898 = vmatmul.mubr.bf16.gmra.mrb[156].mxu1 %v9311_v59  ;;  %4135 = vmatprep.mubr.bf16.mxu0 %v9334_v42  ;;  %v2094_v0 = vmax.f32 %v1854_v46, 0.0 }
 0x26d   :  { %v9738_v50 = vpack.c.bf16 %v2092_v38, %v2084_v18  ;;  %4907 = vmatprep.mubr.bf16.mxu1 %v9334_v42  ;;  %4245 = vmatpush1.bf16.msra.mxu0 %v8421_v29  ;;  %v2095_v51 = vmax.f32 %v1856_v4, 0.0  ;;  %v8468_v4 = vld [vmem:[#allocation8 + $0x60c] ss:$16 sps:$4 sm:$0xff]  }
 0x26e   :  { %v9741_v63 = vpack.c.bf16 %v2093_v39, %v2085_v15  ;;  %v1666_v44 = vpop.f32.mrb[116].mxu0  ;;  %4246 = vmatprep.subr.bf16.mxu0 %v8432_v53  ;;  %5017 = vmatpush1.bf16.msra.mxu1 %v8433_v37  ;;  %v9743_v20 = vpack.c.bf16 %v2094_v0, %v2086_v19 }
 0x26f   :  { %v1667_v59 = vadd.f32 %v1666_v44, %v9461_v36  ;;  %v1668_v16 = vpop.f32.mrb[117].mxu0  ;;  %5018 = vmatprep.subr.bf16.mxu1 %v8438_v9  ;;  %v9746_v13 = vpack.c.bf16 %v2095_v51, %v2087_v25  ;;  %v1859_v46 = vpop.f32.mrb[116].mxu1 }
 0x270   :  { %v1669_v42 = vadd.f32 %v1668_v16, %v9463_v1  ;;  %v1670_v29 = vpop.f32.mrb[118].mxu0  ;;  %v1860_v15 = vadd.f32 %v1859_v46, %v9481_v3  ;;  %v1861_v39 = vpop.f32.mrb[117].mxu1 }
 0x271   :  { %v1671_v53 = vadd.f32 %v1670_v29, %v9461_v36  ;;  %v1672_v37 = vpop.f32.mrb[119].mxu0  ;;  %4247 = vmatpush1.bf16.msra.mxu0 %v8430_v11  ;;  %v1862_v19 = vadd.f32 %v1861_v39, %v9483_v24  ;;  %v1863_v60 = vpop.f32.mrb[118].mxu1  ;;  %v2100_v0 = vmax.f32 %v1667_v59, 0.0 }
 0x272   :  { %v1673_v18 = vadd.f32 %v1672_v37, %v9463_v1  ;;  %5019 = vmatpush1.bf16.msra.mxu1 %v8436_v5  ;;  %4409 = vmatprep.subr.bf16.mxu0 %v8441_v62  ;;  %v2102_v38 = vmax.f32 %v1860_v15, 0.0  ;;  %v1864_v9 = vadd.f32 %v1863_v60, %v9481_v3  ;;  %v1865_v25 = vpop.f32.mrb[119].mxu1  ;;  %v2101_v11 = vmax.f32 %v1669_v42, 0.0 }
 0x273   :  { %v2108_v51 = vmax.f32 %v1671_v53, 0.0  ;;  %4136 = vmatmul.mubr.bf16.gmra.mrb[160].mxu0 %v9331_v52  ;;  %v2103_v44 = vmax.f32 %v1862_v19, 0.0  ;;  %v1866_v16 = vadd.f32 %v1865_v25, %v9483_v24  ;;  %5181 = vmatprep.subr.bf16.mxu1 %v8468_v4 }
 0x274   :  { %v2109_v46 = vmax.f32 %v1673_v18, 0.0  ;;  %4908 = vmatmul.mubr.bf16.gmra.mrb[160].mxu1 %v9331_v52  ;;  %4145 = vmatprep.mubr.bf16.mxu0 %v9354_v55  ;;  %v2110_v5 = vmax.f32 %v1864_v9, 0.0 }
 0x275   :  { %v9758_v62 = vpack.c.bf16 %v2108_v51, %v2100_v0  ;;  %4917 = vmatprep.mubr.bf16.mxu1 %v9354_v55  ;;  %v2111_v29 = vmax.f32 %v1866_v16, 0.0 }
 0x276   :  { %v9761_v59 = vpack.c.bf16 %v2109_v46, %v2101_v11  ;;  %v1676_v15 = vpop.f32.mrb[120].mxu0  ;;  %v9763_v39 = vpack.c.bf16 %v2110_v5, %v2102_v38 }
 0x277   :  { %v1677_v53 = vadd.f32 %v1676_v15, %v9461_v36  ;;  %v1678_v42 = vpop.f32.mrb[121].mxu0  ;;  %v9766_v37 = vpack.c.bf16 %v2111_v29, %v2103_v44  ;;  %v1869_v52 = vpop.f32.mrb[120].mxu1 }
 0x278   :  { %v1679_v19 = vadd.f32 %v1678_v42, %v9463_v1  ;;  %v1680_v60 = vpop.f32.mrb[122].mxu0  ;;  %v1870_v18 = vadd.f32 %v1869_v52, %v9481_v3  ;;  %v1871_v9 = vpop.f32.mrb[121].mxu1 }
 0x279   :  { %v1681_v55 = vadd.f32 %v1680_v60, %v9461_v36  ;;  %v1682_v25 = vpop.f32.mrb[123].mxu0  ;;  %v1872_v4 = vadd.f32 %v1871_v9, %v9483_v24  ;;  %v1873_v0 = vpop.f32.mrb[122].mxu1  ;;  %v2116_v11 = vmax.f32 %v1677_v53, 0.0 }
 0x27a   :  { %v1683_v38 = vadd.f32 %v1682_v25, %v9463_v1  ;;  %v2118_v51 = vmax.f32 %v1870_v18, 0.0  ;;  %v1874_v16 = vadd.f32 %v1873_v0, %v9481_v3  ;;  %v1875_v44 = vpop.f32.mrb[123].mxu1  ;;  %v2117_v15 = vmax.f32 %v1679_v19, 0.0 }
 0x27b   :  { %v2124_v46 = vmax.f32 %v1681_v55, 0.0  ;;  %4146 = vmatmul.mubr.bf16.gmra.mrb[164].mxu0 %v9351_v34  ;;  %v2119_v5 = vmax.f32 %v1872_v4, 0.0  ;;  %v1876_v29 = vadd.f32 %v1875_v44, %v9483_v24 }
 0x27c   :  { %v2125_v42 = vmax.f32 %v1683_v38, 0.0  ;;  %4918 = vmatmul.mubr.bf16.gmra.mrb[164].mxu1 %v9351_v34  ;;  %4155 = vmatprep.mubr.bf16.mxu0 %v9374_v17  ;;  %v2126_v52 = vmax.f32 %v1874_v16, 0.0 }
 0x27d   :  { %v9778_v60 = vpack.c.bf16 %v2124_v46, %v2116_v11  ;;  %4927 = vmatprep.mubr.bf16.mxu1 %v9374_v17  ;;  %v2127_v18 = vmax.f32 %v1876_v29, 0.0 }
 0x27e   :  { %v9781_v9 = vpack.c.bf16 %v2125_v42, %v2117_v15  ;;  %v1686_v53 = vpop.f32.mrb[124].mxu0  ;;  %v9783_v55 = vpack.c.bf16 %v2126_v52, %v2118_v51 }
 0x27f   :  { %v1687_v25 = vadd.f32 %v1686_v53, %v9461_v36  ;;  %v1688_v4 = vpop.f32.mrb[125].mxu0  ;;  %v9786_v19 = vpack.c.bf16 %v2127_v18, %v2119_v5  ;;  %v1879_v0 = vpop.f32.mrb[124].mxu1 }
 0x280   :  { %10782 = vst [vmem:[#allocation49_spill] sm:$0xff] %v9783_v55  ;;  %v1689_v34 = vadd.f32 %v1688_v4, %v9463_v1  ;;  %v1690_v38 = vpop.f32.mrb[126].mxu0  ;;  %v1880_v16 = vadd.f32 %v1879_v0, %v9481_v3  ;;  %v1881_v44 = vpop.f32.mrb[125].mxu1 }
 0x281   :  { %v1691_v17 = vadd.f32 %v1690_v38, %v9461_v36  ;;  %v1692_v11 = vpop.f32.mrb[127].mxu0  ;;  %v1882_v46 = vadd.f32 %v1881_v44, %v9483_v24  ;;  %v1883_v29 = vpop.f32.mrb[126].mxu1  ;;  %v2132_v52 = vmax.f32 %v1687_v25, 0.0  ;;  %v8486_v44 = vld [vmem:[#allocation8 + $0x68c] ss:$16 sps:$4 sm:$0xff]  }
 0x282   :  { %v1693_v51 = vadd.f32 %v1692_v11, %v9463_v1  ;;  %v2134_v15 = vmax.f32 %v1880_v16, 0.0  ;;  %v1884_v42 = vadd.f32 %v1883_v29, %v9481_v3  ;;  %v1885_v5 = vpop.f32.mrb[127].mxu1  ;;  %v2133_v0 = vmax.f32 %v1689_v34, 0.0  ;;  %v8478_v34 = vld [vmem:[#allocation8 + $0x668] ss:$16 sps:$4 sm:$0xff]  }
 0x283   :  { %v2140_v18 = vmax.f32 %v1691_v17, 0.0  ;;  %4156 = vmatmul.mubr.bf16.gmra.mrb[168].mxu0 %v9371_v58  ;;  %v2135_v53 = vmax.f32 %v1882_v46, 0.0  ;;  %v1886_v4 = vadd.f32 %v1885_v5, %v9483_v24  ;;  %v8445_v24 = vld [vmem:[#allocation8 + $0x640] ss:$16 sps:$4 sm:$0xff]   ;;  %v8456_v11 = vld [vmem:[#allocation8 + $0x6a4] ss:$16 sps:$4 sm:$0xff]  }
 0x284   :  { %v2141_v55 = vmax.f32 %v1693_v51, 0.0  ;;  %4928 = vmatmul.mubr.bf16.gmra.mrb[168].mxu1 %v9371_v58  ;;  %4165 = vmatprep.mubr.bf16.mxu0 %v9394_v48  ;;  %v2142_v36 = vmax.f32 %v1884_v42, 0.0  ;;  %v10783_v58 = vld [vmem:[#allocation20_spill] sm:$0xff]  ;;  %v8451_v17 = vld [vmem:[#allocation8 + $0x680] ss:$16 sps:$4 sm:$0xff]  }
 0x285   :  { %v9798_v38 = vpack.c.bf16 %v2140_v18, %v2132_v52  ;;  %4937 = vmatprep.mubr.bf16.mxu1 %v9394_v48  ;;  %v2143_v1 = vmax.f32 %v1886_v4, 0.0  ;;  %v8444_v48 = vld [vmem:[#allocation8 + $0x624] ss:$16 sps:$4 sm:$0xff]   ;;  %v8484_v46 = vld [vmem:[#allocation8 + $0x688] ss:$16 sps:$4 sm:$0xff]  }
 0x286   :  { %v9801_v3 = vpack.c.bf16 %v2141_v55, %v2133_v0  ;;  %v9803_v25 = vpack.c.bf16 %v2142_v36, %v2134_v15  ;;  %v8453_v55 = vld [vmem:[#allocation8 + $0x684] ss:$16 sps:$4 sm:$0xff]   ;;  %v8487_v51 = vld [vmem:[#allocation8 + $0x6a8] ss:$16 sps:$4 sm:$0xff]   ;;  %v8495_v15 = vld [vmem:[#allocation8 + $0x6cc] ss:$16 sps:$4 sm:$0xff]  }
 0x287   :  { %v9805_v16 = vpack.c.bf16 %v2143_v1, %v2135_v53  ;;  %v8459_v29 = vld [vmem:[#allocation8 + $0x6c4] ss:$16 sps:$4 sm:$0xff]   ;;  %v8457_v42 = vld [vmem:[#allocation8 + $0x6c0] ss:$16 sps:$4 sm:$0xff]   ;;  %v8493_v52 = vld [vmem:[#allocation8 + $0x6c8] ss:$16 sps:$4 sm:$0xff]  }
 0x288   :  { %v8462_v5 = vld [vmem:[#allocation8 + $0x6e4] ss:$16 sps:$4 sm:$0xff]   ;;  %v8460_v18 = vld [vmem:[#allocation8 + $0x6e0] ss:$16 sps:$4 sm:$0xff]   ;;  %v8496_v4 = vld [vmem:[#allocation8 + $0x6e8] ss:$16 sps:$4 sm:$0xff]  }
 0x289   :  { %v8465_v53 = vld [vmem:[#allocation8 + $0x704] ss:$16 sps:$4 sm:$0xff]   ;;  %v8504_v0 = vld [vmem:[#allocation8 + $0x70c] ss:$16 sps:$4 sm:$0xff]   ;;  %v8463_v36 = vld [vmem:[#allocation8 + $0x700] ss:$16 sps:$4 sm:$0xff]  }
 0x28a   :  { %v8474_v1 = vld [vmem:[#allocation8 + $0x724] ss:$16 sps:$4 sm:$0xff]  }
 0x28b   :  { %4166 = vmatmul.mubr.bf16.gmra.mrb[172].mxu0 %v9391_v10 }
 0x28c   :  { %4938 = vmatmul.mubr.bf16.gmra.mrb[172].mxu1 %v9391_v10  ;;  %4175 = vmatprep.mubr.bf16.mxu0 %v9414_v7  ;;  %v8439_v10 = vld [vmem:[#allocation8 + $0x600] ss:$16 sps:$4 sm:$0xff]  }
 0x28d   :  { %4947 = vmatprep.mubr.bf16.mxu1 %v9414_v7  ;;  %v8471_v7 = vld [vmem:[#allocation8 + $0x62c] ss:$16 sps:$4 sm:$0xff]  }
 0x293   :  { %4176 = vmatmul.mubr.bf16.gmra.mrb[176].mxu0 %v9411_v31 }
 0x294   :  { %4948 = vmatmul.mubr.bf16.gmra.mrb[176].mxu1 %v9411_v31  ;;  %4185 = vmatprep.mubr.bf16.mxu0 %v9434_v43  ;;  %v8466_v31 = vld [vmem:[#allocation8 + $0x608] ss:$16 sps:$4 sm:$0xff]  }
 0x295   :  { %4957 = vmatprep.mubr.bf16.mxu1 %v9434_v43  ;;  %v8447_v43 = vld [vmem:[#allocation8 + $0x644] ss:$16 sps:$4 sm:$0xff]  }
 0x29b   :  { %4186 = vmatmul.mubr.bf16.gmra.mrb[180].mxu0 %v9431_v6 }
 0x29c   :  { %4958 = vmatmul.mubr.bf16.gmra.mrb[180].mxu1 %v9431_v6  ;;  %4195 = vmatprep.mubr.bf16.mxu0 %v9456_v21  ;;  %v8442_v6 = vld [vmem:[#allocation8 + $0x620] ss:$16 sps:$4 sm:$0xff]  }
 0x29d   :  { %4967 = vmatprep.mubr.bf16.mxu1 %v9456_v21  ;;  %v8469_v21 = vld [vmem:[#allocation8 + $0x628] ss:$16 sps:$4 sm:$0xff]  }
 0x2a3   :  { %4196 = vmatmul.mubr.bf16.gmra.mrb[184].mxu0 %v10783_v58 }
 0x2a4   :  { %4968 = vmatmul.mubr.bf16.gmra.mrb[184].mxu1 %v10783_v58  ;;  %4205 = vmatprep.mubr.bf16.mxu0 %v9486_v14  ;;  %v8502_v58 = vld [vmem:[#allocation8 + $0x708] ss:$16 sps:$4 sm:$0xff]  }
 0x2a5   :  { %4977 = vmatprep.mubr.bf16.mxu1 %v9486_v14  ;;  %v8450_v14 = vld [vmem:[#allocation8 + $0x664] ss:$16 sps:$4 sm:$0xff]  }
 0x2ab   :  { %4206 = vmatmul.mubr.bf16.gmra.mrb[188].mxu0 %v9479_v30 }
 0x2ac   :  { %4978 = vmatmul.mubr.bf16.gmra.mrb[188].mxu1 %v9479_v30  ;;  %4248 = vmatprep.mubr.bf16.mxu0 %v9501_v23  ;;  %v8477_v30 = vld [vmem:[#allocation8 + $0x64c] ss:$16 sps:$4 sm:$0xff]  }
 0x2ad   :  { %5020 = vmatprep.mubr.bf16.mxu1 %v9501_v23  ;;  %v8475_v23 = vld [vmem:[#allocation8 + $0x648] ss:$16 sps:$4 sm:$0xff]  }
 0x2b3   :  { %4249 = vmatmul.mubr.bf16.vlgmr.msra.gmra.mrb[128].mxu0 %v9498_v47 }
 0x2b4   :  { %5021 = vmatmul.mubr.bf16.vlgmr.msra.gmra.mrb[128].mxu1 %v9498_v47  ;;  %4258 = vmatprep.mubr.bf16.mxu0 %v9521_v22  ;;  %v8480_v47 = vld [vmem:[#allocation8 + $0x66c] ss:$16 sps:$4 sm:$0xff]  }
 0x2b5   :  { %4410 = vmatpush1.bf16.msra.mxu0 %v8439_v10  ;;  %5030 = vmatprep.mubr.bf16.mxu1 %v9521_v22  ;;  %v8448_v22 = vld [vmem:[#allocation8 + $0x660] ss:$16 sps:$4 sm:$0xff]  }
 0x2b6   :  { %4411 = vmatprep.subr.bf16.mxu0 %v8444_v48  ;;  %5182 = vmatpush1.bf16.msra.mxu1 %v8466_v31  ;;  %v10785_v10 = vld [vmem:[#allocation29_spill] sm:$0xff]  ;;  %v10786_v48 = vld [vmem:[#allocation34_spill] sm:$0xff] }
 0x2b7   :  { %5183 = vmatprep.subr.bf16.mxu1 %v8471_v7  ;;  %v8472_v31 = vld [vmem:[#allocation8 + $0x720] ss:$16 sps:$4 sm:$0xff]   ;;  %v8483_v7 = vld [vmem:[#allocation8 + $0x744] ss:$16 sps:$4 sm:$0xff]  }
 0x2b9   :  { %4412 = vmatpush1.bf16.msra.mxu0 %v8442_v6  ;;  %v8505_v6 = vld [vmem:[#allocation8 + $0x728] ss:$16 sps:$4 sm:$0xff]  }
 0x2ba   :  { %4413 = vmatprep.subr.bf16.mxu0 %v8447_v43  ;;  %5184 = vmatpush1.bf16.msra.mxu1 %v8469_v21  ;;  %v8513_v43 = vld [vmem:[#allocation8 + $0x74c] ss:$16 sps:$4 sm:$0xff]   ;;  %v8481_v21 = vld [vmem:[#allocation8 + $0x740] ss:$16 sps:$4 sm:$0xff]  }
 0x2bb   :  { %4259 = vmatmul.mubr.bf16.gmra.mrb[132].mxu0 %v9518_v33  ;;  %5185 = vmatprep.subr.bf16.mxu1 %v8477_v30  ;;  %v8492_v30 = vld [vmem:[#allocation8 + $0x764] ss:$16 sps:$4 sm:$0xff]  }
 0x2bc   :  { %5031 = vmatmul.mubr.bf16.gmra.mrb[132].mxu1 %v9518_v33  ;;  %4268 = vmatprep.mubr.bf16.mxu0 %v9541_v45  ;;  %v8489_v33 = vld [vmem:[#allocation8 + $0x6ac] ss:$16 sps:$4 sm:$0xff]  }
 0x2bd   :  { %5040 = vmatprep.mubr.bf16.mxu1 %v9541_v45  ;;  %4414 = vmatpush1.bf16.msra.mxu0 %v8445_v24  ;;  %v8454_v45 = vld [vmem:[#allocation8 + $0x6a0] ss:$16 sps:$4 sm:$0xff]   ;;  %v8511_v24 = vld [vmem:[#allocation8 + $0x748] ss:$16 sps:$4 sm:$0xff]  }
 0x2be   :  { %4415 = vmatprep.subr.bf16.mxu0 %v8450_v14  ;;  %5186 = vmatpush1.bf16.msra.mxu1 %v8475_v23  ;;  %v10787_v14 = vld [vmem:[#allocation33_spill] sm:$0xff]  ;;  %v8516_v23 = vld [vmem:[#allocation8 + $0x76c] ss:$16 sps:$4 sm:$0xff]  }
 0x2bf   :  { %5187 = vmatprep.subr.bf16.mxu1 %v8480_v47  ;;  %v8490_v47 = vld [vmem:[#allocation8 + $0x760] ss:$16 sps:$4 sm:$0xff]  }
 0x2c1   :  { %4416 = vmatpush1.bf16.msra.mxu0 %v8448_v22  ;;  %v8501_v22 = vld [vmem:[#allocation8 + $0x784] ss:$16 sps:$4 sm:$0xff]  }
 0x2c2   :  { %4417 = vmatprep.subr.bf16.mxu0 %v8453_v55  ;;  %5188 = vmatpush1.bf16.msra.mxu1 %v8478_v34  ;;  %v8514_v55 = vld [vmem:[#allocation8 + $0x768] ss:$16 sps:$4 sm:$0xff]   ;;  %v8522_v34 = vld [vmem:[#allocation8 + $0x78c] ss:$16 sps:$4 sm:$0xff]  }
 0x2c3   :  { %4269 = vmatmul.mubr.bf16.gmra.mrb[136].mxu0 %v9538_v12  ;;  %5189 = vmatprep.subr.bf16.mxu1 %v8486_v44  ;;  %v8499_v44 = vld [vmem:[#allocation8 + $0x780] ss:$16 sps:$4 sm:$0xff]  }
 0x2c4   :  { %5041 = vmatmul.mubr.bf16.gmra.mrb[136].mxu1 %v9538_v12  ;;  %4278 = vmatprep.mubr.bf16.mxu0 %v9561_v49  ;;  %v8498_v12 = vld [vmem:[#allocation8 + $0x6ec] ss:$16 sps:$4 sm:$0xff]  }
 0x2c5   :  { %5050 = vmatprep.mubr.bf16.mxu1 %v9561_v49  ;;  %4418 = vmatpush1.bf16.msra.mxu0 %v8451_v17  ;;  %v10784_v49 = vld [vmem:[#allocation30_spill] sm:$0xff]  ;;  %v8510_v17 = vld [vmem:[#allocation8 + $0x7a4] ss:$16 sps:$4 sm:$0xff]  }
 0x2c6   :  { %4419 = vmatprep.subr.bf16.mxu0 %v8456_v11  ;;  %5190 = vmatpush1.bf16.msra.mxu1 %v8484_v46  ;;  %v8520_v11 = vld [vmem:[#allocation8 + $0x788] ss:$16 sps:$4 sm:$0xff]   ;;  %v8525_v46 = vld [vmem:[#allocation8 + $0x7ac] ss:$16 sps:$4 sm:$0xff]  }
 0x2c7   :  { %5191 = vmatprep.subr.bf16.mxu1 %v8489_v33  ;;  %v8519_v33 = vld [vmem:[#allocation8 + $0x7c4] ss:$16 sps:$4 sm:$0xff]  }
 0x2c9   :  { %4420 = vmatpush1.bf16.msra.mxu0 %v8454_v45  ;;  %v8523_v45 = vld [vmem:[#allocation8 + $0x7a8] ss:$16 sps:$4 sm:$0xff]  }
 0x2ca   :  { %4421 = vmatprep.subr.bf16.mxu0 %v8459_v29  ;;  %5192 = vmatpush1.bf16.msra.mxu1 %v8487_v51  ;;  %v8531_v29 = vld [vmem:[#allocation8 + $0x7cc] ss:$16 sps:$4 sm:$0xff]   ;;  %v8517_v51 = vld [vmem:[#allocation8 + $0x7c0] ss:$16 sps:$4 sm:$0xff]  }
 0x2cb   :  { %4279 = vmatmul.mubr.bf16.gmra.mrb[140].mxu0 %v9558_v32  ;;  %5193 = vmatprep.subr.bf16.mxu1 %v8495_v15  ;;  %v8528_v15 = vld [vmem:[#allocation8 + $0x7e4] ss:$16 sps:$4 sm:$0xff]  }
 0x2cc   :  { %5051 = vmatmul.mubr.bf16.gmra.mrb[140].mxu1 %v9558_v32  ;;  %4288 = vmatprep.mubr.bf16.mxu0 %v10784_v49  ;;  %v8507_v32 = vld [vmem:[#allocation8 + $0x72c] ss:$16 sps:$4 sm:$0xff]  }
 0x2cd   :  { %5060 = vmatprep.mubr.bf16.mxu1 %v10784_v49  ;;  %4422 = vmatpush1.bf16.msra.mxu0 %v8457_v42  ;;  %v8529_v42 = vld [vmem:[#allocation8 + $0x7c8] ss:$16 sps:$4 sm:$0xff]  }
 0x2ce   :  { %4423 = vmatprep.subr.bf16.mxu0 %v8462_v5  ;;  %5194 = vmatpush1.bf16.msra.mxu1 %v8493_v52  ;;  %v8532_v5 = vld [vmem:[#allocation8 + $0x7e8] ss:$16 sps:$4 sm:$0xff]  }
 0x2cf   :  { %5195 = vmatprep.subr.bf16.mxu1 %v8498_v12  ;;  %v10794_v52 = vld [vmem:[#allocation28_spill] sm:$0xff]  ;;  %v10795_v12 = vld [vmem:[#allocation27_spill] sm:$0xff] }
 0x2d0   :  { %v10796_v49 = vld [vmem:[#allocation32_spill] sm:$0xff] }
 0x2d1   :  { %4424 = vmatpush1.bf16.msra.mxu0 %v8460_v18  ;;  %v10797_v18 = vld [vmem:[#allocation31_spill] sm:$0xff] }
 0x2d2   :  { %4425 = vmatprep.subr.bf16.mxu0 %v8465_v53  ;;  %5196 = vmatpush1.bf16.msra.mxu1 %v8496_v4  ;;  %v10798_v53 = vld [vmem:[#allocation36_spill] sm:$0xff]  ;;  %v10799_v4 = vld [vmem:[#allocation35_spill] sm:$0xff] }
 0x2d3   :  { %4289 = vmatmul.mubr.bf16.gmra.mrb[144].mxu0 %v10785_v10  ;;  %5197 = vmatprep.subr.bf16.mxu1 %v8504_v0  ;;  %v10800_v0 = vld [vmem:[#allocation38_spill] sm:$0xff] }
 0x2d4   :  { %5061 = vmatmul.mubr.bf16.gmra.mrb[144].mxu1 %v10785_v10  ;;  %4298 = vmatprep.mubr.bf16.mxu0 %v10786_v48  ;;  %v10804_v10 = vld [vmem:[#allocation42_spill] sm:$0xff] }
 0x2d5   :  { %5070 = vmatprep.mubr.bf16.mxu1 %v10786_v48  ;;  %4426 = vmatpush1.bf16.msra.mxu0 %v8463_v36  ;;  %v10801_v36 = vld [vmem:[#allocation37_spill] sm:$0xff]  ;;  %v10806_v48 = vld [vmem:[#allocation44_spill] sm:$0xff] }
 0x2d6   :  { %4427 = vmatprep.subr.bf16.mxu0 %v8474_v1  ;;  %5198 = vmatpush1.bf16.msra.mxu1 %v8502_v58  ;;  %v10802_v1 = vld [vmem:[#allocation40_spill] sm:$0xff]  ;;  %v10803_v58 = vld [vmem:[#allocation39_spill] sm:$0xff] }
 0x2d7   :  { %5199 = vmatprep.subr.bf16.mxu1 %v8507_v32  ;;  %v10805_v32 = vld [vmem:[#allocation41_spill] sm:$0xff] }
 0x2d9   :  { %4428 = vmatpush1.bf16.msra.mxu0 %v8472_v31  ;;  %v10807_v31 = vld [vmem:[#allocation43_spill] sm:$0xff] }
 0x2da   :  { %4429 = vmatprep.subr.bf16.mxu0 %v8483_v7  ;;  %5200 = vmatpush1.bf16.msra.mxu1 %v8505_v6  ;;  %v10808_v7 = vld [vmem:[#allocation46_spill] sm:$0xff]  ;;  %v10809_v6 = vld [vmem:[#allocation45_spill] sm:$0xff] }
 0x2db   :  { %4299 = vmatmul.mubr.bf16.gmra.mrb[148].mxu0 %v10787_v14  ;;  %5201 = vmatprep.subr.bf16.mxu1 %v8513_v43  ;;  %v10810_v43 = vld [vmem:[#allocation48_spill] sm:$0xff] }
 0x2dc   :  { %5071 = vmatmul.mubr.bf16.gmra.mrb[148].mxu1 %v10787_v14  ;;  %4308 = vmatprep.mubr.bf16.mxu0 %v9621_v56  ;;  %v10811_v14 = vld [vmem:[#allocation47_spill] sm:$0xff] }
 0x2dd   :  { %5080 = vmatprep.mubr.bf16.mxu1 %v9621_v56  ;;  %4430 = vmatpush1.bf16.msra.mxu0 %v8481_v21  ;;  %v8508_v56 = vld [vmem:[#allocation8 + $0x7a0] ss:$16 sps:$4 sm:$0xff]   ;;  %v8546_v21 = vld [vmem:[#allocation10 + $0x28] sm:$0xff]  }
 0x2de   :  { %4431 = vmatprep.subr.bf16.mxu0 %v8492_v30  ;;  %5202 = vmatpush1.bf16.msra.mxu1 %v8511_v24  ;;  %v8547_v30 = vld [vmem:[#allocation10 + $0x70] sm:$0xff]  }
 0x2df   :  { %5203 = vmatprep.subr.bf16.mxu1 %v8516_v23  ;;  %v8548_v24 = vld [vmem:[#allocation10 + $0x30] sm:$0xff]   ;;  %v8549_v23 = vld [vmem:[#allocation10 + $0x78] sm:$0xff]  }
 0x2e1   :  { %4432 = vmatpush1.bf16.msra.mxu0 %v8490_v47  ;;  %v8550_v47 = vld [vmem:[#allocation10 + $0x38] sm:$0xff]  }
 0x2e2   :  { %4433 = vmatprep.subr.bf16.mxu0 %v8501_v22  ;;  %5204 = vmatpush1.bf16.msra.mxu1 %v8514_v55 }
 0x2e3   :  { %4309 = vmatmul.mubr.bf16.gmra.mrb[152].mxu0 %v9618_v28  ;;  %5205 = vmatprep.subr.bf16.mxu1 %v8522_v34 }
 0x2e4   :  { %5081 = vmatmul.mubr.bf16.gmra.mrb[152].mxu1 %v9618_v28  ;;  %4318 = vmatprep.mubr.bf16.mxu0 %v9641_v54  ;;  %v8534_v28 = vld [vmem:[#allocation8 + $0x7ec] ss:$16 sps:$4 sm:$0xff]  }
 0x2e5   :  { %5090 = vmatprep.mubr.bf16.mxu1 %v9641_v54  ;;  %4434 = vmatpush1.bf16.msra.mxu0 %v8499_v44  ;;  %v8526_v54 = vld [vmem:[#allocation8 + $0x7e0] ss:$16 sps:$4 sm:$0xff]  }
 0x2e6   :  { %4435 = vmatprep.subr.bf16.mxu0 %v8510_v17  ;;  %5206 = vmatpush1.bf16.msra.mxu1 %v8520_v11 }
 0x2e7   :  { %5207 = vmatprep.subr.bf16.mxu1 %v8525_v46 }
 0x2e9   :  { %4436 = vmatpush1.bf16.msra.mxu0 %v8508_v56 }
 0x2ea   :  { %4437 = vmatprep.subr.bf16.mxu0 %v8519_v33  ;;  %5208 = vmatpush1.bf16.msra.mxu1 %v8523_v45 }
 0x2eb   :  { %4319 = vmatmul.mubr.bf16.gmra.mrb[156].mxu0 %v9638_v61  ;;  %5209 = vmatprep.subr.bf16.mxu1 %v8531_v29 }
 0x2ec   :  { %5091 = vmatmul.mubr.bf16.gmra.mrb[156].mxu1 %v9638_v61  ;;  %4328 = vmatprep.mubr.bf16.mxu0 %v9661_v27  ;;  %v10788_v61 = vld [vmem:[#allocation22_spill] sm:$0xff] }
 0x2ed   :  { %5100 = vmatprep.mubr.bf16.mxu1 %v9661_v27  ;;  %4438 = vmatpush1.bf16.msra.mxu0 %v8517_v51  ;;  %v8536_v27 = vld [vmem:[#allocation10] sm:$0xff]  }
 0x2ee   :  { %4439 = vmatprep.subr.bf16.mxu0 %v8528_v15  ;;  %5210 = vmatpush1.bf16.msra.mxu1 %v8529_v42 }
 0x2ef   :  { %5211 = vmatprep.subr.bf16.mxu1 %v8534_v28 }
 0x2f1   :  { %4440 = vmatpush1.bf16.msra.mxu0 %v8526_v54 }
 0x2f2   :  { %5212 = vmatpush1.bf16.msra.mxu1 %v8532_v5 }
 0x2f3   :  { %4329 = vmatmul.mubr.bf16.gmra.mrb[160].mxu0 %v9658_v35 }
 0x2f4   :  { %5101 = vmatmul.mubr.bf16.gmra.mrb[160].mxu1 %v9658_v35  ;;  %4338 = vmatprep.mubr.bf16.mxu0 %v9681_v40  ;;  %v8535_v35 = vld [vmem:[#allocation10 + $0x40] sm:$0xff]  }
 0x2f5   :  { %5110 = vmatprep.mubr.bf16.mxu1 %v9681_v40  ;;  %7264 = vmatprep.subr.bf16.mxu0 %v8535_v35  ;;  %v10789_v40 = vld [vmem:[#allocation21_spill] sm:$0xff] }
 0x2f6   :  { %7560 = vmatprep.subr.bf16.mxu1 %v8535_v35 }
 0x2fb   :  { %4339 = vmatmul.mubr.bf16.gmra.mrb[164].mxu0 %v9678_v26 }
 0x2fc   :  { %5111 = vmatmul.mubr.bf16.gmra.mrb[164].mxu1 %v9678_v26  ;;  %4348 = vmatprep.mubr.bf16.mxu0 %v9701_v2  ;;  %v8537_v26 = vld [vmem:[#allocation10 + $0x48] sm:$0xff]  }
 0x2fd   :  { %5120 = vmatprep.mubr.bf16.mxu1 %v9701_v2  ;;  %v8538_v2 = vld [vmem:[#allocation10 + $0x8] sm:$0xff]  }
 0x303   :  { %4349 = vmatmul.mubr.bf16.gmra.mrb[168].mxu0 %v9698_v57 }
 0x304   :  { %5121 = vmatmul.mubr.bf16.gmra.mrb[168].mxu1 %v9698_v57  ;;  %4358 = vmatprep.mubr.bf16.mxu0 %v9721_v8  ;;  %v10790_v57 = vld [vmem:[#allocation24_spill] sm:$0xff] }
 0x305   :  { %5130 = vmatprep.mubr.bf16.mxu1 %v9721_v8  ;;  %v8540_v8 = vld [vmem:[#allocation10 + $0x10] sm:$0xff]  }
 0x30b   :  { %4359 = vmatmul.mubr.bf16.gmra.mrb[172].mxu0 %v9718_v41 }
 0x30c   :  { %5131 = vmatmul.mubr.bf16.gmra.mrb[172].mxu1 %v9718_v41  ;;  %4368 = vmatprep.mubr.bf16.mxu0 %v9741_v63  ;;  %v8539_v41 = vld [vmem:[#allocation10 + $0x50] sm:$0xff]  }
 0x30d   :  { %5140 = vmatprep.mubr.bf16.mxu1 %v9741_v63  ;;  %v10791_v63 = vld [vmem:[#allocation23_spill] sm:$0xff] }
 0x313   :  { %4369 = vmatmul.mubr.bf16.gmra.mrb[176].mxu0 %v9738_v50 }
 0x314   :  { %5141 = vmatmul.mubr.bf16.gmra.mrb[176].mxu1 %v9738_v50  ;;  %4378 = vmatprep.mubr.bf16.mxu0 %v9761_v59  ;;  %v8541_v50 = vld [vmem:[#allocation10 + $0x58] sm:$0xff]  }
 0x315   :  { %5150 = vmatprep.mubr.bf16.mxu1 %v9761_v59  ;;  %v8542_v59 = vld [vmem:[#allocation10 + $0x18] sm:$0xff]  }
 0x31b   :  { %4379 = vmatmul.mubr.bf16.gmra.mrb[180].mxu0 %v9758_v62 }
 0x31c   :  { %5151 = vmatmul.mubr.bf16.gmra.mrb[180].mxu1 %v9758_v62  ;;  %4388 = vmatprep.mubr.bf16.mxu0 %v9781_v9  ;;  %v10792_v62 = vld [vmem:[#allocation26_spill] sm:$0xff] }
 0x31d   :  { %5160 = vmatprep.mubr.bf16.mxu1 %v9781_v9  ;;  %v8544_v9 = vld [vmem:[#allocation10 + $0x20] sm:$0xff]  }
 0x323   :  { %4389 = vmatmul.mubr.bf16.gmra.mrb[184].mxu0 %v9778_v60 }
 0x324   :  { %5161 = vmatmul.mubr.bf16.gmra.mrb[184].mxu1 %v9778_v60  ;;  %4398 = vmatprep.mubr.bf16.mxu0 %v9801_v3  ;;  %v8543_v60 = vld [vmem:[#allocation10 + $0x60] sm:$0xff]  }
 0x325   :  { %5170 = vmatprep.mubr.bf16.mxu1 %v9801_v3  ;;  %v10793_v3 = vld [vmem:[#allocation25_spill] sm:$0xff] }
 0x32b   :  { %4399 = vmatmul.mubr.bf16.gmra.mrb[188].mxu0 %v9798_v38 }
 0x32c   :  { %5171 = vmatmul.mubr.bf16.gmra.mrb[188].mxu1 %v9798_v38  ;;  %4441 = vmatprep.mubr.bf16.mxu0 %v10788_v61  ;;  %v8545_v38 = vld [vmem:[#allocation10 + $0x68] sm:$0xff]  }
 0x32d   :  { %5213 = vmatprep.mubr.bf16.mxu1 %v10788_v61 }
 0x333   :  { %4442 = vmatmul.mubr.bf16.vlgmr.msra.gmra.mrb[128].mxu0 %v10789_v40 }
 0x334   :  { %5214 = vmatmul.mubr.bf16.vlgmr.msra.gmra.mrb[128].mxu1 %v10789_v40  ;;  %4451 = vmatprep.mubr.bf16.mxu0 %v10790_v57 }
 0x335   :  { %5223 = vmatprep.mubr.bf16.mxu1 %v10790_v57  ;;  %7265 = vmatpush3.bf16.msra.mxu0 %v8536_v27 }
 0x336   :  { %7568 = vmatpush3.bf16.msra.mxu1 %v8536_v27  ;;  %7266 = vmatprep.subr.bf16.mxu0 %v8537_v26 }
 0x337   :  { %7561 = vmatprep.subr.bf16.mxu1 %v8537_v26 }
 0x339   :  { %7267 = vmatpush3.bf16.msra.mxu0 %v8538_v2 }
 0x33a   :  { %7268 = vmatprep.subr.bf16.mxu0 %v8539_v41  ;;  %7569 = vmatpush3.bf16.msra.mxu1 %v8538_v2 }
 0x33b   :  { %4452 = vmatmul.mubr.bf16.gmra.mrb[132].mxu0 %v10791_v63  ;;  %7562 = vmatprep.subr.bf16.mxu1 %v8539_v41 }
 0x33c   :  { %5224 = vmatmul.mubr.bf16.gmra.mrb[132].mxu1 %v10791_v63  ;;  %4461 = vmatprep.mubr.bf16.mxu0 %v10792_v62 }
 0x33d   :  { %5233 = vmatprep.mubr.bf16.mxu1 %v10792_v62  ;;  %7269 = vmatpush3.bf16.msra.mxu0 %v8540_v8 }
 0x33e   :  { %7270 = vmatprep.subr.bf16.mxu0 %v8541_v50  ;;  %7570 = vmatpush3.bf16.msra.mxu1 %v8540_v8 }
 0x33f   :  { %7563 = vmatprep.subr.bf16.mxu1 %v8541_v50 }
 0x341   :  { %7271 = vmatpush3.bf16.msra.mxu0 %v8542_v59 }
 0x342   :  { %7272 = vmatprep.subr.bf16.mxu0 %v8543_v60  ;;  %7571 = vmatpush3.bf16.msra.mxu1 %v8542_v59 }
 0x343   :  { %4462 = vmatmul.mubr.bf16.gmra.mrb[136].mxu0 %v10793_v3  ;;  %7564 = vmatprep.subr.bf16.mxu1 %v8543_v60 }
 0x344   :  { %5234 = vmatmul.mubr.bf16.gmra.mrb[136].mxu1 %v10793_v3  ;;  %4471 = vmatprep.mubr.bf16.mxu0 %v10794_v52 }
 0x345   :  { %5243 = vmatprep.mubr.bf16.mxu1 %v10794_v52  ;;  %7273 = vmatpush3.bf16.msra.mxu0 %v8544_v9 }
 0x346   :  { %7274 = vmatprep.subr.bf16.mxu0 %v8545_v38  ;;  %7572 = vmatpush3.bf16.msra.mxu1 %v8544_v9 }
 0x347   :  { %7565 = vmatprep.subr.bf16.mxu1 %v8545_v38 }
 0x349   :  { %7275 = vmatpush3.bf16.msra.mxu0 %v8546_v21 }
 0x34a   :  { %7573 = vmatpush3.bf16.msra.mxu1 %v8546_v21  ;;  %7276 = vmatprep.subr.bf16.mxu0 %v8547_v30 }
 0x34b   :  { %4472 = vmatmul.mubr.bf16.gmra.mrb[140].mxu0 %v10795_v12  ;;  %7566 = vmatprep.subr.bf16.mxu1 %v8547_v30 }
 0x34c   :  { %5244 = vmatmul.mubr.bf16.gmra.mrb[140].mxu1 %v10795_v12  ;;  %4481 = vmatprep.mubr.bf16.mxu0 %v10796_v49 }
 0x34d   :  { %5253 = vmatprep.mubr.bf16.mxu1 %v10796_v49  ;;  %7277 = vmatpush3.bf16.msra.mxu0 %v8548_v24 }
 0x34e   :  { %7574 = vmatpush3.bf16.msra.mxu1 %v8548_v24  ;;  %7278 = vmatprep.subr.bf16.mxu0 %v8549_v23 }
 0x34f   :  { %7567 = vmatprep.subr.bf16.mxu1 %v8549_v23 }
 0x351   :  { %7279 = vmatpush3.bf16.msra.mxu0 %v8550_v47 }
 0x352   :  { %7575 = vmatpush3.bf16.msra.mxu1 %v8550_v47 }
 0x353   :  { %4482 = vmatmul.mubr.bf16.gmra.mrb[144].mxu0 %v10797_v18 }
 0x354   :  { %5254 = vmatmul.mubr.bf16.gmra.mrb[144].mxu1 %v10797_v18  ;;  %4491 = vmatprep.mubr.bf16.mxu0 %v10798_v53 }
 0x355   :  { %5263 = vmatprep.mubr.bf16.mxu1 %v10798_v53 }
 0x35b   :  { %4492 = vmatmul.mubr.bf16.gmra.mrb[148].mxu0 %v10799_v4 }
 0x35c   :  { %5264 = vmatmul.mubr.bf16.gmra.mrb[148].mxu1 %v10799_v4  ;;  %4501 = vmatprep.mubr.bf16.mxu0 %v10800_v0 }
 0x35d   :  { %5273 = vmatprep.mubr.bf16.mxu1 %v10800_v0 }
 0x363   :  { %4502 = vmatmul.mubr.bf16.gmra.mrb[152].mxu0 %v10801_v36 }
 0x364   :  { %5274 = vmatmul.mubr.bf16.gmra.mrb[152].mxu1 %v10801_v36  ;;  %4511 = vmatprep.mubr.bf16.mxu0 %v10802_v1 }
 0x365   :  { %5283 = vmatprep.mubr.bf16.mxu1 %v10802_v1 }
 0x36b   :  { %4512 = vmatmul.mubr.bf16.gmra.mrb[156].mxu0 %v10803_v58 }
 0x36c   :  { %5284 = vmatmul.mubr.bf16.gmra.mrb[156].mxu1 %v10803_v58  ;;  %4521 = vmatprep.mubr.bf16.mxu0 %v10804_v10 }
 0x36d   :  { %5293 = vmatprep.mubr.bf16.mxu1 %v10804_v10 }
 0x373   :  { %4522 = vmatmul.mubr.bf16.gmra.mrb[160].mxu0 %v10805_v32 }
 0x374   :  { %5294 = vmatmul.mubr.bf16.gmra.mrb[160].mxu1 %v10805_v32  ;;  %4531 = vmatprep.mubr.bf16.mxu0 %v10806_v48 }
 0x375   :  { %5303 = vmatprep.mubr.bf16.mxu1 %v10806_v48 }
 0x37b   :  { %4532 = vmatmul.mubr.bf16.gmra.mrb[164].mxu0 %v10807_v31 }
 0x37c   :  { %5304 = vmatmul.mubr.bf16.gmra.mrb[164].mxu1 %v10807_v31  ;;  %4541 = vmatprep.mubr.bf16.mxu0 %v10808_v7 }
 0x37d   :  { %5313 = vmatprep.mubr.bf16.mxu1 %v10808_v7 }
 0x383   :  { %4542 = vmatmul.mubr.bf16.gmra.mrb[168].mxu0 %v10809_v6 }
 0x384   :  { %5314 = vmatmul.mubr.bf16.gmra.mrb[168].mxu1 %v10809_v6  ;;  %4551 = vmatprep.mubr.bf16.mxu0 %v10810_v43 }
 0x385   :  { %5323 = vmatprep.mubr.bf16.mxu1 %v10810_v43 }
 0x38b   :  { %4552 = vmatmul.mubr.bf16.gmra.mrb[172].mxu0 %v10811_v14 }
 0x38c   :  { %5324 = vmatmul.mubr.bf16.gmra.mrb[172].mxu1 %v10811_v14  ;;  %4561 = vmatprep.mubr.bf16.mxu0 %v9746_v13 }
 0x38d   :  { %5333 = vmatprep.mubr.bf16.mxu1 %v9746_v13  ;;  %v10812_v13 = vld [vmem:[#allocation49_spill] sm:$0xff] }
 0x393   :  { %4562 = vmatmul.mubr.bf16.gmra.mrb[176].mxu0 %v9743_v20 }
 0x394   :  { %5334 = vmatmul.mubr.bf16.gmra.mrb[176].mxu1 %v9743_v20  ;;  %4571 = vmatprep.mubr.bf16.mxu0 %v9766_v37  ;;  %v8551_v20 = vld [vmem:[#allocation10 + $0xc0] sm:$0xff]  }
 0x395   :  { %5343 = vmatprep.mubr.bf16.mxu1 %v9766_v37  ;;  %7376 = vmatprep.subr.bf16.mxu1 %v8551_v20  ;;  %v10813_v37 = vld [vmem:[#allocation19_spill] sm:$0xff] }
 0x396   :  { %v10815_v55 = vsub.s32 2, %v10813_v37 }
 0x39b   :  { %4572 = vmatmul.mubr.bf16.gmra.mrb[180].mxu0 %v9763_v39 }
 0x39c   :  { %5344 = vmatmul.mubr.bf16.gmra.mrb[180].mxu1 %v9763_v39  ;;  %4581 = vmatprep.mubr.bf16.mxu0 %v9786_v19  ;;  %v2528_v39 = vld [vmem:[%s10709_s4] sm:$0xf] }
 0x39d   :  { %5353 = vmatprep.mubr.bf16.mxu1 %v9786_v19  ;;  %v10814_v19 = vsub.s32 0, %v10813_v37  ;;  %v9962_v34 = vrot.slane %v2528_v39, %v10815_v55 }
 0x39f   :  { %v9958_v22 = vrot.slane %v2528_v39, %v10814_v19 }
 0x3a3   :  { %4582 = vmatmul.mubr.bf16.gmra.mrb[184].mxu0 %v10812_v13 }
 0x3a4   :  { %5354 = vmatmul.mubr.bf16.gmra.mrb[184].mxu1 %v10812_v13  ;;  %4591 = vmatprep.mubr.bf16.mxu0 %v9805_v16 }
 0x3a5   :  { %5363 = vmatprep.mubr.bf16.mxu1 %v9805_v16  ;;  %v10816_v16 = vsub.s32 1, %v10813_v37 }
 0x3a7   :  { %v9966_v44 = vrot.slane %v2528_v39, %v10816_v16 }
 0x3ab   :  { %4592 = vmatmul.mubr.bf16.gmra.mrb[188].mxu0 %v9803_v25 }
 0x3ac   :  { %5364 = vmatmul.mubr.bf16.gmra.mrb[188].mxu1 %v9803_v25  ;;  %v10817_v25 = vsub.s32 3, %v10813_v37 }
 0x3ae   :  { %v9970_v17 = vrot.slane %v2528_v39, %v10817_v25 }
 0x406   :  { %v4443_v11 = vpop.f32.mrb[128].mxu0 }
 0x407   :  { %v7576_v46 = vadd.f32 %v4443_v11, %v9958_v22  ;;  %v5215_v56 = vpop.f32.mrb[128].mxu1  ;;  %v4445_v33 = vpop.f32.mrb[129].mxu0 }
 0x408   :  { %v7640_v45 = vadd.f32 %v5215_v56, %v9962_v34  ;;  %v7577_v29 = vadd.f32 %v4445_v33, %v9966_v44  ;;  %v5217_v51 = vpop.f32.mrb[129].mxu1  ;;  %v4447_v15 = vpop.f32.mrb[130].mxu0 }
 0x409   :  { %v7641_v42 = vadd.f32 %v5217_v51, %v9970_v17  ;;  %v7578_v28 = vadd.f32 %v4447_v15, %v9958_v22  ;;  %v5219_v54 = vpop.f32.mrb[130].mxu1  ;;  %v4449_v5 = vpop.f32.mrb[131].mxu0  ;;  %v5374_v26 = vmax.f32 %v7576_v46, 0.0 }
 0x40a   :  { %v7642_v61 = vadd.f32 %v5219_v54, %v9962_v34  ;;  %v7579_v35 = vadd.f32 %v4449_v5, %v9966_v44  ;;  %v5221_v27 = vpop.f32.mrb[131].mxu1  ;;  %v5376_v2 = vmax.f32 %v7640_v45, 0.0  ;;  %v5375_v41 = vmax.f32 %v7577_v29, 0.0 }
 0x40b   :  { %v5378_v40 = vmax.f32 %v7578_v28, 0.0  ;;  %v7643_v57 = vadd.f32 %v5221_v27, %v9970_v17  ;;  %v5377_v63 = vmax.f32 %v7641_v42, 0.0 }
 0x40c   :  { %v5380_v8 = vmax.f32 %v7642_v61, 0.0  ;;  %v5379_v50 = vmax.f32 %v7579_v35, 0.0 }
 0x40d   :  { %v5502_v62 = vpack.c.bf16 %v5378_v40, %v5374_v26  ;;  %v5381_v59 = vmax.f32 %v7643_v57, 0.0 }
 0x40e   :  { %v9980_v60 = vpack.c.bf16 %v5380_v8, %v5376_v2  ;;  %v5503_v9 = vpack.c.bf16 %v5379_v50, %v5375_v41  ;;  %v4453_v38 = vpop.f32.mrb[132].mxu0 }
 0x40f   :  { %v9982_v3 = vpack.c.bf16 %v5381_v59, %v5377_v63  ;;  %v7580_v52 = vadd.f32 %v4453_v38, %v9958_v22  ;;  %v5225_v12 = vpop.f32.mrb[132].mxu1  ;;  %v4455_v49 = vpop.f32.mrb[133].mxu0 }
 0x410   :  { %v7644_v18 = vadd.f32 %v5225_v12, %v9962_v34  ;;  %v7581_v53 = vadd.f32 %v4455_v49, %v9966_v44  ;;  %v5227_v4 = vpop.f32.mrb[133].mxu1  ;;  %v4457_v0 = vpop.f32.mrb[134].mxu0  ;;  %5861 = vmatprep.mubr.bf16.mxu0 %v5503_v9 }
 0x411   :  { %v7645_v36 = vadd.f32 %v5227_v4, %v9970_v17  ;;  %v7582_v1 = vadd.f32 %v4457_v0, %v9958_v22  ;;  %v5229_v58 = vpop.f32.mrb[134].mxu1  ;;  %v4459_v10 = vpop.f32.mrb[135].mxu0  ;;  %5862 = vmatmul.mubr.bf16.vlgmr.msra.gmra.mrb[192].mxu0 %v5502_v62  ;;  %v5382_v7 = vmax.f32 %v7580_v52, 0.0 }
 0x412   :  { %v7646_v32 = vadd.f32 %v5229_v58, %v9962_v34  ;;  %v7583_v48 = vadd.f32 %v4459_v10, %v9966_v44  ;;  %v5231_v31 = vpop.f32.mrb[135].mxu1  ;;  %v5384_v21 = vmax.f32 %v7644_v18, 0.0  ;;  %v5383_v30 = vmax.f32 %v7581_v53, 0.0 }
 0x413   :  { %v5386_v6 = vmax.f32 %v7582_v1, 0.0  ;;  %v7647_v43 = vadd.f32 %v5231_v31, %v9970_v17  ;;  %v5385_v23 = vmax.f32 %v7645_v36, 0.0 }
 0x414   :  { %v5388_v24 = vmax.f32 %v7646_v32, 0.0  ;;  %v5387_v14 = vmax.f32 %v7583_v48, 0.0 }
 0x415   :  { %v5506_v47 = vpack.c.bf16 %v5386_v6, %v5382_v7  ;;  %v5389_v13 = vmax.f32 %v7647_v43, 0.0 }
 0x416   :  { %v9992_v20 = vpack.c.bf16 %v5388_v24, %v5384_v21  ;;  %v5507_v39 = vpack.c.bf16 %v5387_v14, %v5383_v30  ;;  %v4463_v37 = vpop.f32.mrb[136].mxu0 }
 0x417   :  { %v9994_v19 = vpack.c.bf16 %v5389_v13, %v5385_v23  ;;  %v7584_v55 = vadd.f32 %v4463_v37, %v9958_v22  ;;  %v5235_v16 = vpop.f32.mrb[136].mxu1  ;;  %v4465_v25 = vpop.f32.mrb[137].mxu0 }
 0x418   :  { %v7648_v11 = vadd.f32 %v5235_v16, %v9962_v34  ;;  %v7585_v46 = vadd.f32 %v4465_v25, %v9966_v44  ;;  %v5237_v56 = vpop.f32.mrb[137].mxu1  ;;  %v4467_v33 = vpop.f32.mrb[138].mxu0  ;;  %5869 = vmatprep.mubr.bf16.mxu0 %v5507_v39 }
 0x419   :  { %v7649_v45 = vadd.f32 %v5237_v56, %v9970_v17  ;;  %v7586_v29 = vadd.f32 %v4467_v33, %v9958_v22  ;;  %v5239_v51 = vpop.f32.mrb[138].mxu1  ;;  %v4469_v15 = vpop.f32.mrb[139].mxu0  ;;  %5870 = vmatmul.mubr.bf16.gmra.mrb[196].mxu0 %v5506_v47  ;;  %v5390_v5 = vmax.f32 %v7584_v55, 0.0 }
 0x41a   :  { %v7650_v42 = vadd.f32 %v5239_v51, %v9962_v34  ;;  %v7587_v28 = vadd.f32 %v4469_v15, %v9966_v44  ;;  %v5241_v54 = vpop.f32.mrb[139].mxu1  ;;  %v5392_v27 = vmax.f32 %v7648_v11, 0.0  ;;  %v5391_v26 = vmax.f32 %v7585_v46, 0.0 }
 0x41b   :  { %v5394_v61 = vmax.f32 %v7586_v29, 0.0  ;;  %v7651_v35 = vadd.f32 %v5241_v54, %v9970_v17  ;;  %v5393_v2 = vmax.f32 %v7649_v45, 0.0 }
 0x41c   :  { %v5396_v40 = vmax.f32 %v7650_v42, 0.0  ;;  %v5395_v57 = vmax.f32 %v7587_v28, 0.0 }
 0x41d   :  { %v5510_v41 = vpack.c.bf16 %v5394_v61, %v5390_v5  ;;  %v5397_v8 = vmax.f32 %v7651_v35, 0.0 }
 0x41e   :  { %v10004_v50 = vpack.c.bf16 %v5396_v40, %v5392_v27  ;;  %v5511_v63 = vpack.c.bf16 %v5395_v57, %v5391_v26  ;;  %v4473_v62 = vpop.f32.mrb[140].mxu0 }
 0x41f   :  { %v10006_v59 = vpack.c.bf16 %v5397_v8, %v5393_v2  ;;  %v7588_v9 = vadd.f32 %v4473_v62, %v9958_v22  ;;  %v5245_v38 = vpop.f32.mrb[140].mxu1  ;;  %v4475_v52 = vpop.f32.mrb[141].mxu0 }
 0x420   :  { %v7652_v12 = vadd.f32 %v5245_v38, %v9962_v34  ;;  %v7589_v49 = vadd.f32 %v4475_v52, %v9966_v44  ;;  %v5247_v18 = vpop.f32.mrb[141].mxu1  ;;  %v4477_v53 = vpop.f32.mrb[142].mxu0  ;;  %5877 = vmatprep.mubr.bf16.mxu0 %v5511_v63 }
 0x421   :  { %v7653_v4 = vadd.f32 %v5247_v18, %v9970_v17  ;;  %v7590_v0 = vadd.f32 %v4477_v53, %v9958_v22  ;;  %v5249_v36 = vpop.f32.mrb[142].mxu1  ;;  %v4479_v1 = vpop.f32.mrb[143].mxu0  ;;  %5878 = vmatmul.mubr.bf16.gmra.mrb[200].mxu0 %v5510_v41  ;;  %v5398_v48 = vmax.f32 %v7588_v9, 0.0 }
 0x422   :  { %v7654_v58 = vadd.f32 %v5249_v36, %v9962_v34  ;;  %v7591_v10 = vadd.f32 %v4479_v1, %v9966_v44  ;;  %v5251_v32 = vpop.f32.mrb[143].mxu1  ;;  %v5400_v6 = vmax.f32 %v7652_v12, 0.0  ;;  %v5399_v43 = vmax.f32 %v7589_v49, 0.0 }
 0x423   :  { %v5402_v31 = vmax.f32 %v7590_v0, 0.0  ;;  %v7655_v7 = vadd.f32 %v5251_v32, %v9970_v17  ;;  %v5401_v24 = vmax.f32 %v7653_v4, 0.0 }
 0x424   :  { %v5404_v21 = vmax.f32 %v7654_v58, 0.0  ;;  %v5403_v30 = vmax.f32 %v7591_v10, 0.0 }
 0x425   :  { %v5514_v14 = vpack.c.bf16 %v5402_v31, %v5398_v48  ;;  %v5405_v23 = vmax.f32 %v7655_v7, 0.0 }
 0x426   :  { %v10016_v47 = vpack.c.bf16 %v5404_v21, %v5400_v6  ;;  %v5515_v13 = vpack.c.bf16 %v5403_v30, %v5399_v43  ;;  %v4483_v39 = vpop.f32.mrb[144].mxu0 }
 0x427   :  { %v10018_v37 = vpack.c.bf16 %v5405_v23, %v5401_v24  ;;  %v7592_v55 = vadd.f32 %v4483_v39, %v9958_v22  ;;  %v5255_v16 = vpop.f32.mrb[144].mxu1  ;;  %v4485_v25 = vpop.f32.mrb[145].mxu0 }
 0x428   :  { %v7656_v11 = vadd.f32 %v5255_v16, %v9962_v34  ;;  %v7593_v46 = vadd.f32 %v4485_v25, %v9966_v44  ;;  %v5257_v56 = vpop.f32.mrb[145].mxu1  ;;  %v4487_v33 = vpop.f32.mrb[146].mxu0  ;;  %5885 = vmatprep.mubr.bf16.mxu0 %v5515_v13 }
 0x429   :  { %v7657_v45 = vadd.f32 %v5257_v56, %v9970_v17  ;;  %v7594_v29 = vadd.f32 %v4487_v33, %v9958_v22  ;;  %v5259_v51 = vpop.f32.mrb[146].mxu1  ;;  %v4489_v15 = vpop.f32.mrb[147].mxu0  ;;  %5886 = vmatmul.mubr.bf16.gmra.mrb[204].mxu0 %v5514_v14  ;;  %v5406_v5 = vmax.f32 %v7592_v55, 0.0 }
 0x42a   :  { %v7658_v42 = vadd.f32 %v5259_v51, %v9962_v34  ;;  %v7595_v28 = vadd.f32 %v4489_v15, %v9966_v44  ;;  %v5261_v54 = vpop.f32.mrb[147].mxu1  ;;  %v5408_v27 = vmax.f32 %v7656_v11, 0.0  ;;  %v5407_v26 = vmax.f32 %v7593_v46, 0.0 }
 0x42b   :  { %v5410_v61 = vmax.f32 %v7594_v29, 0.0  ;;  %v7659_v35 = vadd.f32 %v5261_v54, %v9970_v17  ;;  %v5409_v2 = vmax.f32 %v7657_v45, 0.0 }
 0x42c   :  { %v5412_v40 = vmax.f32 %v7658_v42, 0.0  ;;  %v5411_v57 = vmax.f32 %v7595_v28, 0.0 }
 0x42d   :  { %v5518_v41 = vpack.c.bf16 %v5410_v61, %v5406_v5  ;;  %v5413_v8 = vmax.f32 %v7659_v35, 0.0 }
 0x42e   :  { %v10028_v63 = vpack.c.bf16 %v5412_v40, %v5408_v27  ;;  %v5519_v62 = vpack.c.bf16 %v5411_v57, %v5407_v26  ;;  %v4493_v9 = vpop.f32.mrb[148].mxu0 }
 0x42f   :  { %v10030_v38 = vpack.c.bf16 %v5413_v8, %v5409_v2  ;;  %v7596_v52 = vadd.f32 %v4493_v9, %v9958_v22  ;;  %v5265_v12 = vpop.f32.mrb[148].mxu1  ;;  %v4495_v49 = vpop.f32.mrb[149].mxu0 }
 0x430   :  { %v7660_v18 = vadd.f32 %v5265_v12, %v9962_v34  ;;  %v7597_v53 = vadd.f32 %v4495_v49, %v9966_v44  ;;  %v5267_v4 = vpop.f32.mrb[149].mxu1  ;;  %v4497_v0 = vpop.f32.mrb[150].mxu0  ;;  %5893 = vmatprep.mubr.bf16.mxu0 %v5519_v62 }
 0x431   :  { %v7661_v36 = vadd.f32 %v5267_v4, %v9970_v17  ;;  %v7598_v1 = vadd.f32 %v4497_v0, %v9958_v22  ;;  %v5269_v58 = vpop.f32.mrb[150].mxu1  ;;  %v4499_v10 = vpop.f32.mrb[151].mxu0  ;;  %5894 = vmatmul.mubr.bf16.gmra.mrb[208].mxu0 %v5518_v41  ;;  %v5414_v7 = vmax.f32 %v7596_v52, 0.0 }
 0x432   :  { %v7662_v32 = vadd.f32 %v5269_v58, %v9962_v34  ;;  %v7599_v48 = vadd.f32 %v4499_v10, %v9966_v44  ;;  %v5271_v31 = vpop.f32.mrb[151].mxu1  ;;  %v5416_v21 = vmax.f32 %v7660_v18, 0.0  ;;  %v5415_v30 = vmax.f32 %v7597_v53, 0.0 }
 0x433   :  { %v5418_v6 = vmax.f32 %v7598_v1, 0.0  ;;  %v7663_v43 = vadd.f32 %v5271_v31, %v9970_v17  ;;  %v5417_v23 = vmax.f32 %v7661_v36, 0.0 }
 0x434   :  { %v5420_v24 = vmax.f32 %v7662_v32, 0.0  ;;  %v5419_v14 = vmax.f32 %v7599_v48, 0.0 }
 0x435   :  { %v5522_v13 = vpack.c.bf16 %v5418_v6, %v5414_v7  ;;  %v5421_v39 = vmax.f32 %v7663_v43, 0.0 }
 0x436   :  { %v10040_v55 = vpack.c.bf16 %v5420_v24, %v5416_v21  ;;  %v5523_v16 = vpack.c.bf16 %v5419_v14, %v5415_v30  ;;  %v4503_v25 = vpop.f32.mrb[152].mxu0 }
 0x437   :  { %v10042_v11 = vpack.c.bf16 %v5421_v39, %v5417_v23  ;;  %v7600_v46 = vadd.f32 %v4503_v25, %v9958_v22  ;;  %v5275_v56 = vpop.f32.mrb[152].mxu1  ;;  %v4505_v33 = vpop.f32.mrb[153].mxu0 }
 0x438   :  { %v7664_v45 = vadd.f32 %v5275_v56, %v9962_v34  ;;  %v7601_v29 = vadd.f32 %v4505_v33, %v9966_v44  ;;  %v5277_v51 = vpop.f32.mrb[153].mxu1  ;;  %v4507_v15 = vpop.f32.mrb[154].mxu0  ;;  %5901 = vmatprep.mubr.bf16.mxu0 %v5523_v16 }
 0x439   :  { %v7665_v42 = vadd.f32 %v5277_v51, %v9970_v17  ;;  %v7602_v28 = vadd.f32 %v4507_v15, %v9958_v22  ;;  %v5279_v54 = vpop.f32.mrb[154].mxu1  ;;  %v4509_v5 = vpop.f32.mrb[155].mxu0  ;;  %5902 = vmatmul.mubr.bf16.gmra.mrb[212].mxu0 %v5522_v13  ;;  %v5422_v26 = vmax.f32 %v7600_v46, 0.0 }
 0x43a   :  { %v7666_v61 = vadd.f32 %v5279_v54, %v9962_v34  ;;  %v7603_v35 = vadd.f32 %v4509_v5, %v9966_v44  ;;  %v5281_v27 = vpop.f32.mrb[155].mxu1  ;;  %v5424_v2 = vmax.f32 %v7664_v45, 0.0  ;;  %v5423_v41 = vmax.f32 %v7601_v29, 0.0 }
 0x43b   :  { %v5426_v40 = vmax.f32 %v7602_v28, 0.0  ;;  %v7667_v57 = vadd.f32 %v5281_v27, %v9970_v17  ;;  %v5425_v9 = vmax.f32 %v7665_v42, 0.0 }
 0x43c   :  { %v5428_v8 = vmax.f32 %v7666_v61, 0.0  ;;  %v5427_v62 = vmax.f32 %v7603_v35, 0.0 }
 0x43d   :  { %v5526_v52 = vpack.c.bf16 %v5426_v40, %v5422_v26  ;;  %v5429_v12 = vmax.f32 %v7667_v57, 0.0 }
 0x43e   :  { %v10052_v49 = vpack.c.bf16 %v5428_v8, %v5424_v2  ;;  %v5527_v18 = vpack.c.bf16 %v5427_v62, %v5423_v41  ;;  %v4513_v53 = vpop.f32.mrb[156].mxu0 }
 0x43f   :  { %v10054_v4 = vpack.c.bf16 %v5429_v12, %v5425_v9  ;;  %v7604_v0 = vadd.f32 %v4513_v53, %v9958_v22  ;;  %v5285_v36 = vpop.f32.mrb[156].mxu1  ;;  %v4515_v1 = vpop.f32.mrb[157].mxu0 }
 0x440   :  { %v7668_v58 = vadd.f32 %v5285_v36, %v9962_v34  ;;  %v7605_v10 = vadd.f32 %v4515_v1, %v9966_v44  ;;  %v5287_v32 = vpop.f32.mrb[157].mxu1  ;;  %v4517_v48 = vpop.f32.mrb[158].mxu0  ;;  %5909 = vmatprep.mubr.bf16.mxu0 %v5527_v18 }
 0x441   :  { %v7669_v31 = vadd.f32 %v5287_v32, %v9970_v17  ;;  %v7606_v7 = vadd.f32 %v4517_v48, %v9958_v22  ;;  %v5289_v6 = vpop.f32.mrb[158].mxu1  ;;  %v4519_v43 = vpop.f32.mrb[159].mxu0  ;;  %5910 = vmatmul.mubr.bf16.gmra.mrb[216].mxu0 %v5526_v52  ;;  %v5430_v14 = vmax.f32 %v7604_v0, 0.0 }
 0x442   :  { %v7670_v21 = vadd.f32 %v5289_v6, %v9962_v34  ;;  %v7607_v30 = vadd.f32 %v4519_v43, %v9966_v44  ;;  %v5291_v24 = vpop.f32.mrb[159].mxu1  ;;  %v5432_v39 = vmax.f32 %v7668_v58, 0.0  ;;  %v5431_v16 = vmax.f32 %v7605_v10, 0.0 }
 0x443   :  { %v5434_v23 = vmax.f32 %v7606_v7, 0.0  ;;  %v7671_v13 = vadd.f32 %v5291_v24, %v9970_v17  ;;  %v5433_v56 = vmax.f32 %v7669_v31, 0.0 }
 0x444   :  { %v5436_v25 = vmax.f32 %v7670_v21, 0.0  ;;  %v5435_v46 = vmax.f32 %v7607_v30, 0.0 }
 0x445   :  { %v5530_v33 = vpack.c.bf16 %v5434_v23, %v5430_v14  ;;  %v5437_v45 = vmax.f32 %v7671_v13, 0.0 }
 0x446   :  { %v10064_v29 = vpack.c.bf16 %v5436_v25, %v5432_v39  ;;  %v5531_v51 = vpack.c.bf16 %v5435_v46, %v5431_v16  ;;  %v4523_v15 = vpop.f32.mrb[160].mxu0 }
 0x447   :  { %v10066_v42 = vpack.c.bf16 %v5437_v45, %v5433_v56  ;;  %v7608_v28 = vadd.f32 %v4523_v15, %v9958_v22  ;;  %v5295_v54 = vpop.f32.mrb[160].mxu1  ;;  %v4525_v5 = vpop.f32.mrb[161].mxu0 }
 0x448   :  { %v7672_v61 = vadd.f32 %v5295_v54, %v9962_v34  ;;  %v7609_v35 = vadd.f32 %v4525_v5, %v9966_v44  ;;  %v5297_v27 = vpop.f32.mrb[161].mxu1  ;;  %v4527_v26 = vpop.f32.mrb[162].mxu0  ;;  %5917 = vmatprep.mubr.bf16.mxu0 %v5531_v51 }
 0x449   :  { %v7673_v40 = vadd.f32 %v5297_v27, %v9970_v17  ;;  %v7610_v57 = vadd.f32 %v4527_v26, %v9958_v22  ;;  %v5299_v2 = vpop.f32.mrb[162].mxu1  ;;  %v4529_v41 = vpop.f32.mrb[163].mxu0  ;;  %5918 = vmatmul.mubr.bf16.gmra.mrb[220].mxu0 %v5530_v33  ;;  %v5438_v52 = vmax.f32 %v7608_v28, 0.0 }
 0x44a   :  { %v7674_v8 = vadd.f32 %v5299_v2, %v9962_v34  ;;  %v7611_v62 = vadd.f32 %v4529_v41, %v9966_v44  ;;  %v5301_v9 = vpop.f32.mrb[163].mxu1  ;;  %v5440_v53 = vmax.f32 %v7672_v61, 0.0  ;;  %v5439_v0 = vmax.f32 %v7609_v35, 0.0 }
 0x44b   :  { %v5442_v12 = vmax.f32 %v7610_v57, 0.0  ;;  %v7675_v18 = vadd.f32 %v5301_v9, %v9970_v17  ;;  %v5441_v58 = vmax.f32 %v7673_v40, 0.0 }
 0x44c   :  { %v5444_v36 = vmax.f32 %v7674_v8, 0.0  ;;  %v5443_v1 = vmax.f32 %v7611_v62, 0.0 }
 0x44d   :  { %v5534_v10 = vpack.c.bf16 %v5442_v12, %v5438_v52  ;;  %v5445_v32 = vmax.f32 %v7675_v18, 0.0 }
 0x44e   :  { %v10076_v48 = vpack.c.bf16 %v5444_v36, %v5440_v53  ;;  %v5535_v31 = vpack.c.bf16 %v5443_v1, %v5439_v0  ;;  %v4533_v7 = vpop.f32.mrb[164].mxu0 }
 0x44f   :  { %v10078_v6 = vpack.c.bf16 %v5445_v32, %v5441_v58  ;;  %v7612_v43 = vadd.f32 %v4533_v7, %v9958_v22  ;;  %v5305_v21 = vpop.f32.mrb[164].mxu1  ;;  %v4535_v30 = vpop.f32.mrb[165].mxu0 }
 0x450   :  { %v7676_v24 = vadd.f32 %v5305_v21, %v9962_v34  ;;  %v7613_v14 = vadd.f32 %v4535_v30, %v9966_v44  ;;  %v5307_v23 = vpop.f32.mrb[165].mxu1  ;;  %v4537_v13 = vpop.f32.mrb[166].mxu0  ;;  %5925 = vmatprep.mubr.bf16.mxu0 %v5535_v31 }
 0x451   :  { %v7677_v39 = vadd.f32 %v5307_v23, %v9970_v17  ;;  %v7614_v16 = vadd.f32 %v4537_v13, %v9958_v22  ;;  %v5309_v25 = vpop.f32.mrb[166].mxu1  ;;  %v4539_v46 = vpop.f32.mrb[167].mxu0  ;;  %5926 = vmatmul.mubr.bf16.gmra.mrb[224].mxu0 %v5534_v10  ;;  %v5446_v51 = vmax.f32 %v7612_v43, 0.0 }
 0x452   :  { %v7678_v56 = vadd.f32 %v5309_v25, %v9962_v34  ;;  %v7615_v33 = vadd.f32 %v4539_v46, %v9966_v44  ;;  %v5311_v45 = vpop.f32.mrb[167].mxu1  ;;  %v5448_v54 = vmax.f32 %v7676_v24, 0.0  ;;  %v5447_v5 = vmax.f32 %v7613_v14, 0.0 }
 0x453   :  { %v5450_v15 = vmax.f32 %v7614_v16, 0.0  ;;  %v7679_v28 = vadd.f32 %v5311_v45, %v9970_v17  ;;  %v5449_v27 = vmax.f32 %v7677_v39, 0.0 }
 0x454   :  { %v5452_v61 = vmax.f32 %v7678_v56, 0.0  ;;  %v5451_v35 = vmax.f32 %v7615_v33, 0.0 }
 0x455   :  { %v5538_v26 = vpack.c.bf16 %v5450_v15, %v5446_v51  ;;  %v5453_v40 = vmax.f32 %v7679_v28, 0.0 }
 0x456   :  { %v10088_v57 = vpack.c.bf16 %v5452_v61, %v5448_v54  ;;  %v5539_v2 = vpack.c.bf16 %v5451_v35, %v5447_v5  ;;  %v4543_v41 = vpop.f32.mrb[168].mxu0 }
 0x457   :  { %v10090_v8 = vpack.c.bf16 %v5453_v40, %v5449_v27  ;;  %v7616_v62 = vadd.f32 %v4543_v41, %v9958_v22  ;;  %v5315_v9 = vpop.f32.mrb[168].mxu1  ;;  %v4545_v52 = vpop.f32.mrb[169].mxu0 }
 0x458   :  { %v7680_v12 = vadd.f32 %v5315_v9, %v9962_v34  ;;  %v7617_v18 = vadd.f32 %v4545_v52, %v9966_v44  ;;  %v5317_v53 = vpop.f32.mrb[169].mxu1  ;;  %v4547_v0 = vpop.f32.mrb[170].mxu0  ;;  %5933 = vmatprep.mubr.bf16.mxu0 %v5539_v2 }
 0x459   :  { %v7681_v36 = vadd.f32 %v5317_v53, %v9970_v17  ;;  %v7618_v1 = vadd.f32 %v4547_v0, %v9958_v22  ;;  %v5319_v58 = vpop.f32.mrb[170].mxu1  ;;  %v4549_v10 = vpop.f32.mrb[171].mxu0  ;;  %5934 = vmatmul.mubr.bf16.gmra.mrb[228].mxu0 %v5538_v26  ;;  %v5454_v43 = vmax.f32 %v7616_v62, 0.0 }
 0x45a   :  { %v7682_v32 = vadd.f32 %v5319_v58, %v9962_v34  ;;  %v7619_v31 = vadd.f32 %v4549_v10, %v9966_v44  ;;  %v5321_v7 = vpop.f32.mrb[171].mxu1  ;;  %v5456_v24 = vmax.f32 %v7680_v12, 0.0  ;;  %v5455_v14 = vmax.f32 %v7617_v18, 0.0 }
 0x45b   :  { %v5458_v21 = vmax.f32 %v7618_v1, 0.0  ;;  %v7683_v30 = vadd.f32 %v5321_v7, %v9970_v17  ;;  %v5457_v39 = vmax.f32 %v7681_v36, 0.0 }
 0x45c   :  { %v5460_v23 = vmax.f32 %v7682_v32, 0.0  ;;  %v5459_v13 = vmax.f32 %v7619_v31, 0.0 }
 0x45d   :  { %v5542_v16 = vpack.c.bf16 %v5458_v21, %v5454_v43  ;;  %v5461_v25 = vmax.f32 %v7683_v30, 0.0 }
 0x45e   :  { %v10100_v46 = vpack.c.bf16 %v5460_v23, %v5456_v24  ;;  %v5543_v56 = vpack.c.bf16 %v5459_v13, %v5455_v14  ;;  %v4553_v33 = vpop.f32.mrb[172].mxu0 }
 0x45f   :  { %v10102_v45 = vpack.c.bf16 %v5461_v25, %v5457_v39  ;;  %v7620_v51 = vadd.f32 %v4553_v33, %v9958_v22  ;;  %v5325_v15 = vpop.f32.mrb[172].mxu1  ;;  %v4555_v28 = vpop.f32.mrb[173].mxu0 }
 0x460   :  { %v7684_v54 = vadd.f32 %v5325_v15, %v9962_v34  ;;  %v7621_v5 = vadd.f32 %v4555_v28, %v9966_v44  ;;  %v5327_v61 = vpop.f32.mrb[173].mxu1  ;;  %v4557_v35 = vpop.f32.mrb[174].mxu0  ;;  %5941 = vmatprep.mubr.bf16.mxu0 %v5543_v56 }
 0x461   :  { %v7685_v27 = vadd.f32 %v5327_v61, %v9970_v17  ;;  %v7622_v26 = vadd.f32 %v4557_v35, %v9958_v22  ;;  %v5329_v40 = vpop.f32.mrb[174].mxu1  ;;  %v4559_v2 = vpop.f32.mrb[175].mxu0  ;;  %5942 = vmatmul.mubr.bf16.gmra.mrb[232].mxu0 %v5542_v16  ;;  %v5462_v52 = vmax.f32 %v7620_v51, 0.0 }
 0x462   :  { %v7686_v41 = vadd.f32 %v5329_v40, %v9962_v34  ;;  %v7623_v62 = vadd.f32 %v4559_v2, %v9966_v44  ;;  %v5331_v9 = vpop.f32.mrb[175].mxu1  ;;  %v5464_v53 = vmax.f32 %v7684_v54, 0.0  ;;  %v5463_v0 = vmax.f32 %v7621_v5, 0.0 }
 0x463   :  { %v5466_v12 = vmax.f32 %v7622_v26, 0.0  ;;  %v7687_v18 = vadd.f32 %v5331_v9, %v9970_v17  ;;  %v5465_v58 = vmax.f32 %v7685_v27, 0.0 }
 0x464   :  { %v5468_v36 = vmax.f32 %v7686_v41, 0.0  ;;  %v5467_v1 = vmax.f32 %v7623_v62, 0.0 }
 0x465   :  { %v5546_v10 = vpack.c.bf16 %v5466_v12, %v5462_v52  ;;  %v5469_v32 = vmax.f32 %v7687_v18, 0.0 }
 0x466   :  { %v10112_v31 = vpack.c.bf16 %v5468_v36, %v5464_v53  ;;  %v5547_v7 = vpack.c.bf16 %v5467_v1, %v5463_v0  ;;  %v4563_v43 = vpop.f32.mrb[176].mxu0  ;;  %v8552_v53 = vld [vmem:[#allocation10 + $0x80] sm:$0xff]  }
 0x467   :  { %v10114_v21 = vpack.c.bf16 %v5469_v32, %v5465_v58  ;;  %v7624_v30 = vadd.f32 %v4563_v43, %v9958_v22  ;;  %v5335_v24 = vpop.f32.mrb[176].mxu1  ;;  %v4565_v14 = vpop.f32.mrb[177].mxu0 }
 0x468   :  { %v7688_v23 = vadd.f32 %v5335_v24, %v9962_v34  ;;  %v7625_v13 = vadd.f32 %v4565_v14, %v9966_v44  ;;  %v5337_v39 = vpop.f32.mrb[177].mxu1  ;;  %v4567_v16 = vpop.f32.mrb[178].mxu0  ;;  %5949 = vmatprep.mubr.bf16.mxu0 %v5547_v7 }
 0x469   :  { %v7689_v25 = vadd.f32 %v5337_v39, %v9970_v17  ;;  %v7626_v56 = vadd.f32 %v4567_v16, %v9958_v22  ;;  %v5339_v33 = vpop.f32.mrb[178].mxu1  ;;  %v4569_v51 = vpop.f32.mrb[179].mxu0  ;;  %5950 = vmatmul.mubr.bf16.gmra.mrb[236].mxu0 %v5546_v10  ;;  %v5470_v5 = vmax.f32 %v7624_v30, 0.0  ;;  %v8553_v10 = vld [vmem:[#allocation10 + $0xc8] sm:$0xff]  }
 0x46a   :  { %v7690_v15 = vadd.f32 %v5339_v33, %v9962_v34  ;;  %v7627_v28 = vadd.f32 %v4569_v51, %v9966_v44  ;;  %v5341_v54 = vpop.f32.mrb[179].mxu1  ;;  %v5472_v27 = vmax.f32 %v7688_v23, 0.0  ;;  %v5471_v26 = vmax.f32 %v7625_v13, 0.0 }
 0x46b   :  { %v5474_v61 = vmax.f32 %v7626_v56, 0.0  ;;  %v7691_v35 = vadd.f32 %v5341_v54, %v9970_v17  ;;  %v5473_v41 = vmax.f32 %v7689_v25, 0.0  ;;  %v8554_v56 = vld [vmem:[#allocation10 + $0x88] sm:$0xff]  }
 0x46c   :  { %v5476_v40 = vmax.f32 %v7690_v15, 0.0  ;;  %v5475_v2 = vmax.f32 %v7627_v28, 0.0  ;;  %v8555_v28 = vld [vmem:[#allocation10 + $0xd0] sm:$0xff]  }
 0x46d   :  { %v5550_v62 = vpack.c.bf16 %v5474_v61, %v5470_v5  ;;  %v5477_v9 = vmax.f32 %v7691_v35, 0.0 }
 0x46e   :  { %v10124_v52 = vpack.c.bf16 %v5476_v40, %v5472_v27  ;;  %v5551_v12 = vpack.c.bf16 %v5475_v2, %v5471_v26  ;;  %v4573_v18 = vpop.f32.mrb[180].mxu0 }
 0x46f   :  { %v10126_v0 = vpack.c.bf16 %v5477_v9, %v5473_v41  ;;  %v7628_v36 = vadd.f32 %v4573_v18, %v9958_v22  ;;  %v5345_v1 = vpop.f32.mrb[180].mxu1  ;;  %v4575_v58 = vpop.f32.mrb[181].mxu0  ;;  %v8556_v9 = vld [vmem:[#allocation10 + $0x90] sm:$0xff]  }
 0x470   :  { %v7692_v32 = vadd.f32 %v5345_v1, %v9962_v34  ;;  %v7629_v7 = vadd.f32 %v4575_v58, %v9966_v44  ;;  %v5347_v43 = vpop.f32.mrb[181].mxu1  ;;  %v4577_v30 = vpop.f32.mrb[182].mxu0  ;;  %5957 = vmatprep.mubr.bf16.mxu1 %v5551_v12  ;;  %v8557_v1 = vld [vmem:[#allocation10 + $0xd8] sm:$0xff]  }
 0x471   :  { %v7693_v24 = vadd.f32 %v5347_v43, %v9970_v17  ;;  %v7630_v14 = vadd.f32 %v4577_v30, %v9958_v22  ;;  %v5349_v23 = vpop.f32.mrb[182].mxu1  ;;  %v4579_v13 = vpop.f32.mrb[183].mxu0  ;;  %5958 = vmatmul.mubr.bf16.vlgmr.msra.gmra.mrb[192].mxu1 %v5550_v62  ;;  %v5478_v33 = vmax.f32 %v7628_v36, 0.0 }
 0x472   :  { %v7694_v39 = vadd.f32 %v5349_v23, %v9962_v34  ;;  %v7631_v16 = vadd.f32 %v4579_v13, %v9966_v44  ;;  %v5351_v25 = vpop.f32.mrb[183].mxu1  ;;  %7377 = vmatpush3.bf16.msra.mxu1 %v8552_v53  ;;  %v5480_v54 = vmax.f32 %v7692_v32, 0.0  ;;  %v5479_v5 = vmax.f32 %v7629_v7, 0.0 }
 0x473   :  { %v5482_v51 = vmax.f32 %v7630_v14, 0.0  ;;  %v7695_v15 = vadd.f32 %v5351_v25, %v9970_v17  ;;  %7378 = vmatprep.subr.bf16.mxu1 %v8553_v10  ;;  %v5481_v27 = vmax.f32 %v7693_v24, 0.0 }
 0x474   :  { %v5484_v61 = vmax.f32 %v7694_v39, 0.0  ;;  %v5483_v35 = vmax.f32 %v7631_v16, 0.0  ;;  %v8558_v16 = vld [vmem:[#allocation10 + $0x98] sm:$0xff]  }
 0x475   :  { %v5554_v26 = vpack.c.bf16 %v5482_v51, %v5478_v33  ;;  %v5485_v40 = vmax.f32 %v7695_v15, 0.0  ;;  %v8559_v51 = vld [vmem:[#allocation10 + $0xe0] sm:$0xff]  }
 0x476   :  { %v10136_v2 = vpack.c.bf16 %v5484_v61, %v5480_v54  ;;  %v5555_v41 = vpack.c.bf16 %v5483_v35, %v5479_v5  ;;  %v4583_v62 = vpop.f32.mrb[184].mxu0  ;;  %7379 = vmatpush3.bf16.msra.mxu1 %v8554_v56 }
 0x477   :  { %v10138_v12 = vpack.c.bf16 %v5485_v40, %v5481_v27  ;;  %v7632_v18 = vadd.f32 %v4583_v62, %v9958_v22  ;;  %v5355_v53 = vpop.f32.mrb[184].mxu1  ;;  %v4585_v36 = vpop.f32.mrb[185].mxu0  ;;  %7380 = vmatprep.subr.bf16.mxu1 %v8555_v28  ;;  %v8560_v62 = vld [vmem:[#allocation10 + $0xa0] sm:$0xff]  }
 0x478   :  { %v7696_v58 = vadd.f32 %v5355_v53, %v9962_v34  ;;  %v7633_v10 = vadd.f32 %v4585_v36, %v9966_v44  ;;  %v5357_v32 = vpop.f32.mrb[185].mxu1  ;;  %v4587_v7 = vpop.f32.mrb[186].mxu0  ;;  %5965 = vmatprep.mubr.bf16.mxu1 %v5555_v41 }
 0x479   :  { %v7697_v43 = vadd.f32 %v5357_v32, %v9970_v17  ;;  %v7634_v30 = vadd.f32 %v4587_v7, %v9958_v22  ;;  %v5359_v24 = vpop.f32.mrb[186].mxu1  ;;  %v4589_v14 = vpop.f32.mrb[187].mxu0  ;;  %5966 = vmatmul.mubr.bf16.gmra.mrb[196].mxu1 %v5554_v26  ;;  %v5486_v25 = vmax.f32 %v7632_v18, 0.0 }
 0x47a   :  { %v7698_v23 = vadd.f32 %v5359_v24, %v9962_v34  ;;  %v7635_v13 = vadd.f32 %v4589_v14, %v9966_v44  ;;  %v5361_v39 = vpop.f32.mrb[187].mxu1  ;;  %7381 = vmatpush3.bf16.msra.mxu1 %v8556_v9  ;;  %v5488_v15 = vmax.f32 %v7696_v58, 0.0  ;;  %v5487_v28 = vmax.f32 %v7633_v10, 0.0 }
 0x47b   :  { %v5490_v56 = vmax.f32 %v7634_v30, 0.0  ;;  %v7699_v33 = vadd.f32 %v5361_v39, %v9970_v17  ;;  %7382 = vmatprep.subr.bf16.mxu1 %v8557_v1  ;;  %v5489_v61 = vmax.f32 %v7697_v43, 0.0  ;;  %v8561_v1 = vld [vmem:[#allocation10 + $0xe8] sm:$0xff]  }
 0x47c   :  { %v5492_v54 = vmax.f32 %v7698_v23, 0.0  ;;  %v5491_v5 = vmax.f32 %v7635_v13, 0.0 }
 0x47d   :  { %v5558_v35 = vpack.c.bf16 %v5490_v56, %v5486_v25  ;;  %v5493_v27 = vmax.f32 %v7699_v33, 0.0 }
 0x47e   :  { %v10148_v26 = vpack.c.bf16 %v5492_v54, %v5488_v15  ;;  %v5559_v40 = vpack.c.bf16 %v5491_v5, %v5487_v28  ;;  %v4593_v41 = vpop.f32.mrb[188].mxu0  ;;  %7383 = vmatpush3.bf16.msra.mxu1 %v8558_v16  ;;  %v8562_v16 = vld [vmem:[#allocation10 + $0xa8] sm:$0xff]  }
 0x47f   :  { %v10150_v9 = vpack.c.bf16 %v5493_v27, %v5489_v61  ;;  %v7636_v18 = vadd.f32 %v4593_v41, %v9958_v22  ;;  %v5365_v53 = vpop.f32.mrb[188].mxu1  ;;  %v4595_v36 = vpop.f32.mrb[189].mxu0  ;;  %7384 = vmatprep.subr.bf16.mxu1 %v8559_v51  ;;  %v8563_v51 = vld [vmem:[#allocation10 + $0xf0] sm:$0xff]   ;;  %v8565_v41 = vld [vmem:[#allocation10 + $0xf8] sm:$0xff]  }
 0x480   :  { %v7700_v58 = vadd.f32 %v5365_v53, %v9962_v34  ;;  %v7637_v10 = vadd.f32 %v4595_v36, %v9966_v44  ;;  %v5367_v32 = vpop.f32.mrb[189].mxu1  ;;  %v4597_v7 = vpop.f32.mrb[190].mxu0  ;;  %5973 = vmatprep.mubr.bf16.mxu1 %v5559_v40 }
 0x481   :  { %v7701_v43 = vadd.f32 %v5367_v32, %v9970_v17  ;;  %v7638_v30 = vadd.f32 %v4597_v7, %v9958_v22  ;;  %v5369_v24 = vpop.f32.mrb[190].mxu1  ;;  %v4599_v14 = vpop.f32.mrb[191].mxu0  ;;  %5974 = vmatmul.mubr.bf16.gmra.mrb[200].mxu1 %v5558_v35  ;;  %v5494_v25 = vmax.f32 %v7636_v18, 0.0 }
 0x482   :  { %v7702_v23 = vadd.f32 %v5369_v24, %v9962_v34  ;;  %v7639_v13 = vadd.f32 %v4599_v14, %v9966_v44  ;;  %v5371_v39 = vpop.f32.mrb[191].mxu1  ;;  %7385 = vmatpush3.bf16.msra.mxu1 %v8560_v62  ;;  %v5496_v15 = vmax.f32 %v7700_v58, 0.0  ;;  %v5495_v28 = vmax.f32 %v7637_v10, 0.0  ;;  %v8564_v44 = vld [vmem:[#allocation10 + $0xb0] sm:$0xff]  }
 0x483   :  { %v5498_v56 = vmax.f32 %v7638_v30, 0.0  ;;  %v7703_v33 = vadd.f32 %v5371_v39, %v9970_v17  ;;  %7386 = vmatprep.subr.bf16.mxu1 %v8561_v1  ;;  %v5497_v5 = vmax.f32 %v7701_v43, 0.0  ;;  %v8566_v17 = vld [vmem:[#allocation10 + $0xb8] sm:$0xff]  }
 0x484   :  { %v5500_v54 = vmax.f32 %v7702_v23, 0.0  ;;  %v5499_v22 = vmax.f32 %v7639_v13, 0.0 }
 0x485   :  { %v5562_v61 = vpack.c.bf16 %v5498_v56, %v5494_v25  ;;  %v5501_v35 = vmax.f32 %v7703_v33, 0.0 }
 0x486   :  { %v10160_v27 = vpack.c.bf16 %v5500_v54, %v5496_v15  ;;  %v5563_v34 = vpack.c.bf16 %v5499_v22, %v5495_v28  ;;  %7387 = vmatpush3.bf16.msra.mxu1 %v8562_v16 }
 0x487   :  { %v10162_v40 = vpack.c.bf16 %v5501_v35, %v5497_v5  ;;  %7388 = vmatprep.subr.bf16.mxu1 %v8563_v51 }
 0x488   :  { %5981 = vmatprep.mubr.bf16.mxu1 %v5563_v34 }
 0x489   :  { %5982 = vmatmul.mubr.bf16.gmra.mrb[204].mxu1 %v5562_v61 }
 0x48a   :  { %7389 = vmatpush3.bf16.msra.mxu1 %v8564_v44  ;;  %6022 = vmatprep.mubr.bf16.mxu1 %v9982_v3  ;;  %v8568_v3 = vld [vmem:[#allocation11 + $0x8] sm:$0xff]  }
 0x48b   :  { %7390 = vmatprep.subr.bf16.mxu1 %v8565_v41 }
 0x48e   :  { %7391 = vmatpush3.bf16.msra.mxu1 %v8566_v17 }
 0x491   :  { %6023 = vmatmul.mubr.bf16.vlgmr.msra.gmra.mrb[208].mxu1 %v9980_v60  ;;  %v8567_v60 = vld [vmem:[#allocation11] sm:$0xff]  }
 0x492   :  { %6030 = vmatprep.mubr.bf16.mxu1 %v9994_v19  ;;  %7512 = vmatprep.subr.bf16.mxu0 %v8567_v60  ;;  %v8570_v19 = vld [vmem:[#allocation11 + $0x18] sm:$0xff]  }
 0x493   :  { %7513 = vmatpush3.bf16.msra.mxu0 %v8567_v60 }
 0x494   :  { %7514 = vmatprep.subr.bf16.mxu0 %v8568_v3 }
 0x497   :  { %7515 = vmatpush3.bf16.msra.mxu0 %v8568_v3 }
 0x499   :  { %6031 = vmatmul.mubr.bf16.gmra.mrb[212].mxu1 %v9992_v20  ;;  %v8569_v20 = vld [vmem:[#allocation11 + $0x10] sm:$0xff]  }
 0x49a   :  { %6038 = vmatprep.mubr.bf16.mxu1 %v10006_v59  ;;  %7516 = vmatprep.subr.bf16.mxu0 %v8569_v20 }
 0x49b   :  { %7517 = vmatpush3.bf16.msra.mxu0 %v8569_v20 }
 0x49c   :  { %7518 = vmatprep.subr.bf16.mxu0 %v8570_v19 }
 0x49f   :  { %7519 = vmatpush3.bf16.msra.mxu0 %v8570_v19 }
 0x4a1   :  { %6039 = vmatmul.mubr.bf16.gmra.mrb[216].mxu1 %v10004_v50 }
 0x4a2   :  { %6046 = vmatprep.mubr.bf16.mxu1 %v10018_v37 }
 0x4a9   :  { %6047 = vmatmul.mubr.bf16.gmra.mrb[220].mxu1 %v10016_v47 }
 0x4aa   :  { %6054 = vmatprep.mubr.bf16.mxu1 %v10030_v38  ;;  %v8571_v38 = vld [vmem:[#allocation11 + $0x20] sm:$0xff]  }
 0x4ab   :  { %7520 = vmatprep.subr.bf16.mxu0 %v8571_v38 }
 0x4ac   :  { %7521 = vmatpush3.bf16.msra.mxu0 %v8571_v38 }
 0x4b1   :  { %6055 = vmatmul.mubr.bf16.gmra.mrb[224].mxu1 %v10028_v63 }
 0x4b2   :  { %6062 = vmatprep.mubr.bf16.mxu1 %v10042_v11  ;;  %v8572_v11 = vld [vmem:[#allocation11 + $0x28] sm:$0xff]  }
 0x4b3   :  { %7522 = vmatprep.subr.bf16.mxu0 %v8572_v11 }
 0x4b4   :  { %7523 = vmatpush3.bf16.msra.mxu0 %v8572_v11 }
 0x4b9   :  { %6063 = vmatmul.mubr.bf16.gmra.mrb[228].mxu1 %v10040_v55 }
 0x4ba   :  { %6070 = vmatprep.mubr.bf16.mxu1 %v10054_v4 }
 0x4c1   :  { %6071 = vmatmul.mubr.bf16.gmra.mrb[232].mxu1 %v10052_v49 }
 0x4c2   :  { %6078 = vmatprep.mubr.bf16.mxu1 %v10066_v42 }
 0x4c9   :  { %6079 = vmatmul.mubr.bf16.gmra.mrb[236].mxu1 %v10064_v29 }
 0x4ca   :  { %6086 = vmatprep.mubr.bf16.mxu1 %v10078_v6  ;;  %v8573_v6 = vld [vmem:[#allocation11 + $0x30] sm:$0xff]  }
 0x4cb   :  { %7524 = vmatprep.subr.bf16.mxu0 %v8573_v6 }
 0x4cc   :  { %7525 = vmatpush3.bf16.msra.mxu0 %v8573_v6 }
 0x4d1   :  { %6087 = vmatmul.mubr.bf16.gmra.mrb[240].mxu1 %v10076_v48 }
 0x4d2   :  { %6094 = vmatprep.mubr.bf16.mxu1 %v10090_v8  ;;  %v8574_v8 = vld [vmem:[#allocation11 + $0x38] sm:$0xff]  }
 0x4d3   :  { %7526 = vmatprep.subr.bf16.mxu0 %v8574_v8 }
 0x4d4   :  { %7527 = vmatpush3.bf16.msra.mxu0 %v8574_v8 }
 0x4d9   :  { %6095 = vmatmul.mubr.bf16.gmra.mrb[244].mxu1 %v10088_v57 }
 0x4da   :  { %6102 = vmatprep.mubr.bf16.mxu1 %v10102_v45 }
 0x4e1   :  { %6103 = vmatmul.mubr.bf16.gmra.mrb[248].mxu1 %v10100_v46 }
 0x4e2   :  { %6110 = vmatprep.mubr.bf16.mxu1 %v10114_v21 }
 0x4e4   :  { %v7280_v50 = vpop.f32.mrb[192].mxu0 }
 0x4e5   :  { %v7281_v59 = vpop.f32.mrb[193].mxu0 }
 0x4e6   :  { %v10187_v47 = vadd.f32 %v7281_v59, %v7280_v50  ;;  %v7283_v37 = vpop.f32.mrb[194].mxu0 }
 0x4e7   :  { %v7284_v63 = vpop.f32.mrb[195].mxu0 }
 0x4e8   :  { %v10189_v55 = vadd.f32 %v7284_v63, %v7283_v37 }
 0x4e9   :  { %6111 = vmatmul.mubr.bf16.gmra.mrb[252].mxu1 %v10112_v31 }
 0x4ea   :  { %6118 = vmatprep.mubr.bf16.mxu1 %v10126_v0 }
 0x4ec   :  { %v7286_v49 = vpop.f32.mrb[196].mxu0 }
 0x4ed   :  { %v7287_v4 = vpop.f32.mrb[197].mxu0 }
 0x4ee   :  { %v10193_v29 = vadd.f32 %v7287_v4, %v7286_v49  ;;  %v7289_v42 = vpop.f32.mrb[198].mxu0 }
 0x4ef   :  { %v7290_v48 = vpop.f32.mrb[199].mxu0 }
 0x4f0   :  { %v10195_v57 = vadd.f32 %v7290_v48, %v7289_v42 }
 0x4f1   :  { %6119 = vmatmul.mubr.bf16.gmra.mrb[0].mxu1 %v10124_v52 }
 0x4f2   :  { %6126 = vmatprep.mubr.bf16.mxu1 %v10138_v12 }
 0x4f4   :  { %v7292_v46 = vpop.f32.mrb[200].mxu0 }
 0x4f5   :  { %v7293_v45 = vpop.f32.mrb[201].mxu0 }
 0x4f6   :  { %v10199_v31 = vadd.f32 %v7293_v45, %v7292_v46  ;;  %v7295_v21 = vpop.f32.mrb[202].mxu0 }
 0x4f7   :  { %v7296_v0 = vpop.f32.mrb[203].mxu0 }
 0x4f8   :  { %v10201_v62 = vadd.f32 %v7296_v0, %v7295_v21 }
 0x4f9   :  { %6127 = vmatmul.mubr.bf16.gmra.mrb[4].mxu1 %v10136_v2 }
 0x4fa   :  { %6134 = vmatprep.mubr.bf16.mxu1 %v10150_v9 }
 0x4fc   :  { %v7298_v52 = vpop.f32.mrb[204].mxu0 }
 0x4fd   :  { %v7299_v18 = vpop.f32.mrb[205].mxu0 }
 0x4fe   :  { %v10205_v53 = vadd.f32 %v7299_v18, %v7298_v52  ;;  %v7301_v12 = vpop.f32.mrb[206].mxu0 }
 0x4ff   :  { %v7302_v36 = vpop.f32.mrb[207].mxu0 }
 0x500   :  { %v10207_v1 = vadd.f32 %v7302_v36, %v7301_v12 }
 0x501   :  { %6135 = vmatmul.mubr.bf16.gmra.mrb[8].mxu1 %v10148_v26 }
 0x502   :  { %6142 = vmatprep.mubr.bf16.mxu1 %v10162_v40 }
 0x504   :  { %v7304_v58 = vpop.f32.mrb[208].mxu0 }
 0x505   :  { %v7305_v10 = vpop.f32.mrb[209].mxu0 }
 0x506   :  { %v10211_v32 = vadd.f32 %v7305_v10, %v7304_v58  ;;  %v7307_v7 = vpop.f32.mrb[210].mxu0 }
 0x507   :  { %v7308_v2 = vpop.f32.mrb[211].mxu0 }
 0x508   :  { %v10213_v43 = vadd.f32 %v7308_v2, %v7307_v7 }
 0x509   :  { %6143 = vmatmul.mubr.bf16.gmra.mrb[12].mxu1 %v10160_v27 }
 0x50c   :  { %v7310_v9 = vpop.f32.mrb[212].mxu0 }
 0x50d   :  { %v7311_v30 = vpop.f32.mrb[213].mxu0 }
 0x50e   :  { %v10216_v24 = vadd.f32 %v7311_v30, %v7310_v9  ;;  %v7313_v14 = vpop.f32.mrb[214].mxu0 }
 0x50f   :  { %v7314_v23 = vpop.f32.mrb[215].mxu0 }
 0x510   :  { %v10218_v13 = vadd.f32 %v7314_v23, %v7313_v14 }
 0x514   :  { %v7316_v26 = vpop.f32.mrb[216].mxu0 }
 0x515   :  { %v7317_v39 = vpop.f32.mrb[217].mxu0 }
 0x516   :  { %v10220_v16 = vadd.f32 %v7317_v39, %v7316_v26  ;;  %v7319_v25 = vpop.f32.mrb[218].mxu0 }
 0x517   :  { %v7320_v56 = vpop.f32.mrb[219].mxu0 }
 0x518   :  { %v10222_v33 = vadd.f32 %v7320_v56, %v7319_v25 }
 0x51c   :  { %v7322_v51 = vpop.f32.mrb[220].mxu0 }
 0x51d   :  { %v7323_v15 = vpop.f32.mrb[221].mxu0 }
 0x51e   :  { %v10224_v28 = vadd.f32 %v7323_v15, %v7322_v51  ;;  %v7325_v54 = vpop.f32.mrb[222].mxu0 }
 0x51f   :  { %v7326_v22 = vpop.f32.mrb[223].mxu0 }
 0x520   :  { %v10226_v5 = vadd.f32 %v7326_v22, %v7325_v54 }
 0x524   :  { %v7328_v61 = vpop.f32.mrb[224].mxu0 }
 0x525   :  { %v7329_v35 = vpop.f32.mrb[225].mxu0 }
 0x526   :  { %v10228_v27 = vadd.f32 %v7329_v35, %v7328_v61  ;;  %v7331_v34 = vpop.f32.mrb[226].mxu0  ;;  %v10263_v61 = vld [vmem:[%s10711_s6] ss:$0 sm:$0xff] }
 0x527   :  { %v7332_v44 = vpop.f32.mrb[227].mxu0 }
 0x528   :  { %v10230_v40 = vadd.f32 %v7332_v44, %v7331_v34  ;;  %v5864_v44 = vadd.f32 %v10187_v47, %v10263_v61 }
 0x52c   :  { %v7334_v41 = vpop.f32.mrb[228].mxu0 }
 0x52d   :  { %v7335_v17 = vpop.f32.mrb[229].mxu0 }
 0x52e   :  { %v10232_v60 = vadd.f32 %v7335_v17, %v7334_v41  ;;  %v7337_v3 = vpop.f32.mrb[230].mxu0 }
 0x52f   :  { %v7338_v20 = vpop.f32.mrb[231].mxu0 }
 0x530   :  { %v10234_v19 = vadd.f32 %v7338_v20, %v7337_v3  ;;  %v5867_v20 = vadd.f32 %v10189_v55, %v10263_v61 }
 0x534   :  { %v7340_v50 = vpop.f32.mrb[232].mxu0 }
 0x535   :  { %v7341_v59 = vpop.f32.mrb[233].mxu0 }
 0x536   :  { %v10236_v37 = vadd.f32 %v7341_v59, %v7340_v50  ;;  %v7343_v63 = vpop.f32.mrb[234].mxu0 }
 0x537   :  { %v7344_v38 = vpop.f32.mrb[235].mxu0 }
 0x538   :  { %v10238_v11 = vadd.f32 %v7344_v38, %v7343_v63 }
 0x53c   :  { %v7346_v49 = vpop.f32.mrb[236].mxu0 }
 0x53d   :  { %v7347_v4 = vpop.f32.mrb[237].mxu0 }
 0x53e   :  { %v10240_v42 = vadd.f32 %v7347_v4, %v7346_v49  ;;  %v7349_v48 = vpop.f32.mrb[238].mxu0 }
 0x53f   :  { %v7350_v6 = vpop.f32.mrb[239].mxu0 }
 0x540   :  { %v10242_v8 = vadd.f32 %v7350_v6, %v7349_v48  ;;  %v5872_v6 = vadd.f32 %v10193_v29, %v10263_v61 }
 0x544   :  { %v7352_v46 = vpop.f32.mrb[192].mxu1 }
 0x545   :  { %v7353_v45 = vpop.f32.mrb[193].mxu1 }
 0x546   :  { %v10244_v21 = vadd.f32 %v7353_v45, %v7352_v46  ;;  %v7355_v0 = vpop.f32.mrb[194].mxu1 }
 0x547   :  { %v7356_v52 = vpop.f32.mrb[195].mxu1 }
 0x548   :  { %v10246_v18 = vadd.f32 %v7356_v52, %v7355_v0  ;;  %v5875_v52 = vadd.f32 %v10195_v57, %v10263_v61 }
 0x54c   :  { %v7358_v12 = vpop.f32.mrb[196].mxu1 }
 0x54d   :  { %v7359_v36 = vpop.f32.mrb[197].mxu1 }
 0x54e   :  { %v10248_v58 = vadd.f32 %v7359_v36, %v7358_v12  ;;  %v7361_v10 = vpop.f32.mrb[198].mxu1 }
 0x54f   :  { %v7362_v7 = vpop.f32.mrb[199].mxu1 }
 0x550   :  { %v10250_v2 = vadd.f32 %v7362_v7, %v7361_v10 }
 0x554   :  { %v7364_v9 = vpop.f32.mrb[200].mxu1 }
 0x555   :  { %v7365_v30 = vpop.f32.mrb[201].mxu1 }
 0x556   :  { %v10252_v14 = vadd.f32 %v7365_v30, %v7364_v9  ;;  %v7367_v23 = vpop.f32.mrb[202].mxu1 }
 0x557   :  { %v7368_v26 = vpop.f32.mrb[203].mxu1 }
 0x558   :  { %v10254_v39 = vadd.f32 %v7368_v26, %v7367_v23  ;;  %v5880_v23 = vadd.f32 %v10199_v31, %v10263_v61 }
 0x55c   :  { %v7370_v25 = vpop.f32.mrb[204].mxu1 }
 0x55d   :  { %v7371_v56 = vpop.f32.mrb[205].mxu1 }
 0x55e   :  { %v10256_v51 = vadd.f32 %v7371_v56, %v7370_v25  ;;  %v7373_v15 = vpop.f32.mrb[206].mxu1 }
 0x55f   :  { %v7374_v54 = vpop.f32.mrb[207].mxu1 }
 0x560   :  { %v10258_v22 = vadd.f32 %v7374_v54, %v7373_v15  ;;  %v5883_v15 = vadd.f32 %v10201_v62, %v10263_v61 }
 0x564   :  { %v7392_v35 = vpop.f32.mrb[208].mxu1 }
 0x565   :  { %v7393_v34 = vpop.f32.mrb[209].mxu1 }
 0x566   :  { %v7394_v41 = vadd.f32 %v7393_v34, %v7392_v35  ;;  %v7395_v17 = vpop.f32.mrb[210].mxu1 }
 0x567   :  { %v7396_v3 = vpop.f32.mrb[211].mxu1 }
 0x568   :  { %v6025_v50 = vadd.f32 %v7394_v41, %v5864_v44  ;;  %v7397_v59 = vadd.f32 %v7396_v3, %v7395_v17  ;;  %v5888_v3 = vadd.f32 %v10205_v53, %v10263_v61 }
 0x56a   :  { %v6028_v63 = vadd.f32 %v7397_v59, %v5867_v20  ;;  %v6151_v38 = vmax.f32 %v6025_v50, 0.0 }
 0x56c   :  { %v6152_v49 = vmax.f32 %v6028_v63, 0.0  ;;  %v7398_v4 = vpop.f32.mrb[212].mxu1  ;;  %v5891_v63 = vadd.f32 %v10207_v1, %v10263_v61 }
 0x56d   :  { %v7399_v48 = vpop.f32.mrb[213].mxu1 }
 0x56e   :  { %v7400_v46 = vadd.f32 %v7399_v48, %v7398_v4  ;;  %v7401_v45 = vpop.f32.mrb[214].mxu1  ;;  %v6183_v0 = vpack.c.bf16 %v6152_v49, %v6151_v38 }
 0x56f   :  { %v7402_v47 = vpop.f32.mrb[215].mxu1 }
 0x570   :  { %v6033_v12 = vadd.f32 %v7400_v46, %v5872_v6  ;;  %v7403_v36 = vadd.f32 %v7402_v47, %v7401_v45  ;;  %7528 = vmatprep.mubr.bf16.mxu0 %v6183_v0  ;;  %v5896_v45 = vadd.f32 %v10211_v32, %v10263_v61 }
 0x572   :  { %v6036_v55 = vadd.f32 %v7403_v36, %v5875_v52  ;;  %v6153_v10 = vmax.f32 %v6033_v12, 0.0  ;;  %v5899_v12 = vadd.f32 %v10213_v43, %v10263_v61 }
 0x574   :  { %v6154_v7 = vmax.f32 %v6036_v55, 0.0  ;;  %v7404_v9 = vpop.f32.mrb[216].mxu1 }
 0x575   :  { %v7405_v30 = vpop.f32.mrb[217].mxu1 }
 0x576   :  { %v6184_v26 = vpack.c.bf16 %v6154_v7, %v6153_v10  ;;  %v7406_v29 = vadd.f32 %v7405_v30, %v7404_v9  ;;  %v7407_v25 = vpop.f32.mrb[218].mxu1 }
 0x577   :  { %v7408_v56 = vpop.f32.mrb[219].mxu1 }
 0x578   :  { %v6041_v54 = vadd.f32 %v7406_v29, %v5880_v23  ;;  %v7409_v57 = vadd.f32 %v7408_v56, %v7407_v25  ;;  %7529 = vmatmul.mubr.bf16.vlgmr.msra.gmra.mrb[240].mxu0 %v6184_v26  ;;  %v5904_v23 = vadd.f32 %v10216_v24, %v10263_v61  ;;  %v5907_v56 = vadd.f32 %v10218_v13, %v10263_v61 }
 0x57a   :  { %v6044_v35 = vadd.f32 %v7409_v57, %v5883_v15  ;;  %v6155_v34 = vmax.f32 %v6041_v54, 0.0 }
 0x57c   :  { %v6156_v44 = vmax.f32 %v6044_v35, 0.0  ;;  %v7410_v41 = vpop.f32.mrb[220].mxu1 }
 0x57d   :  { %v7411_v17 = vpop.f32.mrb[221].mxu1 }
 0x57e   :  { %v7412_v20 = vadd.f32 %v7411_v17, %v7410_v41  ;;  %v7413_v31 = vpop.f32.mrb[222].mxu1  ;;  %v6185_v50 = vpack.c.bf16 %v6156_v44, %v6155_v34  ;;  %v5912_v41 = vadd.f32 %v10220_v16, %v10263_v61 }
 0x57f   :  { %v7414_v59 = vpop.f32.mrb[223].mxu1 }
 0x580   :  { %v6049_v38 = vadd.f32 %v7412_v20, %v5888_v3  ;;  %v7415_v62 = vadd.f32 %v7414_v59, %v7413_v31  ;;  %7532 = vmatprep.mubr.bf16.mxu0 %v6185_v50  ;;  %v5915_v31 = vadd.f32 %v10222_v33, %v10263_v61 }
 0x582   :  { %v6052_v49 = vadd.f32 %v7415_v62, %v5891_v63  ;;  %v6157_v4 = vmax.f32 %v6049_v38, 0.0 }
 0x584   :  { %v6158_v48 = vmax.f32 %v6052_v49, 0.0  ;;  %v7416_v6 = vpop.f32.mrb[224].mxu1 }
 0x585   :  { %v7417_v46 = vpop.f32.mrb[225].mxu1 }
 0x586   :  { %v7418_v0 = vadd.f32 %v7417_v46, %v7416_v6  ;;  %v7419_v53 = vpop.f32.mrb[226].mxu1  ;;  %v6186_v47 = vpack.c.bf16 %v6158_v48, %v6157_v4  ;;  %v5920_v4 = vadd.f32 %v10224_v28, %v10263_v61 }
 0x587   :  { %v7420_v52 = vpop.f32.mrb[227].mxu1 }
 0x588   :  { %v6057_v36 = vadd.f32 %v7418_v0, %v5896_v45  ;;  %v7421_v1 = vadd.f32 %v7420_v52, %v7419_v53  ;;  %7533 = vmatmul.mubr.bf16.gmra.mrb[244].mxu0 %v6186_v47  ;;  %v5923_v45 = vadd.f32 %v10226_v5, %v10263_v61 }
 0x58a   :  { %v6060_v55 = vadd.f32 %v7421_v1, %v5899_v12  ;;  %v6159_v10 = vmax.f32 %v6057_v36, 0.0  ;;  %v5928_v1 = vadd.f32 %v10228_v27, %v10263_v61 }
 0x58c   :  { %v6160_v7 = vmax.f32 %v6060_v55, 0.0  ;;  %v7422_v9 = vpop.f32.mrb[228].mxu1 }
 0x58d   :  { %v7423_v30 = vpop.f32.mrb[229].mxu1 }
 0x58e   :  { %v7424_v26 = vadd.f32 %v7423_v30, %v7422_v9  ;;  %v7425_v32 = vpop.f32.mrb[230].mxu1  ;;  %v6187_v29 = vpack.c.bf16 %v6160_v7, %v6159_v10  ;;  %v5931_v9 = vadd.f32 %v10230_v40, %v10263_v61 }
 0x58f   :  { %v7426_v25 = vpop.f32.mrb[231].mxu1 }
 0x590   :  { %v6065_v15 = vadd.f32 %v7424_v26, %v5904_v23  ;;  %v7427_v43 = vadd.f32 %v7426_v25, %v7425_v32  ;;  %7536 = vmatprep.mubr.bf16.mxu0 %v6187_v29 }
 0x592   :  { %v6068_v54 = vadd.f32 %v7427_v43, %v5907_v56  ;;  %v6161_v57 = vmax.f32 %v6065_v15, 0.0  ;;  %v5936_v56 = vadd.f32 %v10232_v60, %v10263_v61 }
 0x594   :  { %v6162_v35 = vmax.f32 %v6068_v54, 0.0  ;;  %v7428_v34 = vpop.f32.mrb[232].mxu1 }
 0x595   :  { %v7429_v44 = vpop.f32.mrb[233].mxu1 }
 0x596   :  { %v7430_v17 = vadd.f32 %v7429_v44, %v7428_v34  ;;  %v7431_v24 = vpop.f32.mrb[234].mxu1  ;;  %v6188_v3 = vpack.c.bf16 %v6162_v35, %v6161_v57  ;;  %v5939_v57 = vadd.f32 %v10234_v19, %v10263_v61 }
 0x597   :  { %v7432_v20 = vpop.f32.mrb[235].mxu1 }
 0x598   :  { %v6073_v50 = vadd.f32 %v7430_v17, %v5912_v41  ;;  %v7433_v13 = vadd.f32 %v7432_v20, %v7431_v24  ;;  %7537 = vmatmul.mubr.bf16.gmra.mrb[248].mxu0 %v6188_v3  ;;  %v5944_v3 = vadd.f32 %v10236_v37, %v10263_v61 }
 0x59a   :  { %v6076_v59 = vadd.f32 %v7433_v13, %v5915_v31  ;;  %v6163_v63 = vmax.f32 %v6073_v50, 0.0  ;;  %v5947_v13 = vadd.f32 %v10238_v11, %v10263_v61 }
 0x59c   :  { %v6164_v38 = vmax.f32 %v6076_v59, 0.0  ;;  %v7434_v62 = vpop.f32.mrb[236].mxu1 }
 0x59d   :  { %v7435_v49 = vpop.f32.mrb[237].mxu1 }
 0x59e   :  { %v7436_v48 = vadd.f32 %v7435_v49, %v7434_v62  ;;  %v7437_v16 = vpop.f32.mrb[238].mxu1  ;;  %v6189_v6 = vpack.c.bf16 %v6164_v38, %v6163_v63 }
 0x59f   :  { %v7438_v46 = vpop.f32.mrb[239].mxu1 }
 0x5a0   :  { %v6081_v0 = vadd.f32 %v7436_v48, %v5920_v4  ;;  %v7439_v33 = vadd.f32 %v7438_v46, %v7437_v16  ;;  %7540 = vmatprep.mubr.bf16.mxu0 %v6189_v6  ;;  %v5952_v48 = vadd.f32 %v10240_v42, %v10263_v61 }
 0x5a2   :  { %v6084_v53 = vadd.f32 %v7439_v33, %v5923_v45  ;;  %v6165_v47 = vmax.f32 %v6081_v0, 0.0  ;;  %v5955_v45 = vadd.f32 %v10242_v8, %v10263_v61 }
 0x5a4   :  { %v6166_v52 = vmax.f32 %v6084_v53, 0.0  ;;  %v7440_v12 = vpop.f32.mrb[240].mxu1 }
 0x5a5   :  { %v7441_v36 = vpop.f32.mrb[241].mxu1 }
 0x5a6   :  { %v7442_v55 = vadd.f32 %v7441_v36, %v7440_v12  ;;  %v7443_v28 = vpop.f32.mrb[242].mxu1  ;;  %v6190_v10 = vpack.c.bf16 %v6166_v52, %v6165_v47  ;;  %v5960_v36 = vadd.f32 %v10244_v21, %v10263_v61 }
 0x5a7   :  { %v7444_v7 = vpop.f32.mrb[243].mxu1 }
 0x5a8   :  { %v6089_v30 = vadd.f32 %v7442_v55, %v5928_v1  ;;  %v7445_v5 = vadd.f32 %v7444_v7, %v7443_v28  ;;  %7541 = vmatmul.mubr.bf16.gmra.mrb[252].mxu0 %v6190_v10  ;;  %v5963_v10 = vadd.f32 %v10246_v18, %v10263_v61 }
 0x5aa   :  { %v6092_v23 = vadd.f32 %v7445_v5, %v5931_v9  ;;  %v6167_v26 = vmax.f32 %v6089_v30, 0.0 }
 0x5ac   :  { %v6168_v32 = vmax.f32 %v6092_v23, 0.0  ;;  %v7446_v29 = vpop.f32.mrb[244].mxu1 }
 0x5ad   :  { %v7447_v25 = vpop.f32.mrb[245].mxu1 }
 0x5ae   :  { %v7448_v15 = vadd.f32 %v7447_v25, %v7446_v29  ;;  %v7449_v27 = vpop.f32.mrb[246].mxu1  ;;  %v6191_v43 = vpack.c.bf16 %v6168_v32, %v6167_v26  ;;  %v5968_v32 = vadd.f32 %v10248_v58, %v10263_v61 }
 0x5af   :  { %v7450_v54 = vpop.f32.mrb[247].mxu1 }
 0x5b0   :  { %v6097_v35 = vadd.f32 %v7448_v15, %v5936_v56  ;;  %v7451_v40 = vadd.f32 %v7450_v54, %v7449_v27  ;;  %7544 = vmatprep.mubr.bf16.mxu0 %v6191_v43  ;;  %v5971_v15 = vadd.f32 %v10250_v2, %v10263_v61 }
 0x5b2   :  { %v6100_v34 = vadd.f32 %v7451_v40, %v5939_v57  ;;  %v6169_v44 = vmax.f32 %v6097_v35, 0.0 }
 0x5b4   :  { %v6170_v41 = vmax.f32 %v6100_v34, 0.0  ;;  %v7452_v17 = vpop.f32.mrb[248].mxu1  ;;  %v5976_v34 = vadd.f32 %v10252_v14, %v10263_v61 }
 0x5b5   :  { %v7453_v24 = vpop.f32.mrb[249].mxu1 }
 0x5b6   :  { %v6192_v20 = vpack.c.bf16 %v6170_v41, %v6169_v44  ;;  %v7454_v60 = vadd.f32 %v7453_v24, %v7452_v17  ;;  %v7455_v31 = vpop.f32.mrb[250].mxu1  ;;  %v5979_v24 = vadd.f32 %v10254_v39, %v10263_v61 }
 0x5b7   :  { %v7456_v50 = vpop.f32.mrb[251].mxu1 }
 0x5b8   :  { %v6105_v59 = vadd.f32 %v7454_v60, %v5944_v3  ;;  %v7457_v19 = vadd.f32 %v7456_v50, %v7455_v31  ;;  %7545 = vmatmul.mubr.bf16.gmra.mrb[0].mxu0 %v6192_v20 }
 0x5ba   :  { %v6108_v63 = vadd.f32 %v7457_v19, %v5947_v13  ;;  %v6171_v38 = vmax.f32 %v6105_v59, 0.0  ;;  %v5984_v59 = vadd.f32 %v10256_v51, %v10263_v61  ;;  %v10335_v51 = vld [vmem:[%s10713_s8] ss:$0 sm:$0xff]  ;;  %s8892_s8 = smov [#allocation13]  }
 0x5bb   :  { %s6791_s22 = sshll.u32 %s8892_s8, 4  ;;  %s6792_s22 = int_to_ptr.vmem [resolvable:$true] %s6791_s22 }
 0x5bc   :  { %v6172_v62 = vmax.f32 %v6108_v63, 0.0  ;;  %v7458_v49 = vpop.f32.mrb[252].mxu1  ;;  %s8846_s23 = scalar_lea.vmem %s6792_s22, 4096  ;;  %p8851_p7 = scmp.lt.s32.totalorder %s6792_s22, %s6792_s22 }
 0x5bd   :  { %v7459_v4 = vpop.f32.mrb[253].mxu1  ;;  %p8847_p6 = scmp.ne.s32.totalorder %s6792_s22, %s8846_s23  ;;  %p8852_p8 = scmp.lt.s32.totalorder %s8846_s23, %s8846_s23 }
 0x5be   :  { %v7460_v16 = vadd.f32 %v7459_v4, %v7458_v49  ;;  %v7461_v37 = vpop.f32.mrb[254].mxu1  ;;  %v6193_v6 = vpack.c.bf16 %v6172_v62, %v6171_v38  ;;  %v5987_v62 = vadd.f32 %v10258_v22, %v10263_v61 }
 0x5bf   :  { %v7462_v46 = vpop.f32.mrb[255].mxu1  ;;  %p8853_p9 = por %p8852_p8, %p8851_p7 }
 0x5c0   :  { %v6113_v0 = vadd.f32 %v7460_v16, %v5952_v48  ;;  %v7463_v11 = vadd.f32 %v7462_v46, %v7461_v37  ;;  %7548 = vmatprep.mubr.bf16.mxu0 %v6193_v6  ;;  %v10818_v6 = vlaneseq }
 0x5c1   :  { %p8854_p10 = pnand %p8853_p9, %p8847_p6 }
 0x5c2   :  { %v6116_v33 = vadd.f32 %v7463_v11, %v5955_v45  ;;  %v6173_v53 = vmax.f32 %v6113_v0, 0.0  ;;  %v10330_v46 = vand.u32 127, %v10818_v6 }
 0x5c4   :  { %v6174_v47 = vmax.f32 %v6116_v33, 0.0  ;;  %v7464_v52 = vpop.f32.mrb[0].mxu1  ;;  %vm6433_vm0 = vcmp.lt.s32.totalorder %v10330_v46, 3 }
 0x5c5   :  { %v7465_v12 = vpop.f32.mrb[1].mxu1 }
 0x5c6   :  { %v6194_v1 = vpack.c.bf16 %v6174_v47, %v6173_v53  ;;  %v7466_v42 = vadd.f32 %v7465_v12, %v7464_v52  ;;  %v7467_v55 = vpop.f32.mrb[2].mxu1 }
 0x5c7   :  { %v7468_v28 = vpop.f32.mrb[3].mxu1 }
 0x5c8   :  { %v6121_v7 = vadd.f32 %v7466_v42, %v5960_v36  ;;  %v7469_v8 = vadd.f32 %v7468_v28, %v7467_v55  ;;  %7549 = vmatmul.mubr.bf16.gmra.mrb[4].mxu0 %v6194_v1 }
 0x5ca   :  { %v6124_v9 = vadd.f32 %v7469_v8, %v5963_v10  ;;  %v6175_v30 = vmax.f32 %v6121_v7, 0.0 }
 0x5cc   :  { %v6176_v5 = vmax.f32 %v6124_v9, 0.0  ;;  %v7470_v23 = vpop.f32.mrb[4].mxu1 }
 0x5cd   :  { %v7471_v26 = vpop.f32.mrb[5].mxu1 }
 0x5ce   :  { %v7472_v29 = vadd.f32 %v7471_v26, %v7470_v23  ;;  %v7473_v21 = vpop.f32.mrb[6].mxu1  ;;  %v6195_v25 = vpack.c.bf16 %v6176_v5, %v6175_v30 }
 0x5cf   :  { %v7474_v56 = vpop.f32.mrb[7].mxu1 }
 0x5d0   :  { %v6129_v27 = vadd.f32 %v7472_v29, %v5968_v32  ;;  %v7475_v18 = vadd.f32 %v7474_v56, %v7473_v21  ;;  %7552 = vmatprep.mubr.bf16.mxu0 %v6195_v25 }
 0x5d2   :  { %v6132_v43 = vadd.f32 %v7475_v18, %v5971_v15  ;;  %v6177_v54 = vmax.f32 %v6129_v27, 0.0 }
 0x5d4   :  { %v6178_v57 = vmax.f32 %v6132_v43, 0.0  ;;  %v7476_v35 = vpop.f32.mrb[8].mxu1 }
 0x5d5   :  { %v7477_v40 = vpop.f32.mrb[9].mxu1 }
 0x5d6   :  { %v6196_v44 = vpack.c.bf16 %v6178_v57, %v6177_v54  ;;  %v7478_v58 = vadd.f32 %v7477_v40, %v7476_v35  ;;  %v7479_v41 = vpop.f32.mrb[10].mxu1 }
 0x5d7   :  { %v7480_v17 = vpop.f32.mrb[11].mxu1 }
 0x5d8   :  { %v6137_v3 = vadd.f32 %v7478_v58, %v5976_v34  ;;  %v7481_v2 = vadd.f32 %v7480_v17, %v7479_v41  ;;  %7553 = vmatmul.mubr.bf16.gmra.mrb[8].mxu0 %v6196_v44 }
 0x5da   :  { %v6140_v20 = vadd.f32 %v7481_v2, %v5979_v24  ;;  %v6179_v60 = vmax.f32 %v6137_v3, 0.0 }
 0x5dc   :  { %v6180_v31 = vmax.f32 %v6140_v20, 0.0  ;;  %v7482_v50 = vpop.f32.mrb[12].mxu1 }
 0x5dd   :  { %v7483_v13 = vpop.f32.mrb[13].mxu1 }
 0x5de   :  { %v7484_v19 = vadd.f32 %v7483_v13, %v7482_v50  ;;  %v7485_v14 = vpop.f32.mrb[14].mxu1  ;;  %v6197_v63 = vpack.c.bf16 %v6180_v31, %v6179_v60 }
 0x5df   :  { %v7486_v38 = vpop.f32.mrb[15].mxu1 }
 0x5e0   :  { %v6145_v49 = vadd.f32 %v7484_v19, %v5984_v59  ;;  %v7487_v39 = vadd.f32 %v7486_v38, %v7485_v14  ;;  %7556 = vmatprep.mubr.bf16.mxu0 %v6197_v63 }
 0x5e2   :  { %v6148_v4 = vadd.f32 %v7487_v39, %v5987_v62  ;;  %v6181_v48 = vmax.f32 %v6145_v49, 0.0 }
 0x5e4   :  { %v6182_v16 = vmax.f32 %v6148_v4, 0.0 }
 0x5e6   :  { %v6198_v37 = vpack.c.bf16 %v6182_v16, %v6181_v48 }
 0x5e8   :  { %7557 = vmatmul.mubr.bf16.gmra.mrb[12].mxu0 %v6198_v37 }
 0x64b   :  { %v7530_v45 = vpop.f32.mrb[240].mxu0 }
 0x64c   :  { %v6313_v22 = vadd.f32 %v7530_v45, %v10335_v51  ;;  %v6304_v61 = vpop.f32.mrb[241].mxu0 }
 0x64d   :  { %v6305_v0 = vadd.f32 %v10335_v51, %v6304_v61  ;;  %v7531_v11 = vpop.f32.mrb[242].mxu0 }
 0x64e   :  { %v6316_v33 = vadd.f32 %v7531_v11, %v10335_v51  ;;  %v6307_v53 = vpop.f32.mrb[243].mxu0  ;;  %v10343_v47 = vsel %vm6433_vm0, %v6313_v22, -1e+30 }
 0x64f   :  { %v6308_v52 = vadd.f32 %v10335_v51, %v6307_v53  ;;  %6470 = vmax.xlane.f32.xlu1 %v10343_v47  ;;  %v10349_v12 = vsel %vm6433_vm0, %v6305_v0, -1e+30 }
 0x650   :  { %6466 = vmax.xlane.f32.xlu0 %v10349_v12  ;;  %v10354_v36 = vsel %vm6433_vm0, %v6316_v33, -1e+30 }
 0x651   :  { %v10359_v1 = vsel %vm6433_vm0, %v6308_v52, -1e+30 }
 0x653   :  { %6472 = vmax.xlane.f32.xlu1 %v10354_v36 }
 0x654   :  { %6468 = vmax.xlane.f32.xlu0 %v10359_v1 }
 0x65b   :  { %v7534_v42 = vpop.f32.mrb[244].mxu0 }
 0x65c   :  { %v6329_v55 = vadd.f32 %v7534_v42, %v10335_v51  ;;  %v6320_v28 = vpop.f32.mrb[245].mxu0 }
 0x65d   :  { %v7535_v10 = vpop.f32.mrb[246].mxu0  ;;  %v6321_v7 = vadd.f32 %v10335_v51, %v6320_v28 }
 0x65e   :  { %v6332_v8 = vadd.f32 %v7535_v10, %v10335_v51  ;;  %v6323_v9 = vpop.f32.mrb[247].mxu0  ;;  %v10367_v30 = vsel %vm6433_vm0, %v6329_v55, -1e+30 }
 0x65f   :  { %6478 = vmax.xlane.f32.xlu0 %v10367_v30  ;;  %v6324_v5 = vadd.f32 %v10335_v51, %v6323_v9  ;;  %v10378_v26 = vsel %vm6433_vm0, %v6321_v7, -1e+30 }
 0x660   :  { %v10373_v23 = vsel %vm6433_vm0, %v6332_v8, -1e+30 }
 0x661   :  { %6480 = vmax.xlane.f32.xlu1 %v10373_v23  ;;  %v10383_v32 = vsel %vm6433_vm0, %v6324_v5, -1e+30 }
 0x663   :  { %6474 = vmax.xlane.f32.xlu0 %v10378_v26 }
 0x665   :  { %6476 = vmax.xlane.f32.xlu1 %v10383_v32 }
 0x66b   :  { %v7538_v29 = vpop.f32.mrb[248].mxu0 }
 0x66c   :  { %v6345_v21 = vadd.f32 %v7538_v29, %v10335_v51  ;;  %v6336_v25 = vpop.f32.mrb[249].mxu0 }
 0x66d   :  { %v7539_v56 = vpop.f32.mrb[250].mxu0  ;;  %v6337_v15 = vadd.f32 %v10335_v51, %v6336_v25 }
 0x66e   :  { %v6348_v27 = vadd.f32 %v7539_v56, %v10335_v51  ;;  %v6339_v18 = vpop.f32.mrb[251].mxu0  ;;  %v10391_v43 = vsel %vm6433_vm0, %v6345_v21, -1e+30 }
 0x66f   :  { %6486 = vmax.xlane.f32.xlu0 %v10391_v43  ;;  %v6340_v54 = vadd.f32 %v10335_v51, %v6339_v18  ;;  %v10402_v35 = vsel %vm6433_vm0, %v6337_v15, -1e+30 }
 0x670   :  { %v10397_v57 = vsel %vm6433_vm0, %v6348_v27, -1e+30 }
 0x671   :  { %6488 = vmax.xlane.f32.xlu1 %v10397_v57  ;;  %v10407_v40 = vsel %vm6433_vm0, %v6340_v54, -1e+30 }
 0x673   :  { %6482 = vmax.xlane.f32.xlu0 %v10402_v35 }
 0x675   :  { %6484 = vmax.xlane.f32.xlu1 %v10407_v40 }
 0x67b   :  { %v7542_v34 = vpop.f32.mrb[252].mxu0 }
 0x67c   :  { %v6361_v44 = vadd.f32 %v7542_v34, %v10335_v51  ;;  %v6352_v58 = vpop.f32.mrb[253].mxu0 }
 0x67d   :  { %v7543_v41 = vpop.f32.mrb[254].mxu0  ;;  %v6353_v17 = vadd.f32 %v10335_v51, %v6352_v58 }
 0x67e   :  { %v6364_v24 = vadd.f32 %v7543_v41, %v10335_v51  ;;  %v6355_v3 = vpop.f32.mrb[255].mxu0  ;;  %v10415_v2 = vsel %vm6433_vm0, %v6361_v44, -1e+30 }
 0x67f   :  { %6494 = vmax.xlane.f32.xlu0 %v10415_v2  ;;  %v6356_v20 = vadd.f32 %v10335_v51, %v6355_v3  ;;  %v10426_v31 = vsel %vm6433_vm0, %v6353_v17, -1e+30 }
 0x680   :  { %v10421_v60 = vsel %vm6433_vm0, %v6364_v24, -1e+30 }
 0x681   :  { %6496 = vmax.xlane.f32.xlu1 %v10421_v60  ;;  %v10431_v50 = vsel %vm6433_vm0, %v6356_v20, -1e+30 }
 0x683   :  { %6490 = vmax.xlane.f32.xlu0 %v10426_v31 }
 0x685   :  { %6492 = vmax.xlane.f32.xlu1 %v10431_v50 }
 0x68b   :  { %v7546_v13 = vpop.f32.mrb[0].mxu0 }
 0x68c   :  { %v6377_v59 = vadd.f32 %v7546_v13, %v10335_v51  ;;  %v6368_v19 = vpop.f32.mrb[1].mxu0 }
 0x68d   :  { %v7547_v14 = vpop.f32.mrb[2].mxu0  ;;  %v6369_v63 = vadd.f32 %v10335_v51, %v6368_v19 }
 0x68e   :  { %v6380_v38 = vadd.f32 %v7547_v14, %v10335_v51  ;;  %v6371_v62 = vpop.f32.mrb[3].mxu0  ;;  %v10439_v49 = vsel %vm6433_vm0, %v6377_v59, -1e+30 }
 0x68f   :  { %6502 = vmax.xlane.f32.xlu0 %v10439_v49  ;;  %v6372_v39 = vadd.f32 %v10335_v51, %v6371_v62  ;;  %v10450_v48 = vsel %vm6433_vm0, %v6369_v63, -1e+30 }
 0x690   :  { %v10445_v4 = vsel %vm6433_vm0, %v6380_v38, -1e+30 }
 0x691   :  { %6504 = vmax.xlane.f32.xlu1 %v10445_v4  ;;  %v10455_v16 = vsel %vm6433_vm0, %v6372_v39, -1e+30 }
 0x693   :  { %6498 = vmax.xlane.f32.xlu0 %v10450_v48 }
 0x695   :  { %6500 = vmax.xlane.f32.xlu1 %v10455_v16 }
 0x69b   :  { %v7550_v37 = vpop.f32.mrb[4].mxu0 }
 0x69c   :  { %v6393_v6 = vadd.f32 %v7550_v37, %v10335_v51  ;;  %v6384_v45 = vpop.f32.mrb[5].mxu0 }
 0x69d   :  { %v7551_v22 = vpop.f32.mrb[6].mxu0  ;;  %v6385_v61 = vadd.f32 %v10335_v51, %v6384_v45 }
 0x69e   :  { %v6396_v0 = vadd.f32 %v7551_v22, %v10335_v51  ;;  %v6387_v11 = vpop.f32.mrb[7].mxu0  ;;  %v10463_v33 = vsel %vm6433_vm0, %v6393_v6, -1e+30 }
 0x69f   :  { %6510 = vmax.xlane.f32.xlu0 %v10463_v33  ;;  %v6388_v53 = vadd.f32 %v10335_v51, %v6387_v11  ;;  %v10474_v42 = vsel %vm6433_vm0, %v6385_v61, -1e+30 }
 0x6a0   :  { %v10469_v52 = vsel %vm6433_vm0, %v6396_v0, -1e+30 }
 0x6a1   :  { %6512 = vmax.xlane.f32.xlu1 %v10469_v52  ;;  %v10479_v55 = vsel %vm6433_vm0, %v6388_v53, -1e+30 }
 0x6a3   :  { %6506 = vmax.xlane.f32.xlu0 %v10474_v42 }
 0x6a5   :  { %6508 = vmax.xlane.f32.xlu1 %v10479_v55 }
 0x6ab   :  { %v7554_v28 = vpop.f32.mrb[8].mxu0 }
 0x6ac   :  { %v6409_v10 = vadd.f32 %v7554_v28, %v10335_v51  ;;  %v6400_v7 = vpop.f32.mrb[9].mxu0 }
 0x6ad   :  { %v7555_v8 = vpop.f32.mrb[10].mxu0  ;;  %v6401_v9 = vadd.f32 %v10335_v51, %v6400_v7 }
 0x6ae   :  { %v6412_v5 = vadd.f32 %v7555_v8, %v10335_v51  ;;  %v6403_v29 = vpop.f32.mrb[11].mxu0  ;;  %v10487_v21 = vsel %vm6433_vm0, %v6409_v10, -1e+30 }
 0x6af   :  { %6518 = vmax.xlane.f32.xlu0 %v10487_v21  ;;  %v6404_v25 = vadd.f32 %v10335_v51, %v6403_v29  ;;  %v10498_v15 = vsel %vm6433_vm0, %v6401_v9, -1e+30 }
 0x6b0   :  { %v10493_v56 = vsel %vm6433_vm0, %v6412_v5, -1e+30 }
 0x6b1   :  { %6520 = vmax.xlane.f32.xlu1 %v10493_v56  ;;  %v10503_v27 = vsel %vm6433_vm0, %v6404_v25, -1e+30 }
 0x6b3   :  { %6514 = vmax.xlane.f32.xlu0 %v10498_v15 }
 0x6b5   :  { %6516 = vmax.xlane.f32.xlu1 %v10503_v27 }
 0x6bb   :  { %v7558_v18 = vpop.f32.mrb[12].mxu0 }
 0x6bc   :  { %v6416_v54 = vpop.f32.mrb[13].mxu0  ;;  %v6425_v41 = vadd.f32 %v7558_v18, %v10335_v51 }
 0x6bd   :  { %v6417_v34 = vadd.f32 %v10335_v51, %v6416_v54  ;;  %v7559_v44 = vpop.f32.mrb[14].mxu0 }
 0x6be   :  { %v6419_v58 = vpop.f32.mrb[15].mxu0  ;;  %v6428_v3 = vadd.f32 %v7559_v44, %v10335_v51  ;;  %v10522_v13 = vsel %vm6433_vm0, %v6425_v41, -1e+30 }
 0x6bf   :  { %v6420_v17 = vadd.f32 %v10335_v51, %v6419_v58  ;;  %v10511_v24 = vsel %vm6433_vm0, %v6417_v34, -1e+30 }
 0x6c0   :  { %6522 = vmax.xlane.f32.xlu0 %v10511_v24  ;;  %v10527_v59 = vsel %vm6433_vm0, %v6428_v3, -1e+30 }
 0x6c1   :  { %v10517_v20 = vsel %vm6433_vm0, %v6420_v17, -1e+30 }
 0x6c2   :  { %6524 = vmax.xlane.f32.xlu1 %v10517_v20 }
 0x6c4   :  { %6526 = vmax.xlane.f32.xlu0 %v10522_v13 }
 0x6c6   :  { %6528 = vmax.xlane.f32.xlu1 %v10527_v59 }
 0x6dc   :  { %v6471_v19 = vpop.xlane.xlu1 %6470 }
 0x6dd   :  { %v6532_v51 = vsub.f32 %v10343_v47, %v6471_v19  ;;  %v6467_v14 = vpop.xlane.xlu0 %6466 }
 0x6de   :  { %v6530_v63 = vsub.f32 %v10349_v12, %v6467_v14 }
 0x6df   :  { %v6566_v38 = vmul.f32 1.442695, %v6532_v51 }
 0x6e0   :  { %v6562_v62 = vmul.f32 1.442695, %v6530_v63  ;;  %v6473_v39 = vpop.xlane.xlu1 %6472 }
 0x6e1   :  { %8575 = vpow2.f32 %v6566_v38  ;;  %v6533_v37 = vsub.f32 %v10354_v36, %v6473_v39  ;;  %v6469_v6 = vpop.xlane.xlu0 %6468 }
 0x6e2   :  { %v6531_v45 = vsub.f32 %v10359_v1, %v6469_v6  ;;  %8577 = vpow2.f32 %v6562_v62 }
 0x6e3   :  { %v6568_v46 = vmul.f32 1.442695, %v6533_v37 }
 0x6e4   :  { %v6564_v22 = vmul.f32 1.442695, %v6531_v45 }
 0x6e5   :  { %8579 = vpow2.f32 %v6568_v46 }
 0x6e6   :  { %8581 = vpow2.f32 %v6564_v22 }
 0x6eb   :  { %v10534_v61 = vpop.eup %8575 }
 0x6ec   :  { %6630 = vadd.xlane.f32.xlu0 %v10534_v61  ;;  %v6479_v47 = vpop.xlane.xlu0 %6478  ;;  %v10538_v0 = vpop.eup %8577 }
 0x6ed   :  { %v6536_v12 = vsub.f32 %v10367_v30, %v6479_v47 }
 0x6ee   :  { %v6481_v11 = vpop.xlane.xlu1 %6480 }
 0x6ef   :  { %v10540_v53 = vpop.eup %8579  ;;  %v6574_v36 = vmul.f32 1.442695, %v6536_v12  ;;  %v6537_v1 = vsub.f32 %v10373_v23, %v6481_v11 }
 0x6f0   :  { %6632 = vadd.xlane.f32.xlu1 %v10540_v53  ;;  %6626 = vadd.xlane.f32.xlu0 %v10538_v0  ;;  %v6475_v28 = vpop.xlane.xlu0 %6474  ;;  %v10546_v9 = vpop.eup %8581 }
 0x6f1   :  { %8583 = vpow2.f32 %v6574_v36  ;;  %v6576_v10 = vmul.f32 1.442695, %v6537_v1  ;;  %v6534_v7 = vsub.f32 %v10378_v26, %v6475_v28 }
 0x6f2   :  { %v6477_v8 = vpop.xlane.xlu1 %6476 }
 0x6f3   :  { %8585 = vpow2.f32 %v6576_v10  ;;  %v6570_v30 = vmul.f32 1.442695, %v6534_v7  ;;  %v6535_v5 = vsub.f32 %v10383_v32, %v6477_v8 }
 0x6f4   :  { %6628 = vadd.xlane.f32.xlu1 %v10546_v9 }
 0x6f5   :  { %8587 = vpow2.f32 %v6570_v30  ;;  %v6572_v23 = vmul.f32 1.442695, %v6535_v5 }
 0x6f7   :  { %8589 = vpow2.f32 %v6572_v23 }
 0x6fb   :  { %v10550_v29 = vpop.eup %8583 }
 0x6fc   :  { %6638 = vadd.xlane.f32.xlu0 %v10550_v29  ;;  %v6487_v25 = vpop.xlane.xlu0 %6486 }
 0x6fd   :  { %v10553_v18 = vpop.eup %8585  ;;  %v6540_v26 = vsub.f32 %v10391_v43, %v6487_v25 }
 0x6fe   :  { %v6489_v54 = vpop.xlane.xlu1 %6488  ;;  %6640 = vadd.xlane.f32.xlu1 %v10553_v18 }
 0x6ff   :  { %v10557_v34 = vpop.eup %8587  ;;  %v6582_v32 = vmul.f32 1.442695, %v6540_v26  ;;  %v6541_v44 = vsub.f32 %v10397_v57, %v6489_v54 }
 0x700   :  { %6634 = vadd.xlane.f32.xlu0 %v10557_v34  ;;  %v6483_v58 = vpop.xlane.xlu0 %6482 }
 0x701   :  { %v10561_v41 = vpop.eup %8589  ;;  %8591 = vpow2.f32 %v6582_v32  ;;  %v6584_v17 = vmul.f32 1.442695, %v6541_v44  ;;  %v6538_v3 = vsub.f32 %v10402_v35, %v6483_v58 }
 0x702   :  { %v6485_v19 = vpop.xlane.xlu1 %6484  ;;  %6636 = vadd.xlane.f32.xlu1 %v10561_v41 }
 0x703   :  { %8593 = vpow2.f32 %v6584_v17  ;;  %v6578_v43 = vmul.f32 1.442695, %v6538_v3  ;;  %v6539_v51 = vsub.f32 %v10407_v40, %v6485_v19 }
 0x705   :  { %8595 = vpow2.f32 %v6578_v43  ;;  %v6580_v14 = vmul.f32 1.442695, %v6539_v51 }
 0x707   :  { %8597 = vpow2.f32 %v6580_v14 }
 0x70b   :  { %v10566_v57 = vpop.eup %8591 }
 0x70c   :  { %6646 = vadd.xlane.f32.xlu0 %v10566_v57  ;;  %v6495_v63 = vpop.xlane.xlu0 %6494 }
 0x70d   :  { %v10569_v38 = vpop.eup %8593  ;;  %v6544_v62 = vsub.f32 %v10415_v2, %v6495_v63 }
 0x70e   :  { %v6497_v35 = vpop.xlane.xlu1 %6496  ;;  %6648 = vadd.xlane.f32.xlu1 %v10569_v38 }
 0x70f   :  { %v10573_v39 = vpop.eup %8595  ;;  %v6590_v37 = vmul.f32 1.442695, %v6544_v62  ;;  %v6545_v40 = vsub.f32 %v10421_v60, %v6497_v35 }
 0x710   :  { %6642 = vadd.xlane.f32.xlu0 %v10573_v39  ;;  %v6491_v6 = vpop.xlane.xlu0 %6490 }
 0x711   :  { %v10577_v45 = vpop.eup %8597  ;;  %8599 = vpow2.f32 %v6590_v37  ;;  %v6592_v46 = vmul.f32 1.442695, %v6545_v40  ;;  %v6542_v22 = vsub.f32 %v10426_v31, %v6491_v6 }
 0x712   :  { %v6493_v47 = vpop.xlane.xlu1 %6492  ;;  %6644 = vadd.xlane.f32.xlu1 %v10577_v45 }
 0x713   :  { %8601 = vpow2.f32 %v6592_v46  ;;  %v6586_v2 = vmul.f32 1.442695, %v6542_v22  ;;  %v6543_v12 = vsub.f32 %v10431_v50, %v6493_v47 }
 0x715   :  { %8603 = vpow2.f32 %v6586_v2  ;;  %v6588_v11 = vmul.f32 1.442695, %v6543_v12 }
 0x717   :  { %8605 = vpow2.f32 %v6588_v11 }
 0x71b   :  { %v10582_v60 = vpop.eup %8599 }
 0x71c   :  { %6654 = vadd.xlane.f32.xlu0 %v10582_v60  ;;  %v6503_v36 = vpop.xlane.xlu0 %6502 }
 0x71d   :  { %v10585_v1 = vpop.eup %8601  ;;  %v6548_v28 = vsub.f32 %v10439_v49, %v6503_v36 }
 0x71e   :  { %v6505_v31 = vpop.xlane.xlu1 %6504  ;;  %6656 = vadd.xlane.f32.xlu1 %v10585_v1 }
 0x71f   :  { %v10589_v10 = vpop.eup %8603  ;;  %v6598_v7 = vmul.f32 1.442695, %v6548_v28  ;;  %v6549_v50 = vsub.f32 %v10445_v4, %v6505_v31 }
 0x720   :  { %6650 = vadd.xlane.f32.xlu0 %v10589_v10  ;;  %v6499_v8 = vpop.xlane.xlu0 %6498 }
 0x721   :  { %v10593_v30 = vpop.eup %8605  ;;  %8607 = vpow2.f32 %v6598_v7  ;;  %v6600_v5 = vmul.f32 1.442695, %v6549_v50  ;;  %v6546_v23 = vsub.f32 %v10450_v48, %v6499_v8 }
 0x722   :  { %v6501_v25 = vpop.xlane.xlu1 %6500  ;;  %6652 = vadd.xlane.f32.xlu1 %v10593_v30 }
 0x723   :  { %8609 = vpow2.f32 %v6600_v5  ;;  %v6594_v49 = vmul.f32 1.442695, %v6546_v23  ;;  %v6547_v26 = vsub.f32 %v10455_v16, %v6501_v25 }
 0x725   :  { %8611 = vpow2.f32 %v6594_v49  ;;  %v6596_v54 = vmul.f32 1.442695, %v6547_v26 }
 0x727   :  { %8613 = vpow2.f32 %v6596_v54 }
 0x72b   :  { %v10598_v4 = vpop.eup %8607 }
 0x72c   :  { %6662 = vadd.xlane.f32.xlu0 %v10598_v4  ;;  %v6511_v32 = vpop.xlane.xlu0 %6510 }
 0x72d   :  { %v10601_v44 = vpop.eup %8609  ;;  %v6552_v58 = vsub.f32 %v10463_v33, %v6511_v32 }
 0x72e   :  { %v6513_v48 = vpop.xlane.xlu1 %6512  ;;  %6664 = vadd.xlane.f32.xlu1 %v10601_v44 }
 0x72f   :  { %v10605_v17 = vpop.eup %8611  ;;  %v6606_v3 = vmul.f32 1.442695, %v6552_v58  ;;  %v6553_v16 = vsub.f32 %v10469_v52, %v6513_v48 }
 0x730   :  { %6658 = vadd.xlane.f32.xlu0 %v10605_v17  ;;  %v6507_v19 = vpop.xlane.xlu0 %6506 }
 0x731   :  { %v10609_v43 = vpop.eup %8613  ;;  %8615 = vpow2.f32 %v6606_v3  ;;  %v6608_v51 = vmul.f32 1.442695, %v6553_v16  ;;  %v6550_v14 = vsub.f32 %v10474_v42, %v6507_v19 }
 0x732   :  { %v6509_v63 = vpop.xlane.xlu1 %6508  ;;  %6660 = vadd.xlane.f32.xlu1 %v10609_v43 }
 0x733   :  { %8617 = vpow2.f32 %v6608_v51  ;;  %v6602_v33 = vmul.f32 1.442695, %v6550_v14  ;;  %v6551_v62 = vsub.f32 %v10479_v55, %v6509_v63 }
 0x735   :  { %8619 = vpow2.f32 %v6602_v33  ;;  %v6604_v35 = vmul.f32 1.442695, %v6551_v62 }
 0x737   :  { %8621 = vpow2.f32 %v6604_v35 }
 0x73b   :  { %v10614_v52 = vpop.eup %8615 }
 0x73c   :  { %6670 = vadd.xlane.f32.xlu0 %v10614_v52  ;;  %v6519_v37 = vpop.xlane.xlu0 %6518 }
 0x73d   :  { %v10617_v40 = vpop.eup %8617  ;;  %v6556_v6 = vsub.f32 %v10487_v21, %v6519_v37 }
 0x73e   :  { %v6521_v42 = vpop.xlane.xlu1 %6520  ;;  %6672 = vadd.xlane.f32.xlu1 %v10617_v40 }
 0x73f   :  { %v10621_v46 = vpop.eup %8619  ;;  %v6614_v22 = vmul.f32 1.442695, %v6556_v6  ;;  %v6557_v55 = vsub.f32 %v10493_v56, %v6521_v42 }
 0x740   :  { %6666 = vadd.xlane.f32.xlu0 %v10621_v46  ;;  %v6515_v47 = vpop.xlane.xlu0 %6514 }
 0x741   :  { %v10625_v2 = vpop.eup %8621  ;;  %8623 = vpow2.f32 %v6614_v22  ;;  %v6616_v12 = vmul.f32 1.442695, %v6557_v55  ;;  %v6554_v11 = vsub.f32 %v10498_v15, %v6515_v47 }
 0x742   :  { %v6517_v36 = vpop.xlane.xlu1 %6516  ;;  %6668 = vadd.xlane.f32.xlu1 %v10625_v2 }
 0x743   :  { %8625 = vpow2.f32 %v6616_v12  ;;  %v6610_v21 = vmul.f32 1.442695, %v6554_v11  ;;  %v6555_v28 = vsub.f32 %v10503_v27, %v6517_v36 }
 0x745   :  { %8627 = vpow2.f32 %v6610_v21  ;;  %v6612_v31 = vmul.f32 1.442695, %v6555_v28 }
 0x747   :  { %8629 = vpow2.f32 %v6612_v31 }
 0x74b   :  { %v10630_v56 = vpop.eup %8623 }
 0x74c   :  { %6678 = vadd.xlane.f32.xlu0 %v10630_v56 }
 0x74d   :  { %v10633_v7 = vpop.eup %8625  ;;  %v6523_v50 = vpop.xlane.xlu0 %6522 }
 0x74e   :  { %v6558_v8 = vsub.f32 %v10511_v24, %v6523_v50  ;;  %6680 = vadd.xlane.f32.xlu1 %v10633_v7 }
 0x74f   :  { %v10637_v15 = vpop.eup %8627  ;;  %v6525_v5 = vpop.xlane.xlu1 %6524 }
 0x750   :  { %v6618_v23 = vmul.f32 1.442695, %v6558_v8  ;;  %v6559_v27 = vsub.f32 %v10517_v20, %v6525_v5  ;;  %6674 = vadd.xlane.f32.xlu0 %v10637_v15 }
 0x751   :  { %v10641_v25 = vpop.eup %8629  ;;  %v6527_v49 = vpop.xlane.xlu0 %6526 }
 0x752   :  { %8631 = vpow2.f32 %v6618_v23  ;;  %v6620_v26 = vmul.f32 1.442695, %v6559_v27  ;;  %v6560_v54 = vsub.f32 %v10522_v13, %v6527_v49  ;;  %6676 = vadd.xlane.f32.xlu1 %v10641_v25 }
 0x753   :  { %v6529_v24 = vpop.xlane.xlu1 %6528 }
 0x754   :  { %8633 = vpow2.f32 %v6620_v26  ;;  %v6622_v32 = vmul.f32 1.442695, %v6560_v54  ;;  %v6561_v58 = vsub.f32 %v10527_v59, %v6529_v24 }
 0x756   :  { %8635 = vpow2.f32 %v6622_v32  ;;  %v6624_v48 = vmul.f32 1.442695, %v6561_v58 }
 0x758   :  { %8637 = vpow2.f32 %v6624_v48 }
 0x75c   :  { %v10646_v20 = vpop.eup %8631 }
 0x75d   :  { %6682 = vadd.xlane.f32.xlu0 %v10646_v20 }
 0x75e   :  { %v10649_v3 = vpop.eup %8633 }
 0x75f   :  { %6684 = vadd.xlane.f32.xlu1 %v10649_v3 }
 0x760   :  { %v10652_v16 = vpop.eup %8635 }
 0x761   :  { %6686 = vadd.xlane.f32.xlu0 %v10652_v16 }
 0x762   :  { %v10655_v13 = vpop.eup %8637 }
 0x763   :  { %6688 = vadd.xlane.f32.xlu1 %v10655_v13 }
 0x779   :  { %v6631_v59 = vpop.xlane.xlu0 %6630 }
 0x77a   :  { %8639 = vrcp.f32 %v6631_v59 }
 0x77d   :  { %v6633_v19 = vpop.xlane.xlu1 %6632  ;;  %v6627_v51 = vpop.xlane.xlu0 %6626 }
 0x77e   :  { %8641 = vrcp.f32 %v6633_v19 }
 0x77f   :  { %8643 = vrcp.f32 %v6627_v51 }
 0x781   :  { %v6629_v14 = vpop.xlane.xlu1 %6628 }
 0x782   :  { %8645 = vrcp.f32 %v6629_v14 }
 0x784   :  { %v8640_v63 = vpop.eup %8639 }
 0x785   :  { %v6724_v33 = vmul.f32 %v8640_v63, %v10534_v61 }
 0x787   :  { %6756 = vst [vmem:[#allocation13 + $0x10] sm:$0xff] %v6724_v33 }
 0x788   :  { %v8642_v62 = vpop.eup %8641 }
 0x789   :  { %v8644_v35 = vpop.eup %8643  ;;  %v6725_v37 = vmul.f32 %v8642_v62, %v10540_v53  ;;  %v6639_v6 = vpop.xlane.xlu0 %6638 }
 0x78a   :  { %v6722_v42 = vmul.f32 %v8644_v35, %v10538_v0  ;;  %8647 = vrcp.f32 %v6639_v6 }
 0x78b   :  { %6757 = vst [vmem:[#allocation13 + $0x18] sm:$0xff] %v6725_v37  ;;  %v6641_v22 = vpop.xlane.xlu1 %6640 }
 0x78c   :  { %v8646_v55 = vpop.eup %8645  ;;  %6754 = vst [vmem:[#allocation13] sm:$0xff] %v6722_v42  ;;  %8649 = vrcp.f32 %v6641_v22 }
 0x78d   :  { %v6723_v47 = vmul.f32 %v8646_v55, %v10546_v9  ;;  %v6635_v12 = vpop.xlane.xlu0 %6634 }
 0x78e   :  { %8651 = vrcp.f32 %v6635_v12 }
 0x78f   :  { %6755 = vst [vmem:[#allocation13 + $0x8] sm:$0xff] %v6723_v47  ;;  %v6637_v61 = vpop.xlane.xlu1 %6636 }
 0x790   :  { %8653 = vrcp.f32 %v6637_v61 }
 0x794   :  { %v8648_v11 = vpop.eup %8647 }
 0x795   :  { %v6728_v36 = vmul.f32 %v8648_v11, %v10550_v29 }
 0x796   :  { %v8650_v53 = vpop.eup %8649 }
 0x797   :  { %6760 = vst [vmem:[#allocation13 + $0x30] sm:$0xff] %v6728_v36  ;;  %v6729_v0 = vmul.f32 %v8650_v53, %v10553_v18 }
 0x798   :  { %v8652_v21 = vpop.eup %8651 }
 0x799   :  { %6761 = vst [vmem:[#allocation13 + $0x38] sm:$0xff] %v6729_v0  ;;  %v6726_v28 = vmul.f32 %v8652_v21, %v10557_v34  ;;  %v6647_v31 = vpop.xlane.xlu0 %6646 }
 0x79a   :  { %v8654_v50 = vpop.eup %8653  ;;  %8655 = vrcp.f32 %v6647_v31 }
 0x79b   :  { %6758 = vst [vmem:[#allocation13 + $0x20] sm:$0xff] %v6726_v28  ;;  %v6727_v9 = vmul.f32 %v8654_v50, %v10561_v41  ;;  %v6649_v8 = vpop.xlane.xlu1 %6648 }
 0x79c   :  { %8657 = vrcp.f32 %v6649_v8 }
 0x79d   :  { %6759 = vst [vmem:[#allocation13 + $0x28] sm:$0xff] %v6727_v9  ;;  %v6643_v5 = vpop.xlane.xlu0 %6642 }
 0x79e   :  { %8659 = vrcp.f32 %v6643_v5 }
 0x79f   :  { %v6645_v29 = vpop.xlane.xlu1 %6644 }
 0x7a0   :  { %8661 = vrcp.f32 %v6645_v29 }
 0x7a4   :  { %v8656_v23 = vpop.eup %8655 }
 0x7a5   :  { %v6732_v18 = vmul.f32 %v8656_v23, %v10566_v57 }
 0x7a6   :  { %v8658_v27 = vpop.eup %8657 }
 0x7a7   :  { %6764 = vst [vmem:[#allocation13 + $0x50] sm:$0xff] %v6732_v18  ;;  %v6733_v34 = vmul.f32 %v8658_v27, %v10569_v38 }
 0x7a8   :  { %v8660_v49 = vpop.eup %8659 }
 0x7a9   :  { %6765 = vst [vmem:[#allocation13 + $0x58] sm:$0xff] %v6733_v34  ;;  %v6730_v26 = vmul.f32 %v8660_v49, %v10573_v39  ;;  %v6655_v54 = vpop.xlane.xlu0 %6654 }
 0x7aa   :  { %v8662_v41 = vpop.eup %8661  ;;  %8663 = vrcp.f32 %v6655_v54 }
 0x7ab   :  { %6762 = vst [vmem:[#allocation13 + $0x40] sm:$0xff] %v6730_v26  ;;  %v6731_v24 = vmul.f32 %v8662_v41, %v10577_v45  ;;  %v6657_v32 = vpop.xlane.xlu1 %6656 }
 0x7ac   :  { %8665 = vrcp.f32 %v6657_v32 }
 0x7ad   :  { %6763 = vst [vmem:[#allocation13 + $0x48] sm:$0xff] %v6731_v24  ;;  %v6651_v58 = vpop.xlane.xlu0 %6650 }
 0x7ae   :  { %8667 = vrcp.f32 %v6651_v58 }
 0x7af   :  { %v6653_v57 = vpop.xlane.xlu1 %6652 }
 0x7b0   :  { %8669 = vrcp.f32 %v6653_v57 }
 0x7b4   :  { %v8664_v48 = vpop.eup %8663 }
 0x7b5   :  { %v6736_v38 = vmul.f32 %v8664_v48, %v10582_v60 }
 0x7b6   :  { %v8666_v59 = vpop.eup %8665 }
 0x7b7   :  { %6768 = vst [vmem:[#allocation13 + $0x70] sm:$0xff] %v6736_v38  ;;  %v6737_v39 = vmul.f32 %v8666_v59, %v10585_v1 }
 0x7b8   :  { %v8668_v19 = vpop.eup %8667 }
 0x7b9   :  { %6769 = vst [vmem:[#allocation13 + $0x78] sm:$0xff] %v6737_v39  ;;  %v6734_v51 = vmul.f32 %v8668_v19, %v10589_v10  ;;  %v6663_v14 = vpop.xlane.xlu0 %6662 }
 0x7ba   :  { %v8670_v45 = vpop.eup %8669  ;;  %8671 = vrcp.f32 %v6663_v14 }
 0x7bb   :  { %6766 = vst [vmem:[#allocation13 + $0x60] sm:$0xff] %v6734_v51  ;;  %v6735_v63 = vmul.f32 %v8670_v45, %v10593_v30  ;;  %v6665_v33 = vpop.xlane.xlu1 %6664 }
 0x7bc   :  { %8673 = vrcp.f32 %v6665_v33 }
 0x7bd   :  { %6767 = vst [vmem:[#allocation13 + $0x68] sm:$0xff] %v6735_v63  ;;  %v6659_v62 = vpop.xlane.xlu0 %6658 }
 0x7be   :  { %8675 = vrcp.f32 %v6659_v62 }
 0x7bf   :  { %v6661_v60 = vpop.xlane.xlu1 %6660 }
 0x7c0   :  { %8677 = vrcp.f32 %v6661_v60 }
 0x7c4   :  { %v8672_v35 = vpop.eup %8671 }
 0x7c5   :  { %v6740_v1 = vmul.f32 %v8672_v35, %v10598_v4 }
 0x7c6   :  { %v8674_v37 = vpop.eup %8673 }
 0x7c7   :  { %6772 = vst [vmem:[#allocation13 + $0x90] sm:$0xff] %v6740_v1  ;;  %v6741_v10 = vmul.f32 %v8674_v37, %v10601_v44 }
 0x7c8   :  { %v8676_v6 = vpop.eup %8675 }
 0x7c9   :  { %6773 = vst [vmem:[#allocation13 + $0x98] sm:$0xff] %v6741_v10  ;;  %v6738_v42 = vmul.f32 %v8676_v6, %v10605_v17  ;;  %v6671_v22 = vpop.xlane.xlu0 %6670 }
 0x7ca   :  { %v8678_v30 = vpop.eup %8677  ;;  %8679 = vrcp.f32 %v6671_v22 }
 0x7cb   :  { %6770 = vst [vmem:[#allocation13 + $0x80] sm:$0xff] %v6738_v42  ;;  %v6739_v55 = vmul.f32 %v8678_v30, %v10609_v43  ;;  %v6673_v47 = vpop.xlane.xlu1 %6672 }
 0x7cc   :  { %8681 = vrcp.f32 %v6673_v47 }
 0x7cd   :  { %6771 = vst [vmem:[#allocation13 + $0x88] sm:$0xff] %v6739_v55  ;;  %v6667_v12 = vpop.xlane.xlu0 %6666 }
 0x7ce   :  { %8683 = vrcp.f32 %v6667_v12 }
 0x7cf   :  { %v6669_v4 = vpop.xlane.xlu1 %6668 }
 0x7d0   :  { %8685 = vrcp.f32 %v6669_v4 }
 0x7d4   :  { %v8680_v61 = vpop.eup %8679 }
 0x7d5   :  { %v6744_v44 = vmul.f32 %v8680_v61, %v10614_v52 }
 0x7d6   :  { %v8682_v11 = vpop.eup %8681 }
 0x7d7   :  { %6776 = vst [vmem:[#allocation13 + $0xb0] sm:$0xff] %v6744_v44  ;;  %v6745_v17 = vmul.f32 %v8682_v11, %v10617_v40 }
 0x7d8   :  { %v8684_v36 = vpop.eup %8683 }
 0x7d9   :  { %6777 = vst [vmem:[#allocation13 + $0xb8] sm:$0xff] %v6745_v17  ;;  %v6742_v53 = vmul.f32 %v8684_v36, %v10621_v46  ;;  %v6679_v0 = vpop.xlane.xlu0 %6678 }
 0x7da   :  { %v8686_v43 = vpop.eup %8685  ;;  %8687 = vrcp.f32 %v6679_v0 }
 0x7db   :  { %6774 = vst [vmem:[#allocation13 + $0xa0] sm:$0xff] %v6742_v53  ;;  %v6743_v21 = vmul.f32 %v8686_v43, %v10625_v2  ;;  %v6681_v28 = vpop.xlane.xlu1 %6680 }
 0x7dc   :  { %8689 = vrcp.f32 %v6681_v28 }
 0x7dd   :  { %6775 = vst [vmem:[#allocation13 + $0xa8] sm:$0xff] %v6743_v21  ;;  %v6675_v31 = vpop.xlane.xlu0 %6674 }
 0x7de   :  { %8691 = vrcp.f32 %v6675_v31 }
 0x7df   :  { %v6677_v52 = vpop.xlane.xlu1 %6676 }
 0x7e0   :  { %8693 = vrcp.f32 %v6677_v52 }
 0x7e4   :  { %v8688_v50 = vpop.eup %8687 }
 0x7e5   :  { %v6748_v40 = vmul.f32 %v8688_v50, %v10630_v56 }
 0x7e6   :  { %v8690_v9 = vpop.eup %8689 }
 0x7e7   :  { %6780 = vst [vmem:[#allocation13 + $0xd0] sm:$0xff] %v6748_v40  ;;  %v6749_v46 = vmul.f32 %v8690_v9, %v10633_v7 }
 0x7e8   :  { %v8692_v8 = vpop.eup %8691 }
 0x7e9   :  { %6781 = vst [vmem:[#allocation13 + $0xd8] sm:$0xff] %v6749_v46  ;;  %v6746_v5 = vmul.f32 %v8692_v8, %v10637_v15 }
 0x7ea   :  { %v8694_v29 = vpop.eup %8693  ;;  %v6683_v2 = vpop.xlane.xlu0 %6682 }
 0x7eb   :  { %6778 = vst [vmem:[#allocation13 + $0xc0] sm:$0xff] %v6746_v5  ;;  %v6747_v23 = vmul.f32 %v8694_v29, %v10641_v25  ;;  %8695 = vrcp.f32 %v6683_v2 }
 0x7ec   :  { %v6685_v18 = vpop.xlane.xlu1 %6684 }
 0x7ed   :  { %6779 = vst [vmem:[#allocation13 + $0xc8] sm:$0xff] %v6747_v23  ;;  %8697 = vrcp.f32 %v6685_v18 }
 0x7ee   :  { %v6687_v27 = vpop.xlane.xlu0 %6686 }
 0x7ef   :  { %8699 = vrcp.f32 %v6687_v27 }
 0x7f0   :  { %v6689_v56 = vpop.xlane.xlu1 %6688 }
 0x7f1   :  { %8701 = vrcp.f32 %v6689_v56 }
 0x7f5   :  { %v8696_v34 = vpop.eup %8695 }
 0x7f6   :  { %v6750_v7 = vmul.f32 %v8696_v34, %v10646_v20 }
 0x7f7   :  { %v8698_v49 = vpop.eup %8697 }
 0x7f8   :  { %6782 = vst [vmem:[#allocation13 + $0xe0] sm:$0xff] %v6750_v7  ;;  %v6751_v15 = vmul.f32 %v8698_v49, %v10649_v3 }
 0x7f9   :  { %v8700_v26 = vpop.eup %8699 }
 0x7fa   :  { %6783 = vst [vmem:[#allocation13 + $0xe8] sm:$0xff] %v6751_v15  ;;  %v6752_v25 = vmul.f32 %v8700_v26, %v10652_v16 }
 0x7fb   :  { %v8702_v54 = vpop.eup %8701 }
 0x7fc   :  { %6784 = vst [vmem:[#allocation13 + $0xf0] sm:$0xff] %v6752_v25  ;;  %v6753_v41 = vmul.f32 %v8702_v54, %v10655_v13 }
 0x7fe   :  { %6785 = vst [vmem:[#allocation13 + $0xf8] sm:$0xff] %v6753_v41 }
 0x7ff   :  { %8857 = shalt.err (!%p8854_p10)
}
 0x800   :  { %s8858_s27 = scalar_lea.hbm %s10714_s9, 4096 }
 0x801   :  { %p8859_p11 = scmp.ne.s32.totalorder %s10714_s9, %s8858_s27  ;;  %p8862_p12 = scmp.lt.u32.totalorder %s8858_s27, %s10714_s9 }
 0x803   :  { %p8864_p13 = pnand %p8862_p12, %p8859_p11 }
 0x805   :  { %8867 = shalt.err (!%p8864_p13)
}
 0x806   :  { %6797 = dma.vmem_to_hbm [thread:$0]  %s6792_s22, 4096, %s10714_s9, [#allocation4], %s8885_s3, %s8885_s3, %s8886_s24  }
 0x807   :  { %8876 = dma.done.wait [#allocation4], 4096  }
 0x808   :  { %8877 = vsyncadd [#allocation4], 4294963200 }
 0x809   :  { %6801 = vsyncpa [#allocation3], 1 }
 0x80a   :  { %6802 = vsyncpa [#allocation6], 1 }
 0x80b   :  { %6803 = vsyncpa [#allocation9], 1 }
 0x80c   :  { %6804 = vsyncpa [#allocation12], 1 }
 0x80d   :  { %6805 = vsyncpa [#allocation4], 1 }

</bundles_post_ra>
